<compile_context>
chip_gen: v6e
topology: v6e:2x2x1
jax: 0.10.0
libtpu: 0.0.40
codegen_flags: <defaults>
</compile_context>

<pallas_src>
import math
import functools

import jax
import jax.numpy as jnp
from jax.experimental import pallas as pl
from jax.experimental.pallas import tpu as pltpu

_EPS = 1e-6
_ROW_TILE = 256                       # target row tile (multiple of 8 sublanes)
_VMEM_LIMIT = 48 * 1024 * 1024        # explicit budget; fits v5e/v6e/v7x


def _cparams(n_axes):
    return pltpu.CompilerParams(
        dimension_semantics=("parallel",) * n_axes,
        vmem_limit_bytes=_VMEM_LIMIT,
    )


def _row_tiling(m, max_tile=_ROW_TILE):
    tm = min(max_tile, ((m + 7) // 8) * 8)
    mp = ((m + tm - 1) // tm) * tm
    return tm, mp


def _norm_f32(x, alpha, bias, eps):
    # torch-style Norm: alpha * (x - mean) / (unbiased_std + eps) + bias
    d = x.shape[-1]
    mean = jnp.mean(x, axis=-1, keepdims=True)
    var_unbiased = jnp.sum((x - mean) ** 2, axis=-1, keepdims=True) / (d - 1)
    return alpha * (x - mean) / (jnp.sqrt(var_unbiased) + eps) + bias


# -----------------------------------------------------------------------------
# Fused multi-head attention residual block:  out = x + Wo @ MHA(norm(x), kv, m)
# -----------------------------------------------------------------------------
def _mha_kernel(*refs, heads, scale, eps, self_attn):
    if self_attn:
        (x_ref, m_ref, na_ref, nb_ref,
         wqkv_ref, bqkv_ref, wo_ref, bo_ref, o_ref) = refs
    else:
        (x_ref, kv_ref, m_ref, na_ref, nb_ref,
         wqkv_ref, bqkv_ref, wo_ref, bo_ref, o_ref) = refs

    x = x_ref[0]                                  # (Tq, D)  f32
    tq, d = x.shape
    dk = d // heads

    # pre-norm in f32, then bf16 for the MXU
    xn = _norm_f32(x, na_ref[...], nb_ref[...], eps).astype(jnp.bfloat16)

    w = wqkv_ref[...]                             # (D, 3D)  bf16
    b = bqkv_ref[...]                             # (1, 3D)  f32

    if self_attn:
        qkv = jnp.dot(xn, w, preferred_element_type=jnp.float32) + b
        q, k, v = qkv[:, :d], qkv[:, d:2 * d], qkv[:, 2 * d:]
    else:
        kv = kv_ref[0].astype(jnp.bfloat16)       # (Tk, D)
        q = jnp.dot(xn, w[:, :d], preferred_element_type=jnp.float32) + b[:, :d]
        kvp = jnp.dot(kv, w[:, d:], preferred_element_type=jnp.float32) + b[:, d:]
        k, v = kvp[:, :d], kvp[:, d:]

    tk = k.shape[0]
    mask = jnp.broadcast_to(m_ref[0], (tq, tk))   # (Tq, Tk) f32 (broadcast in-kernel)
    masked = mask == 0.0

    q = (q * scale).astype(jnp.bfloat16)          # fold 1/sqrt(dk) into q
    k = k.astype(jnp.bfloat16)
    v = v.astype(jnp.bfloat16)
    wo = wo_ref[...]                              # (D, D) bf16

    # Residual + output-projection bias as the accumulator; each head's output
    # is folded straight into the output projection (== concat(heads) @ Wo).
    acc = x + bo_ref[...]
    for h in range(heads):
        sl = slice(h * dk, (h + 1) * dk)
        s = jax.lax.dot_general(                  # q_h @ k_h^T  -> (Tq, Tk)
            q[:, sl], k[:, sl], (((1,), (1,)), ((), ())),
            preferred_element_type=jnp.float32)
        s = jnp.where(masked, -1e9, s)            # masked_fill(mask==0, -1e9)
        s = s - jnp.max(s, axis=-1, keepdims=True)
        p = jnp.exp(s)
        p = p * pl.reciprocal(jnp.sum(p, axis=-1, keepdims=True), approx=True)
        oh = jnp.dot(p.astype(jnp.bfloat16), v[:, sl],
                     preferred_element_type=jnp.float32)            # (Tq, dk)
        acc = acc + jnp.dot(oh.astype(jnp.bfloat16), wo[sl, :],
                            preferred_element_type=jnp.float32)     # (Tq, D)
    o_ref[0] = acc


def mha_block(x, kv, mask, attn_p, norm_p, *, heads, eps=_EPS):
    """out = x + Wo @ MultiHeadAttention(norm(x), kv_or_norm(x), mask)."""
    B, Tq, D = x.shape
    self_attn = kv is None
    Tk = Tq if self_attn else kv.shape[1]
    mq = mask.shape[1]
    scale = 1.0 / math.sqrt(D // heads)

    args = [x]
    in_specs = [pl.BlockSpec((1, Tq, D), lambda b: (b, 0, 0))]
    if not self_attn:
        args.append(kv)
        in_specs.append(pl.BlockSpec((1, Tk, D), lambda b: (b, 0, 0)))
    args += [
        mask.astype(jnp.float32),
        norm_p["a"].reshape(1, D), norm_p["b"].reshape(1, D),
        attn_p["wqkv"], attn_p["bqkv"].reshape(1, 3 * D),
        attn_p["wo"], attn_p["bo"].reshape(1, D),
    ]
    in_specs += [
        pl.BlockSpec((1, mq, Tk), lambda b: (b, 0, 0)),
        pl.BlockSpec((1, D), lambda b: (0, 0)),
        pl.BlockSpec((1, D), lambda b: (0, 0)),
        pl.BlockSpec((D, 3 * D), lambda b: (0, 0)),
        pl.BlockSpec((1, 3 * D), lambda b: (0, 0)),
        pl.BlockSpec((D, D), lambda b: (0, 0)),
        pl.BlockSpec((1, D), lambda b: (0, 0)),
    ]

    flops = 2 * B * (Tq * D * 3 * D + 2 * Tq * Tk * D + Tq * D * D)
    bytes_accessed = 4 * B * (2 * Tq * D + Tk * D + mq * Tk) + 2 * (4 * D * D)
    cost = pl.CostEstimate(flops=int(flops),
                           transcendentals=int(B * heads * Tq * Tk),
                           bytes_accessed=int(bytes_accessed))

    return pl.pallas_call(
        functools.partial(_mha_kernel, heads=heads, scale=scale, eps=eps,
                          self_attn=self_attn),
        out_shape=jax.ShapeDtypeStruct((B, Tq, D), jnp.float32),
        grid=(B,),
        in_specs=in_specs,
        out_specs=pl.BlockSpec((1, Tq, D), lambda b: (b, 0, 0)),
        input_output_aliases={0: 0},
        compiler_params=_cparams(1),
        cost_estimate=cost,
    )(*args)


# -----------------------------------------------------------------------------
# Fused feed-forward residual block:  out = x + W2 @ relu(W1 @ norm(x))
# -----------------------------------------------------------------------------
def _ff_kernel(x_ref, na_ref, nb_ref, w1_ref, b1_ref, w2_ref, b2_ref, o_ref, *, eps):
    x = x_ref[...]                                                   # (tm, D) f32
    xn = _norm_f32(x, na_ref[...], nb_ref[...], eps).astype(jnp.bfloat16)
    h = jnp.dot(xn, w1_ref[...], preferred_element_type=jnp.float32) + b1_ref[...]
    h = jnp.maximum(h, 0.0).astype(jnp.bfloat16)
    y = jnp.dot(h, w2_ref[...], preferred_element_type=jnp.float32) + b2_ref[...]
    o_ref[...] = x + y


def ff_block(x, norm_p, ff_p, *, eps=_EPS):
    B, T, D = x.shape
    Dff = ff_p["w1"].shape[1]
    x2 = x.reshape(-1, D)
    M = x2.shape[0]
    tm, Mp = _row_tiling(M)
    if Mp != M:
        x2 = jnp.pad(x2, ((0, Mp - M), (0, 0)))

    cost = pl.CostEstimate(flops=int(4 * Mp * D * Dff), transcendentals=0,
                           bytes_accessed=int(8 * Mp * D + 4 * D * Dff))
    out = pl.pallas_call(
        functools.partial(_ff_kernel, eps=eps),
        out_shape=jax.ShapeDtypeStruct((Mp, D), jnp.float32),
        grid=(Mp // tm,),
        in_specs=[
            pl.BlockSpec((tm, D), lambda i: (i, 0)),
            pl.BlockSpec((1, D), lambda i: (0, 0)),
            pl.BlockSpec((1, D), lambda i: (0, 0)),
            pl.BlockSpec((D, Dff), lambda i: (0, 0)),
            pl.BlockSpec((1, Dff), lambda i: (0, 0)),
            pl.BlockSpec((Dff, D), lambda i: (0, 0)),
            pl.BlockSpec((1, D), lambda i: (0, 0)),
        ],
        out_specs=pl.BlockSpec((tm, D), lambda i: (i, 0)),
        input_output_aliases={0: 0},
        compiler_params=_cparams(1),
        cost_estimate=cost,
    )(x2, norm_p["a"].reshape(1, D), norm_p["b"].reshape(1, D),
      ff_p["w1"], ff_p["b1"].reshape(1, Dff), ff_p["w2"], ff_p["b2"].reshape(1, D))
    return out[:M].reshape(B, T, D)


# -----------------------------------------------------------------------------
# Standalone tiled norm (encoder output) and fused norm + vocab projection.
# -----------------------------------------------------------------------------
def _norm_kernel(x_ref, a_ref, b_ref, o_ref, *, eps):
    o_ref[...] = _norm_f32(x_ref[...], a_ref[...], b_ref[...], eps)


def norm_block(x, norm_p, *, eps=_EPS):
    B, T, D = x.shape
    x2 = x.reshape(-1, D)
    M = x2.shape[0]
    tm, Mp = _row_tiling(M)
    if Mp != M:
        x2 = jnp.pad(x2, ((0, Mp - M), (0, 0)))
    out = pl.pallas_call(
        functools.partial(_norm_kernel, eps=eps),
        out_shape=jax.ShapeDtypeStruct((Mp, D), jnp.float32),
        grid=(Mp // tm,),
        in_specs=[
            pl.BlockSpec((tm, D), lambda i: (i, 0)),
            pl.BlockSpec((1, D), lambda i: (0, 0)),
            pl.BlockSpec((1, D), lambda i: (0, 0)),
        ],
        out_specs=pl.BlockSpec((tm, D), lambda i: (i, 0)),
        input_output_aliases={0: 0},
        compiler_params=_cparams(1),
    )(x2, norm_p["a"].reshape(1, D), norm_p["b"].reshape(1, D))
    return out[:M].reshape(B, T, D)


def _norm_linear_kernel(x_ref, a_ref, b_ref, w_ref, bw_ref, o_ref, *, eps):
    xn = _norm_f32(x_ref[...], a_ref[...], b_ref[...], eps).astype(jnp.bfloat16)
    o_ref[...] = (jnp.dot(xn, w_ref[...], preferred_element_type=jnp.float32)
                  + bw_ref[...])


def norm_linear_block(x, norm_p, w, b, *, eps=_EPS):
    """Final decoder norm fused with the output (vocab) projection."""
    B, T, D = x.shape
    V = w.shape[1]
    x2 = x.reshape(-1, D)
    M = x2.shape[0]
    tm, Mp = _row_tiling(M)
    if Mp != M:
        x2 = jnp.pad(x2, ((0, Mp - M), (0, 0)))
    # TODO(synk): at production vocab sizes also tile the V axis so the weight
    #             block stays within v7x's 64 MiB VMEM.
    cost = pl.CostEstimate(flops=int(2 * Mp * D * V), transcendentals=0,
                           bytes_accessed=int(4 * Mp * (D + V) + 2 * D * V))
    out = pl.pallas_call(
        functools.partial(_norm_linear_kernel, eps=eps),
        out_shape=jax.ShapeDtypeStruct((Mp, V), jnp.float32),
        grid=(Mp // tm,),
        in_specs=[
            pl.BlockSpec((tm, D), lambda i: (i, 0)),
            pl.BlockSpec((1, D), lambda i: (0, 0)),
            pl.BlockSpec((1, D), lambda i: (0, 0)),
            pl.BlockSpec((D, V), lambda i: (0, 0)),
            pl.BlockSpec((1, V), lambda i: (0, 0)),
        ],
        out_specs=pl.BlockSpec((tm, V), lambda i: (i, 0)),
        compiler_params=_cparams(1),
        cost_estimate=cost,
    )(x2, norm_p["a"].reshape(1, D), norm_p["b"].reshape(1, D), w, b.reshape(1, V))
    return out[:M].reshape(B, T, V)


# -----------------------------------------------------------------------------
# Model glue (embedding gather / positional encoding in plain JAX)
# -----------------------------------------------------------------------------
def encoder_layer(p, x, mask, heads):
    x = mha_block(x, None, mask, p["attn"], p["n1"], heads=heads)
    x = ff_block(x, p["n2"], p["ff"])
    return x


def decoder_layer(p, x, e_outputs, src_mask, trg_mask, heads):
    x = mha_block(x, None, trg_mask, p["attn1"], p["n1"], heads=heads)
    x = mha_block(x, e_outputs, src_mask, p["attn2"], p["n2"], heads=heads)
    x = ff_block(x, p["n3"], p["ff"])
    return x


def make_pos_embed(max_len, d_model):
    # Exactly reproduces the PosEncoder table construction loop.
    pos = jnp.arange(max_len, dtype=jnp.float32)[:, None]
    i_even = jnp.arange(0, d_model, 2, dtype=jnp.float32)[None, :]
    pe_sin = jnp.sin(pos / (10000.0 ** (2.0 * i_even / d_model)))
    pe_cos = jnp.cos(pos / (10000.0 ** (2.0 * (i_even + 1.0) / d_model)))
    pe = jnp.zeros((max_len, d_model), jnp.float32)
    pe = pe.at[:, 0::2].set(pe_sin).at[:, 1::2].set(pe_cos)
    return pe


def pos_encode(x, pe, d_model):
    seq_len = x.shape[1]
    return x * math.sqrt(d_model) + pe[None, :seq_len, :]


def transform_model(params, pe, src, trg, src_mask, trg_mask, *, heads, d_model):
    # ---- encoder ----
    x = jnp.take(params["enc_embed"], src, axis=0)
    x = pos_encode(x, pe, d_model)
    for lp in params["enc_layers"]:
        x = encoder_layer(lp, x, src_mask, heads)
    enc_out = norm_block(x, params["enc_norm"])
    # ---- decoder ----
    y = jnp.take(params["dec_embed"], trg, axis=0)
    y = pos_encode(y, pe, d_model)
    for lp in params["dec_layers"]:
        y = decoder_layer(lp, y, enc_out, src_mask, trg_mask, heads)
    # ---- final norm fused with the output projection ----
    return norm_linear_block(y, params["dec_norm"],
                             params["out"]["w"], params["out"]["b"])


# -----------------------------------------------------------------------------
# Deterministic parameter init (synthetic; shapes follow the nn.Module __init__)
# Weights are stored in bf16 (MXU operands), biases / norm params / embeds f32.
# -----------------------------------------------------------------------------
def init_params(key, src_vocab, trg_vocab, d_model, N, d_ff):
    assert d_model >= 2, "Norm's unbiased std needs d_model >= 2"
    keys = iter(jax.random.split(key, 128))

    def weight(shape, scale=0.02):
        return (jax.random.normal(next(keys), shape, jnp.float32) * scale
                ).astype(jnp.bfloat16)

    def mha_p():
        return {"wqkv": weight((d_model, 3 * d_model)),          # Wq|Wk|Wv fused
                "bqkv": jnp.zeros((3 * d_model,), jnp.float32),
                "wo": weight((d_model, d_model)),
                "bo": jnp.zeros((d_model,), jnp.float32)}

    def norm_p():
        return {"a": jnp.ones((d_model,), jnp.float32),
                "b": jnp.zeros((d_model,), jnp.float32)}

    def ff_p():
        return {"w1": weight((d_model, d_ff)),
                "b1": jnp.zeros((d_ff,), jnp.float32),
                "w2": weight((d_ff, d_model)),
                "b2": jnp.zeros((d_model,), jnp.float32)}

    def enc_layer_p():
        return {"n1": norm_p(), "n2": norm_p(), "attn": mha_p(), "ff": ff_p()}

    def dec_layer_p():
        return {"n1": norm_p(), "n2": norm_p(), "n3": norm_p(),
                "attn1": mha_p(), "attn2": mha_p(), "ff": ff_p()}

    return {
        "enc_embed": jax.random.normal(next(keys), (src_vocab, d_model), jnp.float32),
        "dec_embed": jax.random.normal(next(keys), (trg_vocab, d_model), jnp.float32),
        "enc_layers": [enc_layer_p() for _ in range(N)],
        "dec_layers": [dec_layer_p() for _ in range(N)],
        "enc_norm": norm_p(),
        "dec_norm": norm_p(),
        "out": {"w": weight((d_model, trg_vocab)),
                "b": jnp.zeros((trg_vocab,), jnp.float32)},
    }


# -----------------------------------------------------------------------------
if __name__ == "__main__":
    # small, module-consistent shapes
    src_vocab, trg_vocab = 16, 16
    d_model, N, heads = 32, 2, 4
    d_ff = 4 * d_model          # FeedForward hidden size (class not shown; 4x d_model)
    max_len = 200
    B, S_src, S_trg = 2, 10, 8

    key = jax.random.PRNGKey(0)
    kp, ks, kt = jax.random.split(key, 3)

    params = init_params(kp, src_vocab, trg_vocab, d_model, N, d_ff)
    pe = make_pos_embed(max_len, d_model)

    src = jax.random.randint(ks, (B, S_src), 0, src_vocab, dtype=jnp.int32)
    trg = jax.random.randint(kt, (B, S_trg), 0, trg_vocab, dtype=jnp.int32)

    # src padding mask (B, 1, S_src): mask out last 2 positions of batch 1
    src_mask = jnp.ones((B, 1, S_src), jnp.float32)
    src_mask = src_mask.at[1, 0, -2:].set(0.0)
    # causal target mask (B, S_trg, S_trg)
    trg_mask = jnp.broadcast_to(
        jnp.tril(jnp.ones((S_trg, S_trg), jnp.float32))[None], (B, S_trg, S_trg)
    )

    fwd = jax.jit(functools.partial(transform_model, heads=heads, d_model=d_model))
    out = fwd(params, pe, src, trg, src_mask, trg_mask)
    jax.block_until_ready(out)
    assert out.shape == (B, S_trg, trg_vocab), out.shape
    assert bool(jnp.all(jnp.isfinite(out)))
    print("KERNEL_OK")
</pallas_src>

<mosaic_0001>
module attributes {stable_mosaic.version = 11 : i64} {
  func.func @_ff_kernel(%arg0: i32, %arg1: memref<24x32xf32, #tpu.memory_space<vmem>>, %arg2: memref<1x32xf32, #tpu.memory_space<vmem>>, %arg3: memref<1x32xf32, #tpu.memory_space<vmem>>, %arg4: memref<32x128xbf16, #tpu.memory_space<vmem>>, %arg5: memref<1x128xf32, #tpu.memory_space<vmem>>, %arg6: memref<128x32xbf16, #tpu.memory_space<vmem>>, %arg7: memref<1x32xf32, #tpu.memory_space<vmem>>, %arg8: memref<24x32xf32, #tpu.memory_space<vmem>>) attributes {dimension_semantics = [#tpu.dimension_semantics<parallel>], iteration_bounds = array<i64: 1>, scalar_prefetch = 0 : i64, scratch_operands = 0 : i64, tpu.core_type = #tpu.core_type<tc>, window_params = [{transform_indices = @transform_0, window_bounds = array<i64: 24, 32>}, {pipeline_mode = #tpu.pipeline_mode<synchronous>, transform_indices = @transform_1, window_bounds = array<i64: 1, 32>}, {pipeline_mode = #tpu.pipeline_mode<synchronous>, transform_indices = @transform_2, window_bounds = array<i64: 1, 32>}, {pipeline_mode = #tpu.pipeline_mode<synchronous>, transform_indices = @transform_3, window_bounds = array<i64: 32, 128>}, {pipeline_mode = #tpu.pipeline_mode<synchronous>, transform_indices = @transform_4, window_bounds = array<i64: 1, 128>}, {pipeline_mode = #tpu.pipeline_mode<synchronous>, transform_indices = @transform_5, window_bounds = array<i64: 128, 32>}, {pipeline_mode = #tpu.pipeline_mode<synchronous>, transform_indices = @transform_6, window_bounds = array<i64: 1, 32>}, {transform_indices = @transform_7, window_bounds = array<i64: 24, 32>}]} {
    %c0 = arith.constant 0 : index
    %c0_0 = arith.constant 0 : index
    %0 = vector.load %arg1[%c0, %c0_0] : memref<24x32xf32, #tpu.memory_space<vmem>>, vector<24x32xf32>
    %c0_1 = arith.constant 0 : index
    %c0_2 = arith.constant 0 : index
    %1 = vector.load %arg2[%c0_1, %c0_2] : memref<1x32xf32, #tpu.memory_space<vmem>>, vector<1x32xf32>
    %c0_3 = arith.constant 0 : index
    %c0_4 = arith.constant 0 : index
    %2 = vector.load %arg3[%c0_3, %c0_4] : memref<1x32xf32, #tpu.memory_space<vmem>>, vector<1x32xf32>
    %cst = arith.constant dense<0.000000e+00> : vector<24xf32>
    %3 = vector.multi_reduction <add>, %0, %cst [1] : vector<24x32xf32> to vector<24xf32>
    %4 = vector.shape_cast %3 : vector<24xf32> to vector<24x1xf32>
    %cst_5 = arith.constant 3.200000e+01 : f32
    %5 = vector.broadcast %cst_5 : f32 to vector<24x1xf32>
    %6 = arith.divf %4, %5 : vector<24x1xf32>
    %7 = vector.broadcast %6 : vector<24x1xf32> to vector<24x32xf32>
    %8 = arith.subf %0, %7 : vector<24x32xf32>
    %9 = arith.mulf %8, %8 : vector<24x32xf32>
    %cst_6 = arith.constant dense<0.000000e+00> : vector<24xf32>
    %10 = vector.multi_reduction <add>, %9, %cst_6 [1] : vector<24x32xf32> to vector<24xf32>
    %11 = vector.shape_cast %10 : vector<24xf32> to vector<24x1xf32>
    %cst_7 = arith.constant 3.100000e+01 : f32
    %12 = vector.broadcast %cst_7 : f32 to vector<24x1xf32>
    %13 = arith.divf %11, %12 : vector<24x1xf32>
    %14 = vector.broadcast %6 : vector<24x1xf32> to vector<24x32xf32>
    %15 = arith.subf %0, %14 : vector<24x32xf32>
    %16 = vector.broadcast %1 : vector<1x32xf32> to vector<24x32xf32>
    %17 = arith.mulf %16, %15 : vector<24x32xf32>
    %18 = math.sqrt %13 : vector<24x1xf32>
    %cst_8 = arith.constant 9.99999997E-7 : f32
    %19 = vector.broadcast %cst_8 : f32 to vector<24x1xf32>
    %20 = arith.addf %18, %19 : vector<24x1xf32>
    %21 = vector.broadcast %20 : vector<24x1xf32> to vector<24x32xf32>
    %22 = arith.divf %17, %21 : vector<24x32xf32>
    %23 = vector.broadcast %2 : vector<1x32xf32> to vector<24x32xf32>
    %24 = arith.addf %22, %23 : vector<24x32xf32>
    %25 = arith.truncf %24 : vector<24x32xf32> to vector<24x32xbf16>
    %c0_9 = arith.constant 0 : index
    %c0_10 = arith.constant 0 : index
    %26 = vector.load %arg4[%c0_9, %c0_10] : memref<32x128xbf16, #tpu.memory_space<vmem>>, vector<32x128xbf16>
    %cst_11 = arith.constant dense<0.000000e+00> : vector<24x128xf32>
    %27 = tpu.matmul %25, %26, %cst_11 {dimension_numbers = #tpu.dot_dimension_numbers<[1], [0], [0], [1], [0, 0, 1, 1], [], []>} : vector<24x32xbf16>, vector<32x128xbf16>, vector<24x128xf32> -> vector<24x128xf32>
    %c0_12 = arith.constant 0 : index
    %c0_13 = arith.constant 0 : index
    %28 = vector.load %arg5[%c0_12, %c0_13] : memref<1x128xf32, #tpu.memory_space<vmem>>, vector<1x128xf32>
    %29 = vector.broadcast %28 : vector<1x128xf32> to vector<24x128xf32>
    %30 = arith.addf %27, %29 : vector<24x128xf32>
    %cst_14 = arith.constant 0.000000e+00 : f32
    %31 = vector.broadcast %cst_14 : f32 to vector<24x128xf32>
    %32 = arith.maximumf %30, %31 : vector<24x128xf32>
    %33 = arith.truncf %32 : vector<24x128xf32> to vector<24x128xbf16>
    %c0_15 = arith.constant 0 : index
    %c0_16 = arith.constant 0 : index
    %34 = vector.load %arg6[%c0_15, %c0_16] : memref<128x32xbf16, #tpu.memory_space<vmem>>, vector<128x32xbf16>
    %cst_17 = arith.constant dense<0.000000e+00> : vector<24x32xf32>
    %35 = tpu.matmul %33, %34, %cst_17 {dimension_numbers = #tpu.dot_dimension_numbers<[1], [0], [0], [1], [0, 0, 1, 1], [], []>} : vector<24x128xbf16>, vector<128x32xbf16>, vector<24x32xf32> -> vector<24x32xf32>
    %c0_18 = arith.constant 0 : index
    %c0_19 = arith.constant 0 : index
    %36 = vector.load %arg7[%c0_18, %c0_19] : memref<1x32xf32, #tpu.memory_space<vmem>>, vector<1x32xf32>
    %37 = vector.broadcast %36 : vector<1x32xf32> to vector<24x32xf32>
    %38 = arith.addf %35, %37 : vector<24x32xf32>
    %39 = arith.addf %0, %38 : vector<24x32xf32>
    %c0_20 = arith.constant 0 : index
    %c0_21 = arith.constant 0 : index
    %40 = vector.load %arg8[%c0_20, %c0_21] : memref<24x32xf32, #tpu.memory_space<vmem>>, vector<24x32xf32>
    tpu.vector_store %arg8[%c0_20, %c0_21], %39 {strides = array<i32>} : memref<24x32xf32, #tpu.memory_space<vmem>>, vector<24x32xf32>,
    return
  }
  func.func @transform_0(%arg0: i32) -> (i32, i32) {
    %c0_i32 = arith.constant 0 : i32
    %c0_i32_0 = arith.constant 0 : i32
    return %arg0, %c0_i32 : i32, i32
  }
  func.func @transform_1(%arg0: i32) -> (i32, i32) {
    %c0_i32 = arith.constant 0 : i32
    %c0_i32_0 = arith.constant 0 : i32
    %c0_i32_1 = arith.constant 0 : i32
    return %c0_i32, %c0_i32_0 : i32, i32
  }
  func.func @transform_2(%arg0: i32) -> (i32, i32) {
    %c0_i32 = arith.constant 0 : i32
    %c0_i32_0 = arith.constant 0 : i32
    %c0_i32_1 = arith.constant 0 : i32
    return %c0_i32, %c0_i32_0 : i32, i32
  }
  func.func @transform_3(%arg0: i32) -> (i32, i32) {
    %c0_i32 = arith.constant 0 : i32
    %c0_i32_0 = arith.constant 0 : i32
    %c0_i32_1 = arith.constant 0 : i32
    return %c0_i32, %c0_i32_0 : i32, i32
  }
  func.func @transform_4(%arg0: i32) -> (i32, i32) {
    %c0_i32 = arith.constant 0 : i32
    %c0_i32_0 = arith.constant 0 : i32
    %c0_i32_1 = arith.constant 0 : i32
    return %c0_i32, %c0_i32_0 : i32, i32
  }
  func.func @transform_5(%arg0: i32) -> (i32, i32) {
    %c0_i32 = arith.constant 0 : i32
    %c0_i32_0 = arith.constant 0 : i32
    %c0_i32_1 = arith.constant 0 : i32
    return %c0_i32, %c0_i32_0 : i32, i32
  }
  func.func @transform_6(%arg0: i32) -> (i32, i32) {
    %c0_i32 = arith.constant 0 : i32
    %c0_i32_0 = arith.constant 0 : i32
    %c0_i32_1 = arith.constant 0 : i32
    return %c0_i32, %c0_i32_0 : i32, i32
  }
  func.func @transform_7(%arg0: i32) -> (i32, i32) {
    %c0_i32 = arith.constant 0 : i32
    %c0_i32_0 = arith.constant 0 : i32
    return %arg0, %c0_i32 : i32, i32
  }
}

module attributes {stable_mosaic.version = 11 : i64} {
  func.func @_mha_kernel(%arg0: i32, %arg1: memref<1x10x32xf32, #tpu.memory_space<vmem>>, %arg2: memref<1x1x10xf32, #tpu.memory_space<vmem>>, %arg3: memref<1x32xf32, #tpu.memory_space<vmem>>, %arg4: memref<1x32xf32, #tpu.memory_space<vmem>>, %arg5: memref<32x96xbf16, #tpu.memory_space<vmem>>, %arg6: memref<1x96xf32, #tpu.memory_space<vmem>>, %arg7: memref<32x32xbf16, #tpu.memory_space<vmem>>, %arg8: memref<1x32xf32, #tpu.memory_space<vmem>>, %arg9: memref<1x10x32xf32, #tpu.memory_space<vmem>>) attributes {dimension_semantics = [#tpu.dimension_semantics<parallel>], iteration_bounds = array<i64: 2>, scalar_prefetch = 0 : i64, scratch_operands = 0 : i64, tpu.core_type = #tpu.core_type<tc>, window_params = [{transform_indices = @transform_0, window_bounds = array<i64: 1, 10, 32>}, {transform_indices = @transform_1, window_bounds = array<i64: 1, 1, 10>}, {pipeline_mode = #tpu.pipeline_mode<synchronous>, transform_indices = @transform_2, window_bounds = array<i64: 1, 32>}, {pipeline_mode = #tpu.pipeline_mode<synchronous>, transform_indices = @transform_3, window_bounds = array<i64: 1, 32>}, {pipeline_mode = #tpu.pipeline_mode<synchronous>, transform_indices = @transform_4, window_bounds = array<i64: 32, 96>}, {pipeline_mode = #tpu.pipeline_mode<synchronous>, transform_indices = @transform_5, window_bounds = array<i64: 1, 96>}, {pipeline_mode = #tpu.pipeline_mode<synchronous>, transform_indices = @transform_6, window_bounds = array<i64: 32, 32>}, {pipeline_mode = #tpu.pipeline_mode<synchronous>, transform_indices = @transform_7, window_bounds = array<i64: 1, 32>}, {transform_indices = @transform_8, window_bounds = array<i64: 1, 10, 32>}]} {
    %c0 = arith.constant 0 : index
    %c0_0 = arith.constant 0 : index
    %c0_1 = arith.constant 0 : index
    %0 = vector.load %arg1[%c0, %c0_0, %c0_1] : memref<1x10x32xf32, #tpu.memory_space<vmem>>, vector<1x10x32xf32>
    %1 = vector.shape_cast %0 : vector<1x10x32xf32> to vector<10x32xf32>
    %c0_2 = arith.constant 0 : index
    %c0_3 = arith.constant 0 : index
    %2 = vector.load %arg3[%c0_2, %c0_3] : memref<1x32xf32, #tpu.memory_space<vmem>>, vector<1x32xf32>
    %c0_4 = arith.constant 0 : index
    %c0_5 = arith.constant 0 : index
    %3 = vector.load %arg4[%c0_4, %c0_5] : memref<1x32xf32, #tpu.memory_space<vmem>>, vector<1x32xf32>
    %cst = arith.constant dense<0.000000e+00> : vector<10xf32>
    %4 = vector.multi_reduction <add>, %1, %cst [1] : vector<10x32xf32> to vector<10xf32>
    %5 = vector.shape_cast %4 : vector<10xf32> to vector<10x1xf32>
    %cst_6 = arith.constant 3.200000e+01 : f32
    %6 = vector.broadcast %cst_6 : f32 to vector<10x1xf32>
    %7 = arith.divf %5, %6 : vector<10x1xf32>
    %8 = vector.broadcast %7 : vector<10x1xf32> to vector<10x32xf32>
    %9 = arith.subf %1, %8 : vector<10x32xf32>
    %10 = arith.mulf %9, %9 : vector<10x32xf32>
    %cst_7 = arith.constant dense<0.000000e+00> : vector<10xf32>
    %11 = vector.multi_reduction <add>, %10, %cst_7 [1] : vector<10x32xf32> to vector<10xf32>
    %12 = vector.shape_cast %11 : vector<10xf32> to vector<10x1xf32>
    %cst_8 = arith.constant 3.100000e+01 : f32
    %13 = vector.broadcast %cst_8 : f32 to vector<10x1xf32>
    %14 = arith.divf %12, %13 : vector<10x1xf32>
    %15 = vector.broadcast %7 : vector<10x1xf32> to vector<10x32xf32>
    %16 = arith.subf %1, %15 : vector<10x32xf32>
    %17 = vector.broadcast %2 : vector<1x32xf32> to vector<10x32xf32>
    %18 = arith.mulf %17, %16 : vector<10x32xf32>
    %19 = math.sqrt %14 : vector<10x1xf32>
    %cst_9 = arith.constant 9.99999997E-7 : f32
    %20 = vector.broadcast %cst_9 : f32 to vector<10x1xf32>
    %21 = arith.addf %19, %20 : vector<10x1xf32>
    %22 = vector.broadcast %21 : vector<10x1xf32> to vector<10x32xf32>
    %23 = arith.divf %18, %22 : vector<10x32xf32>
    %24 = vector.broadcast %3 : vector<1x32xf32> to vector<10x32xf32>
    %25 = arith.addf %23, %24 : vector<10x32xf32>
    %26 = arith.truncf %25 : vector<10x32xf32> to vector<10x32xbf16>
    %c0_10 = arith.constant 0 : index
    %c0_11 = arith.constant 0 : index
    %27 = vector.load %arg5[%c0_10, %c0_11] : memref<32x96xbf16, #tpu.memory_space<vmem>>, vector<32x96xbf16>
    %c0_12 = arith.constant 0 : index
    %c0_13 = arith.constant 0 : index
    %28 = vector.load %arg6[%c0_12, %c0_13] : memref<1x96xf32, #tpu.memory_space<vmem>>, vector<1x96xf32>
    %cst_14 = arith.constant dense<0.000000e+00> : vector<10x96xf32>
    %29 = tpu.matmul %26, %27, %cst_14 {dimension_numbers = #tpu.dot_dimension_numbers<[1], [0], [0], [1], [0, 0, 1, 1], [], []>} : vector<10x32xbf16>, vector<32x96xbf16>, vector<10x96xf32> -> vector<10x96xf32>
    %30 = vector.broadcast %28 : vector<1x96xf32> to vector<10x96xf32>
    %31 = arith.addf %29, %30 : vector<10x96xf32>
    %32 = vector.extract_strided_slice %31 {offsets = [0, 0], sizes = [10, 32], strides = [1, 1]} : vector<10x96xf32> to vector<10x32xf32>
    %33 = vector.extract_strided_slice %31 {offsets = [0, 32], sizes = [10, 32], strides = [1, 1]} : vector<10x96xf32> to vector<10x32xf32>
    %34 = vector.extract_strided_slice %31 {offsets = [0, 64], sizes = [10, 32], strides = [1, 1]} : vector<10x96xf32> to vector<10x32xf32>
    %c0_15 = arith.constant 0 : index
    %c0_16 = arith.constant 0 : index
    %c0_17 = arith.constant 0 : index
    %35 = vector.load %arg2[%c0_15, %c0_16, %c0_17] : memref<1x1x10xf32, #tpu.memory_space<vmem>>, vector<1x1x10xf32>
    %36 = vector.shape_cast %35 : vector<1x1x10xf32> to vector<1x10xf32>
    %37 = vector.shape_cast %36 : vector<1x10xf32> to vector<1x10xf32>
    %38 = vector.broadcast %37 : vector<1x10xf32> to vector<10x10xf32>
    %cst_18 = arith.constant 0.000000e+00 : f32
    %39 = vector.broadcast %cst_18 : f32 to vector<10x10xf32>
    %40 = arith.cmpf oeq, %38, %39 : vector<10x10xf32>
    %cst_19 = arith.constant 0.353553385 : f32
    %41 = vector.broadcast %cst_19 : f32 to vector<10x32xf32>
    %42 = arith.mulf %32, %41 : vector<10x32xf32>
    %43 = arith.truncf %42 : vector<10x32xf32> to vector<10x32xbf16>
    %44 = arith.truncf %33 : vector<10x32xf32> to vector<10x32xbf16>
    %45 = arith.truncf %34 : vector<10x32xf32> to vector<10x32xbf16>
    %c0_20 = arith.constant 0 : index
    %c0_21 = arith.constant 0 : index
    %46 = vector.load %arg7[%c0_20, %c0_21] : memref<32x32xbf16, #tpu.memory_space<vmem>>, vector<32x32xbf16>
    %c0_22 = arith.constant 0 : index
    %c0_23 = arith.constant 0 : index
    %47 = vector.load %arg8[%c0_22, %c0_23] : memref<1x32xf32, #tpu.memory_space<vmem>>, vector<1x32xf32>
    %48 = vector.broadcast %47 : vector<1x32xf32> to vector<10x32xf32>
    %49 = arith.addf %1, %48 : vector<10x32xf32>
    %50 = vector.extract_strided_slice %43 {offsets = [0, 0], sizes = [10, 8], strides = [1, 1]} : vector<10x32xbf16> to vector<10x8xbf16>
    %51 = vector.extract_strided_slice %44 {offsets = [0, 0], sizes = [10, 8], strides = [1, 1]} : vector<10x32xbf16> to vector<10x8xbf16>
    %cst_24 = arith.constant dense<0.000000e+00> : vector<10x10xf32>
    %52 = tpu.matmul %50, %51, %cst_24 {dimension_numbers = #tpu.dot_dimension_numbers<[1], [1], [0], [0], [0, 0, 1, 0], [], []>} : vector<10x8xbf16>, vector<10x8xbf16>, vector<10x10xf32> -> vector<10x10xf32>
    %cst_25 = arith.constant -1.000000e+09 : f32
    %53 = vector.broadcast %cst_25 : f32 to vector<10x10xf32>
    %54 = arith.select %40, %53, %52 : vector<10x10xi1>, vector<10x10xf32>
    %cst_26 = arith.constant dense<0xFF800000> : vector<10xf32>
    %55 = vector.multi_reduction <maximumf>, %54, %cst_26 [1] : vector<10x10xf32> to vector<10xf32>
    %56 = vector.shape_cast %55 : vector<10xf32> to vector<10x1xf32>
    %57 = vector.broadcast %56 : vector<10x1xf32> to vector<10x10xf32>
    %58 = arith.subf %54, %57 : vector<10x10xf32>
    %59 = math.exp %58 : vector<10x10xf32>
    %cst_27 = arith.constant dense<0.000000e+00> : vector<10xf32>
    %60 = vector.multi_reduction <add>, %59, %cst_27 [1] : vector<10x10xf32> to vector<10xf32>
    %61 = vector.shape_cast %60 : vector<10xf32> to vector<10x1xf32>
    %62 = tpu.reciprocal %61 {approx = true} : vector<10x1xf32> -> vector<10x1xf32>
    %63 = vector.broadcast %62 : vector<10x1xf32> to vector<10x10xf32>
    %64 = arith.mulf %59, %63 : vector<10x10xf32>
    %65 = arith.truncf %64 : vector<10x10xf32> to vector<10x10xbf16>
    %66 = vector.extract_strided_slice %45 {offsets = [0, 0], sizes = [10, 8], strides = [1, 1]} : vector<10x32xbf16> to vector<10x8xbf16>
    %cst_28 = arith.constant dense<0.000000e+00> : vector<10x8xf32>
    %67 = tpu.matmul %65, %66, %cst_28 {dimension_numbers = #tpu.dot_dimension_numbers<[1], [0], [0], [1], [0, 0, 1, 1], [], []>} : vector<10x10xbf16>, vector<10x8xbf16>, vector<10x8xf32> -> vector<10x8xf32>
    %68 = arith.truncf %67 : vector<10x8xf32> to vector<10x8xbf16>
    %69 = vector.extract_strided_slice %46 {offsets = [0, 0], sizes = [8, 32], strides = [1, 1]} : vector<32x32xbf16> to vector<8x32xbf16>
    %cst_29 = arith.constant dense<0.000000e+00> : vector<10x32xf32>
    %70 = tpu.matmul %68, %69, %cst_29 {dimension_numbers = #tpu.dot_dimension_numbers<[1], [0], [0], [1], [0, 0, 1, 1], [], []>} : vector<10x8xbf16>, vector<8x32xbf16>, vector<10x32xf32> -> vector<10x32xf32>
    %71 = arith.addf %49, %70 : vector<10x32xf32>
    %72 = vector.extract_strided_slice %43 {offsets = [0, 8], sizes = [10, 8], strides = [1, 1]} : vector<10x32xbf16> to vector<10x8xbf16>
    %73 = vector.extract_strided_slice %44 {offsets = [0, 8], sizes = [10, 8], strides = [1, 1]} : vector<10x32xbf16> to vector<10x8xbf16>
    %cst_30 = arith.constant dense<0.000000e+00> : vector<10x10xf32>
    %74 = tpu.matmul %72, %73, %cst_30 {dimension_numbers = #tpu.dot_dimension_numbers<[1], [1], [0], [0], [0, 0, 1, 0], [], []>} : vector<10x8xbf16>, vector<10x8xbf16>, vector<10x10xf32> -> vector<10x10xf32>
    %cst_31 = arith.constant -1.000000e+09 : f32
    %75 = vector.broadcast %cst_31 : f32 to vector<10x10xf32>
    %76 = arith.select %40, %75, %74 : vector<10x10xi1>, vector<10x10xf32>
    %cst_32 = arith.constant dense<0xFF800000> : vector<10xf32>
    %77 = vector.multi_reduction <maximumf>, %76, %cst_32 [1] : vector<10x10xf32> to vector<10xf32>
    %78 = vector.shape_cast %77 : vector<10xf32> to vector<10x1xf32>
    %79 = vector.broadcast %78 : vector<10x1xf32> to vector<10x10xf32>
    %80 = arith.subf %76, %79 : vector<10x10xf32>
    %81 = math.exp %80 : vector<10x10xf32>
    %cst_33 = arith.constant dense<0.000000e+00> : vector<10xf32>
    %82 = vector.multi_reduction <add>, %81, %cst_33 [1] : vector<10x10xf32> to vector<10xf32>
    %83 = vector.shape_cast %82 : vector<10xf32> to vector<10x1xf32>
    %84 = tpu.reciprocal %83 {approx = true} : vector<10x1xf32> -> vector<10x1xf32>
    %85 = vector.broadcast %84 : vector<10x1xf32> to vector<10x10xf32>
    %86 = arith.mulf %81, %85 : vector<10x10xf32>
    %87 = arith.truncf %86 : vector<10x10xf32> to vector<10x10xbf16>
    %88 = vector.extract_strided_slice %45 {offsets = [0, 8], sizes = [10, 8], strides = [1, 1]} : vector<10x32xbf16> to vector<10x8xbf16>
    %cst_34 = arith.constant dense<0.000000e+00> : vector<10x8xf32>
    %89 = tpu.matmul %87, %88, %cst_34 {dimension_numbers = #tpu.dot_dimension_numbers<[1], [0], [0], [1], [0, 0, 1, 1], [], []>} : vector<10x10xbf16>, vector<10x8xbf16>, vector<10x8xf32> -> vector<10x8xf32>
    %90 = arith.truncf %89 : vector<10x8xf32> to vector<10x8xbf16>
    %91 = vector.extract_strided_slice %46 {offsets = [8, 0], sizes = [8, 32], strides = [1, 1]} : vector<32x32xbf16> to vector<8x32xbf16>
    %cst_35 = arith.constant dense<0.000000e+00> : vector<10x32xf32>
    %92 = tpu.matmul %90, %91, %cst_35 {dimension_numbers = #tpu.dot_dimension_numbers<[1], [0], [0], [1], [0, 0, 1, 1], [], []>} : vector<10x8xbf16>, vector<8x32xbf16>, vector<10x32xf32> -> vector<10x32xf32>
    %93 = arith.addf %71, %92 : vector<10x32xf32>
    %94 = vector.extract_strided_slice %43 {offsets = [0, 16], sizes = [10, 8], strides = [1, 1]} : vector<10x32xbf16> to vector<10x8xbf16>
    %95 = vector.extract_strided_slice %44 {offsets = [0, 16], sizes = [10, 8], strides = [1, 1]} : vector<10x32xbf16> to vector<10x8xbf16>
    %cst_36 = arith.constant dense<0.000000e+00> : vector<10x10xf32>
    %96 = tpu.matmul %94, %95, %cst_36 {dimension_numbers = #tpu.dot_dimension_numbers<[1], [1], [0], [0], [0, 0, 1, 0], [], []>} : vector<10x8xbf16>, vector<10x8xbf16>, vector<10x10xf32> -> vector<10x10xf32>
    %cst_37 = arith.constant -1.000000e+09 : f32
    %97 = vector.broadcast %cst_37 : f32 to vector<10x10xf32>
    %98 = arith.select %40, %97, %96 : vector<10x10xi1>, vector<10x10xf32>
    %cst_38 = arith.constant dense<0xFF800000> : vector<10xf32>
    %99 = vector.multi_reduction <maximumf>, %98, %cst_38 [1] : vector<10x10xf32> to vector<10xf32>
    %100 = vector.shape_cast %99 : vector<10xf32> to vector<10x1xf32>
    %101 = vector.broadcast %100 : vector<10x1xf32> to vector<10x10xf32>
    %102 = arith.subf %98, %101 : vector<10x10xf32>
    %103 = math.exp %102 : vector<10x10xf32>
    %cst_39 = arith.constant dense<0.000000e+00> : vector<10xf32>
    %104 = vector.multi_reduction <add>, %103, %cst_39 [1] : vector<10x10xf32> to vector<10xf32>
    %105 = vector.shape_cast %104 : vector<10xf32> to vector<10x1xf32>
    %106 = tpu.reciprocal %105 {approx = true} : vector<10x1xf32> -> vector<10x1xf32>
    %107 = vector.broadcast %106 : vector<10x1xf32> to vector<10x10xf32>
    %108 = arith.mulf %103, %107 : vector<10x10xf32>
    %109 = arith.truncf %108 : vector<10x10xf32> to vector<10x10xbf16>
    %110 = vector.extract_strided_slice %45 {offsets = [0, 16], sizes = [10, 8], strides = [1, 1]} : vector<10x32xbf16> to vector<10x8xbf16>
    %cst_40 = arith.constant dense<0.000000e+00> : vector<10x8xf32>
    %111 = tpu.matmul %109, %110, %cst_40 {dimension_numbers = #tpu.dot_dimension_numbers<[1], [0], [0], [1], [0, 0, 1, 1], [], []>} : vector<10x10xbf16>, vector<10x8xbf16>, vector<10x8xf32> -> vector<10x8xf32>
    %112 = arith.truncf %111 : vector<10x8xf32> to vector<10x8xbf16>
    %113 = vector.extract_strided_slice %46 {offsets = [16, 0], sizes = [8, 32], strides = [1, 1]} : vector<32x32xbf16> to vector<8x32xbf16>
    %cst_41 = arith.constant dense<0.000000e+00> : vector<10x32xf32>
    %114 = tpu.matmul %112, %113, %cst_41 {dimension_numbers = #tpu.dot_dimension_numbers<[1], [0], [0], [1], [0, 0, 1, 1], [], []>} : vector<10x8xbf16>, vector<8x32xbf16>, vector<10x32xf32> -> vector<10x32xf32>
    %115 = arith.addf %93, %114 : vector<10x32xf32>
    %116 = vector.extract_strided_slice %43 {offsets = [0, 24], sizes = [10, 8], strides = [1, 1]} : vector<10x32xbf16> to vector<10x8xbf16>
    %117 = vector.extract_strided_slice %44 {offsets = [0, 24], sizes = [10, 8], strides = [1, 1]} : vector<10x32xbf16> to vector<10x8xbf16>
    %cst_42 = arith.constant dense<0.000000e+00> : vector<10x10xf32>
    %118 = tpu.matmul %116, %117, %cst_42 {dimension_numbers = #tpu.dot_dimension_numbers<[1], [1], [0], [0], [0, 0, 1, 0], [], []>} : vector<10x8xbf16>, vector<10x8xbf16>, vector<10x10xf32> -> vector<10x10xf32>
    %cst_43 = arith.constant -1.000000e+09 : f32
    %119 = vector.broadcast %cst_43 : f32 to vector<10x10xf32>
    %120 = arith.select %40, %119, %118 : vector<10x10xi1>, vector<10x10xf32>
    %cst_44 = arith.constant dense<0xFF800000> : vector<10xf32>
    %121 = vector.multi_reduction <maximumf>, %120, %cst_44 [1] : vector<10x10xf32> to vector<10xf32>
    %122 = vector.shape_cast %121 : vector<10xf32> to vector<10x1xf32>
    %123 = vector.broadcast %122 : vector<10x1xf32> to vector<10x10xf32>
    %124 = arith.subf %120, %123 : vector<10x10xf32>
    %125 = math.exp %124 : vector<10x10xf32>
    %cst_45 = arith.constant dense<0.000000e+00> : vector<10xf32>
    %126 = vector.multi_reduction <add>, %125, %cst_45 [1] : vector<10x10xf32> to vector<10xf32>
    %127 = vector.shape_cast %126 : vector<10xf32> to vector<10x1xf32>
    %128 = tpu.reciprocal %127 {approx = true} : vector<10x1xf32> -> vector<10x1xf32>
    %129 = vector.broadcast %128 : vector<10x1xf32> to vector<10x10xf32>
    %130 = arith.mulf %125, %129 : vector<10x10xf32>
    %131 = arith.truncf %130 : vector<10x10xf32> to vector<10x10xbf16>
    %132 = vector.extract_strided_slice %45 {offsets = [0, 24], sizes = [10, 8], strides = [1, 1]} : vector<10x32xbf16> to vector<10x8xbf16>
    %cst_46 = arith.constant dense<0.000000e+00> : vector<10x8xf32>
    %133 = tpu.matmul %131, %132, %cst_46 {dimension_numbers = #tpu.dot_dimension_numbers<[1], [0], [0], [1], [0, 0, 1, 1], [], []>} : vector<10x10xbf16>, vector<10x8xbf16>, vector<10x8xf32> -> vector<10x8xf32>
    %134 = arith.truncf %133 : vector<10x8xf32> to vector<10x8xbf16>
    %135 = vector.extract_strided_slice %46 {offsets = [24, 0], sizes = [8, 32], strides = [1, 1]} : vector<32x32xbf16> to vector<8x32xbf16>
    %cst_47 = arith.constant dense<0.000000e+00> : vector<10x32xf32>
    %136 = tpu.matmul %134, %135, %cst_47 {dimension_numbers = #tpu.dot_dimension_numbers<[1], [0], [0], [1], [0, 0, 1, 1], [], []>} : vector<10x8xbf16>, vector<8x32xbf16>, vector<10x32xf32> -> vector<10x32xf32>
    %137 = arith.addf %115, %136 : vector<10x32xf32>
    %c0_48 = arith.constant 0 : index
    %c0_49 = arith.constant 0 : index
    %c0_50 = arith.constant 0 : index
    %138 = vector.load %arg9[%c0_48, %c0_49, %c0_50] : memref<1x10x32xf32, #tpu.memory_space<vmem>>, vector<1x10x32xf32>
    %139 = vector.shape_cast %138 : vector<1x10x32xf32> to vector<10x32xf32>
    %140 = vector.shape_cast %137 : vector<10x32xf32> to vector<1x10x32xf32>
    tpu.vector_store %arg9[%c0_48, %c0_49, %c0_50], %140 {strides = array<i32>} : memref<1x10x32xf32, #tpu.memory_space<vmem>>, vector<1x10x32xf32>,
    return
  }
  func.func @transform_0(%arg0: i32) -> (i32, i32, i32) {
    %c0_i32 = arith.constant 0 : i32
    %c0_i32_0 = arith.constant 0 : i32
    %c0_i32_1 = arith.constant 0 : i32
    return %arg0, %c0_i32, %c0_i32_0 : i32, i32, i32
  }
  func.func @transform_1(%arg0: i32) -> (i32, i32, i32) {
    %c0_i32 = arith.constant 0 : i32
    %c0_i32_0 = arith.constant 0 : i32
    %c0_i32_1 = arith.constant 0 : i32
    return %arg0, %c0_i32, %c0_i32_0 : i32, i32, i32
  }
  func.func @transform_2(%arg0: i32) -> (i32, i32) {
    %c0_i32 = arith.constant 0 : i32
    %c0_i32_0 = arith.constant 0 : i32
    %c0_i32_1 = arith.constant 0 : i32
    return %c0_i32, %c0_i32_0 : i32, i32
  }
  func.func @transform_3(%arg0: i32) -> (i32, i32) {
    %c0_i32 = arith.constant 0 : i32
    %c0_i32_0 = arith.constant 0 : i32
    %c0_i32_1 = arith.constant 0 : i32
    return %c0_i32, %c0_i32_0 : i32, i32
  }
  func.func @transform_4(%arg0: i32) -> (i32, i32) {
    %c0_i32 = arith.constant 0 : i32
    %c0_i32_0 = arith.constant 0 : i32
    %c0_i32_1 = arith.constant 0 : i32
    return %c0_i32, %c0_i32_0 : i32, i32
  }
  func.func @transform_5(%arg0: i32) -> (i32, i32) {
    %c0_i32 = arith.constant 0 : i32
    %c0_i32_0 = arith.constant 0 : i32
    %c0_i32_1 = arith.constant 0 : i32
    return %c0_i32, %c0_i32_0 : i32, i32
  }
  func.func @transform_6(%arg0: i32) -> (i32, i32) {
    %c0_i32 = arith.constant 0 : i32
    %c0_i32_0 = arith.constant 0 : i32
    %c0_i32_1 = arith.constant 0 : i32
    return %c0_i32, %c0_i32_0 : i32, i32
  }
  func.func @transform_7(%arg0: i32) -> (i32, i32) {
    %c0_i32 = arith.constant 0 : i32
    %c0_i32_0 = arith.constant 0 : i32
    %c0_i32_1 = arith.constant 0 : i32
    return %c0_i32, %c0_i32_0 : i32, i32
  }
  func.func @transform_8(%arg0: i32) -> (i32, i32, i32) {
    %c0_i32 = arith.constant 0 : i32
    %c0_i32_0 = arith.constant 0 : i32
    %c0_i32_1 = arith.constant 0 : i32
    return %arg0, %c0_i32, %c0_i32_0 : i32, i32, i32
  }
}

module attributes {stable_mosaic.version = 11 : i64} {
  func.func @_norm_kernel(%arg0: i32, %arg1: memref<24x32xf32, #tpu.memory_space<vmem>>, %arg2: memref<1x32xf32, #tpu.memory_space<vmem>>, %arg3: memref<1x32xf32, #tpu.memory_space<vmem>>, %arg4: memref<24x32xf32, #tpu.memory_space<vmem>>) attributes {dimension_semantics = [#tpu.dimension_semantics<parallel>], iteration_bounds = array<i64: 1>, scalar_prefetch = 0 : i64, scratch_operands = 0 : i64, tpu.core_type = #tpu.core_type<tc>, window_params = [{transform_indices = @transform_0, window_bounds = array<i64: 24, 32>}, {pipeline_mode = #tpu.pipeline_mode<synchronous>, transform_indices = @transform_1, window_bounds = array<i64: 1, 32>}, {pipeline_mode = #tpu.pipeline_mode<synchronous>, transform_indices = @transform_2, window_bounds = array<i64: 1, 32>}, {transform_indices = @transform_3, window_bounds = array<i64: 24, 32>}]} {
    %c0 = arith.constant 0 : index
    %c0_0 = arith.constant 0 : index
    %0 = vector.load %arg1[%c0, %c0_0] : memref<24x32xf32, #tpu.memory_space<vmem>>, vector<24x32xf32>
    %c0_1 = arith.constant 0 : index
    %c0_2 = arith.constant 0 : index
    %1 = vector.load %arg2[%c0_1, %c0_2] : memref<1x32xf32, #tpu.memory_space<vmem>>, vector<1x32xf32>
    %c0_3 = arith.constant 0 : index
    %c0_4 = arith.constant 0 : index
    %2 = vector.load %arg3[%c0_3, %c0_4] : memref<1x32xf32, #tpu.memory_space<vmem>>, vector<1x32xf32>
    %cst = arith.constant dense<0.000000e+00> : vector<24xf32>
    %3 = vector.multi_reduction <add>, %0, %cst [1] : vector<24x32xf32> to vector<24xf32>
    %4 = vector.shape_cast %3 : vector<24xf32> to vector<24x1xf32>
    %cst_5 = arith.constant 3.200000e+01 : f32
    %5 = vector.broadcast %cst_5 : f32 to vector<24x1xf32>
    %6 = arith.divf %4, %5 : vector<24x1xf32>
    %7 = vector.broadcast %6 : vector<24x1xf32> to vector<24x32xf32>
    %8 = arith.subf %0, %7 : vector<24x32xf32>
    %9 = arith.mulf %8, %8 : vector<24x32xf32>
    %cst_6 = arith.constant dense<0.000000e+00> : vector<24xf32>
    %10 = vector.multi_reduction <add>, %9, %cst_6 [1] : vector<24x32xf32> to vector<24xf32>
    %11 = vector.shape_cast %10 : vector<24xf32> to vector<24x1xf32>
    %cst_7 = arith.constant 3.100000e+01 : f32
    %12 = vector.broadcast %cst_7 : f32 to vector<24x1xf32>
    %13 = arith.divf %11, %12 : vector<24x1xf32>
    %14 = vector.broadcast %6 : vector<24x1xf32> to vector<24x32xf32>
    %15 = arith.subf %0, %14 : vector<24x32xf32>
    %16 = vector.broadcast %1 : vector<1x32xf32> to vector<24x32xf32>
    %17 = arith.mulf %16, %15 : vector<24x32xf32>
    %18 = math.sqrt %13 : vector<24x1xf32>
    %cst_8 = arith.constant 9.99999997E-7 : f32
    %19 = vector.broadcast %cst_8 : f32 to vector<24x1xf32>
    %20 = arith.addf %18, %19 : vector<24x1xf32>
    %21 = vector.broadcast %20 : vector<24x1xf32> to vector<24x32xf32>
    %22 = arith.divf %17, %21 : vector<24x32xf32>
    %23 = vector.broadcast %2 : vector<1x32xf32> to vector<24x32xf32>
    %24 = arith.addf %22, %23 : vector<24x32xf32>
    %c0_9 = arith.constant 0 : index
    %c0_10 = arith.constant 0 : index
    %25 = vector.load %arg4[%c0_9, %c0_10] : memref<24x32xf32, #tpu.memory_space<vmem>>, vector<24x32xf32>
    tpu.vector_store %arg4[%c0_9, %c0_10], %24 {strides = array<i32>} : memref<24x32xf32, #tpu.memory_space<vmem>>, vector<24x32xf32>,
    return
  }
  func.func @transform_0(%arg0: i32) -> (i32, i32) {
    %c0_i32 = arith.constant 0 : i32
    %c0_i32_0 = arith.constant 0 : i32
    return %arg0, %c0_i32 : i32, i32
  }
  func.func @transform_1(%arg0: i32) -> (i32, i32) {
    %c0_i32 = arith.constant 0 : i32
    %c0_i32_0 = arith.constant 0 : i32
    %c0_i32_1 = arith.constant 0 : i32
    return %c0_i32, %c0_i32_0 : i32, i32
  }
  func.func @transform_2(%arg0: i32) -> (i32, i32) {
    %c0_i32 = arith.constant 0 : i32
    %c0_i32_0 = arith.constant 0 : i32
    %c0_i32_1 = arith.constant 0 : i32
    return %c0_i32, %c0_i32_0 : i32, i32
  }
  func.func @transform_3(%arg0: i32) -> (i32, i32) {
    %c0_i32 = arith.constant 0 : i32
    %c0_i32_0 = arith.constant 0 : i32
    return %arg0, %c0_i32 : i32, i32
  }
}

module attributes {stable_mosaic.version = 11 : i64} {
  func.func @_mha_kernel(%arg0: i32, %arg1: memref<1x8x32xf32, #tpu.memory_space<vmem>>, %arg2: memref<1x8x8xf32, #tpu.memory_space<vmem>>, %arg3: memref<1x32xf32, #tpu.memory_space<vmem>>, %arg4: memref<1x32xf32, #tpu.memory_space<vmem>>, %arg5: memref<32x96xbf16, #tpu.memory_space<vmem>>, %arg6: memref<1x96xf32, #tpu.memory_space<vmem>>, %arg7: memref<32x32xbf16, #tpu.memory_space<vmem>>, %arg8: memref<1x32xf32, #tpu.memory_space<vmem>>, %arg9: memref<1x8x32xf32, #tpu.memory_space<vmem>>) attributes {dimension_semantics = [#tpu.dimension_semantics<parallel>], iteration_bounds = array<i64: 2>, scalar_prefetch = 0 : i64, scratch_operands = 0 : i64, tpu.core_type = #tpu.core_type<tc>, window_params = [{transform_indices = @transform_0, window_bounds = array<i64: 1, 8, 32>}, {transform_indices = @transform_1, window_bounds = array<i64: 1, 8, 8>}, {pipeline_mode = #tpu.pipeline_mode<synchronous>, transform_indices = @transform_2, window_bounds = array<i64: 1, 32>}, {pipeline_mode = #tpu.pipeline_mode<synchronous>, transform_indices = @transform_3, window_bounds = array<i64: 1, 32>}, {pipeline_mode = #tpu.pipeline_mode<synchronous>, transform_indices = @transform_4, window_bounds = array<i64: 32, 96>}, {pipeline_mode = #tpu.pipeline_mode<synchronous>, transform_indices = @transform_5, window_bounds = array<i64: 1, 96>}, {pipeline_mode = #tpu.pipeline_mode<synchronous>, transform_indices = @transform_6, window_bounds = array<i64: 32, 32>}, {pipeline_mode = #tpu.pipeline_mode<synchronous>, transform_indices = @transform_7, window_bounds = array<i64: 1, 32>}, {transform_indices = @transform_8, window_bounds = array<i64: 1, 8, 32>}]} {
    %c0 = arith.constant 0 : index
    %c0_0 = arith.constant 0 : index
    %c0_1 = arith.constant 0 : index
    %0 = vector.load %arg1[%c0, %c0_0, %c0_1] : memref<1x8x32xf32, #tpu.memory_space<vmem>>, vector<1x8x32xf32>
    %1 = vector.shape_cast %0 : vector<1x8x32xf32> to vector<8x32xf32>
    %c0_2 = arith.constant 0 : index
    %c0_3 = arith.constant 0 : index
    %2 = vector.load %arg3[%c0_2, %c0_3] : memref<1x32xf32, #tpu.memory_space<vmem>>, vector<1x32xf32>
    %c0_4 = arith.constant 0 : index
    %c0_5 = arith.constant 0 : index
    %3 = vector.load %arg4[%c0_4, %c0_5] : memref<1x32xf32, #tpu.memory_space<vmem>>, vector<1x32xf32>
    %cst = arith.constant dense<0.000000e+00> : vector<8xf32>
    %4 = vector.multi_reduction <add>, %1, %cst [1] : vector<8x32xf32> to vector<8xf32>
    %5 = vector.shape_cast %4 : vector<8xf32> to vector<8x1xf32>
    %cst_6 = arith.constant 3.200000e+01 : f32
    %6 = vector.broadcast %cst_6 : f32 to vector<8x1xf32>
    %7 = arith.divf %5, %6 : vector<8x1xf32>
    %8 = vector.broadcast %7 : vector<8x1xf32> to vector<8x32xf32>
    %9 = arith.subf %1, %8 : vector<8x32xf32>
    %10 = arith.mulf %9, %9 : vector<8x32xf32>
    %cst_7 = arith.constant dense<0.000000e+00> : vector<8xf32>
    %11 = vector.multi_reduction <add>, %10, %cst_7 [1] : vector<8x32xf32> to vector<8xf32>
    %12 = vector.shape_cast %11 : vector<8xf32> to vector<8x1xf32>
    %cst_8 = arith.constant 3.100000e+01 : f32
    %13 = vector.broadcast %cst_8 : f32 to vector<8x1xf32>
    %14 = arith.divf %12, %13 : vector<8x1xf32>
    %15 = vector.broadcast %7 : vector<8x1xf32> to vector<8x32xf32>
    %16 = arith.subf %1, %15 : vector<8x32xf32>
    %17 = vector.broadcast %2 : vector<1x32xf32> to vector<8x32xf32>
    %18 = arith.mulf %17, %16 : vector<8x32xf32>
    %19 = math.sqrt %14 : vector<8x1xf32>
    %cst_9 = arith.constant 9.99999997E-7 : f32
    %20 = vector.broadcast %cst_9 : f32 to vector<8x1xf32>
    %21 = arith.addf %19, %20 : vector<8x1xf32>
    %22 = vector.broadcast %21 : vector<8x1xf32> to vector<8x32xf32>
    %23 = arith.divf %18, %22 : vector<8x32xf32>
    %24 = vector.broadcast %3 : vector<1x32xf32> to vector<8x32xf32>
    %25 = arith.addf %23, %24 : vector<8x32xf32>
    %26 = arith.truncf %25 : vector<8x32xf32> to vector<8x32xbf16>
    %c0_10 = arith.constant 0 : index
    %c0_11 = arith.constant 0 : index
    %27 = vector.load %arg5[%c0_10, %c0_11] : memref<32x96xbf16, #tpu.memory_space<vmem>>, vector<32x96xbf16>
    %c0_12 = arith.constant 0 : index
    %c0_13 = arith.constant 0 : index
    %28 = vector.load %arg6[%c0_12, %c0_13] : memref<1x96xf32, #tpu.memory_space<vmem>>, vector<1x96xf32>
    %cst_14 = arith.constant dense<0.000000e+00> : vector<8x96xf32>
    %29 = tpu.matmul %26, %27, %cst_14 {dimension_numbers = #tpu.dot_dimension_numbers<[1], [0], [0], [1], [0, 0, 1, 1], [], []>} : vector<8x32xbf16>, vector<32x96xbf16>, vector<8x96xf32> -> vector<8x96xf32>
    %30 = vector.broadcast %28 : vector<1x96xf32> to vector<8x96xf32>
    %31 = arith.addf %29, %30 : vector<8x96xf32>
    %32 = vector.extract_strided_slice %31 {offsets = [0, 0], sizes = [8, 32], strides = [1, 1]} : vector<8x96xf32> to vector<8x32xf32>
    %33 = vector.extract_strided_slice %31 {offsets = [0, 32], sizes = [8, 32], strides = [1, 1]} : vector<8x96xf32> to vector<8x32xf32>
    %34 = vector.extract_strided_slice %31 {offsets = [0, 64], sizes = [8, 32], strides = [1, 1]} : vector<8x96xf32> to vector<8x32xf32>
    %c0_15 = arith.constant 0 : index
    %c0_16 = arith.constant 0 : index
    %c0_17 = arith.constant 0 : index
    %35 = vector.load %arg2[%c0_15, %c0_16, %c0_17] : memref<1x8x8xf32, #tpu.memory_space<vmem>>, vector<1x8x8xf32>
    %36 = vector.shape_cast %35 : vector<1x8x8xf32> to vector<8x8xf32>
    %cst_18 = arith.constant 0.000000e+00 : f32
    %37 = vector.broadcast %cst_18 : f32 to vector<8x8xf32>
    %38 = arith.cmpf oeq, %36, %37 : vector<8x8xf32>
    %cst_19 = arith.constant 0.353553385 : f32
    %39 = vector.broadcast %cst_19 : f32 to vector<8x32xf32>
    %40 = arith.mulf %32, %39 : vector<8x32xf32>
    %41 = arith.truncf %40 : vector<8x32xf32> to vector<8x32xbf16>
    %42 = arith.truncf %33 : vector<8x32xf32> to vector<8x32xbf16>
    %43 = arith.truncf %34 : vector<8x32xf32> to vector<8x32xbf16>
    %c0_20 = arith.constant 0 : index
    %c0_21 = arith.constant 0 : index
    %44 = vector.load %arg7[%c0_20, %c0_21] : memref<32x32xbf16, #tpu.memory_space<vmem>>, vector<32x32xbf16>
    %c0_22 = arith.constant 0 : index
    %c0_23 = arith.constant 0 : index
    %45 = vector.load %arg8[%c0_22, %c0_23] : memref<1x32xf32, #tpu.memory_space<vmem>>, vector<1x32xf32>
    %46 = vector.broadcast %45 : vector<1x32xf32> to vector<8x32xf32>
    %47 = arith.addf %1, %46 : vector<8x32xf32>
    %48 = vector.extract_strided_slice %41 {offsets = [0, 0], sizes = [8, 8], strides = [1, 1]} : vector<8x32xbf16> to vector<8x8xbf16>
    %49 = vector.extract_strided_slice %42 {offsets = [0, 0], sizes = [8, 8], strides = [1, 1]} : vector<8x32xbf16> to vector<8x8xbf16>
    %cst_24 = arith.constant dense<0.000000e+00> : vector<8x8xf32>
    %50 = tpu.matmul %48, %49, %cst_24 {dimension_numbers = #tpu.dot_dimension_numbers<[1], [1], [0], [0], [0, 0, 1, 0], [], []>} : vector<8x8xbf16>, vector<8x8xbf16>, vector<8x8xf32> -> vector<8x8xf32>
    %cst_25 = arith.constant -1.000000e+09 : f32
    %51 = vector.broadcast %cst_25 : f32 to vector<8x8xf32>
    %52 = arith.select %38, %51, %50 : vector<8x8xi1>, vector<8x8xf32>
    %cst_26 = arith.constant dense<0xFF800000> : vector<8xf32>
    %53 = vector.multi_reduction <maximumf>, %52, %cst_26 [1] : vector<8x8xf32> to vector<8xf32>
    %54 = vector.shape_cast %53 : vector<8xf32> to vector<8x1xf32>
    %55 = vector.broadcast %54 : vector<8x1xf32> to vector<8x8xf32>
    %56 = arith.subf %52, %55 : vector<8x8xf32>
    %57 = math.exp %56 : vector<8x8xf32>
    %cst_27 = arith.constant dense<0.000000e+00> : vector<8xf32>
    %58 = vector.multi_reduction <add>, %57, %cst_27 [1] : vector<8x8xf32> to vector<8xf32>
    %59 = vector.shape_cast %58 : vector<8xf32> to vector<8x1xf32>
    %60 = tpu.reciprocal %59 {approx = true} : vector<8x1xf32> -> vector<8x1xf32>
    %61 = vector.broadcast %60 : vector<8x1xf32> to vector<8x8xf32>
    %62 = arith.mulf %57, %61 : vector<8x8xf32>
    %63 = arith.truncf %62 : vector<8x8xf32> to vector<8x8xbf16>
    %64 = vector.extract_strided_slice %43 {offsets = [0, 0], sizes = [8, 8], strides = [1, 1]} : vector<8x32xbf16> to vector<8x8xbf16>
    %cst_28 = arith.constant dense<0.000000e+00> : vector<8x8xf32>
    %65 = tpu.matmul %63, %64, %cst_28 {dimension_numbers = #tpu.dot_dimension_numbers<[1], [0], [0], [1], [0, 0, 1, 1], [], []>} : vector<8x8xbf16>, vector<8x8xbf16>, vector<8x8xf32> -> vector<8x8xf32>
    %66 = arith.truncf %65 : vector<8x8xf32> to vector<8x8xbf16>
    %67 = vector.extract_strided_slice %44 {offsets = [0, 0], sizes = [8, 32], strides = [1, 1]} : vector<32x32xbf16> to vector<8x32xbf16>
    %cst_29 = arith.constant dense<0.000000e+00> : vector<8x32xf32>
    %68 = tpu.matmul %66, %67, %cst_29 {dimension_numbers = #tpu.dot_dimension_numbers<[1], [0], [0], [1], [0, 0, 1, 1], [], []>} : vector<8x8xbf16>, vector<8x32xbf16>, vector<8x32xf32> -> vector<8x32xf32>
    %69 = arith.addf %47, %68 : vector<8x32xf32>
    %70 = vector.extract_strided_slice %41 {offsets = [0, 8], sizes = [8, 8], strides = [1, 1]} : vector<8x32xbf16> to vector<8x8xbf16>
    %71 = vector.extract_strided_slice %42 {offsets = [0, 8], sizes = [8, 8], strides = [1, 1]} : vector<8x32xbf16> to vector<8x8xbf16>
    %cst_30 = arith.constant dense<0.000000e+00> : vector<8x8xf32>
    %72 = tpu.matmul %70, %71, %cst_30 {dimension_numbers = #tpu.dot_dimension_numbers<[1], [1], [0], [0], [0, 0, 1, 0], [], []>} : vector<8x8xbf16>, vector<8x8xbf16>, vector<8x8xf32> -> vector<8x8xf32>
    %cst_31 = arith.constant -1.000000e+09 : f32
    %73 = vector.broadcast %cst_31 : f32 to vector<8x8xf32>
    %74 = arith.select %38, %73, %72 : vector<8x8xi1>, vector<8x8xf32>
    %cst_32 = arith.constant dense<0xFF800000> : vector<8xf32>
    %75 = vector.multi_reduction <maximumf>, %74, %cst_32 [1] : vector<8x8xf32> to vector<8xf32>
    %76 = vector.shape_cast %75 : vector<8xf32> to vector<8x1xf32>
    %77 = vector.broadcast %76 : vector<8x1xf32> to vector<8x8xf32>
    %78 = arith.subf %74, %77 : vector<8x8xf32>
    %79 = math.exp %78 : vector<8x8xf32>
    %cst_33 = arith.constant dense<0.000000e+00> : vector<8xf32>
    %80 = vector.multi_reduction <add>, %79, %cst_33 [1] : vector<8x8xf32> to vector<8xf32>
    %81 = vector.shape_cast %80 : vector<8xf32> to vector<8x1xf32>
    %82 = tpu.reciprocal %81 {approx = true} : vector<8x1xf32> -> vector<8x1xf32>
    %83 = vector.broadcast %82 : vector<8x1xf32> to vector<8x8xf32>
    %84 = arith.mulf %79, %83 : vector<8x8xf32>
    %85 = arith.truncf %84 : vector<8x8xf32> to vector<8x8xbf16>
    %86 = vector.extract_strided_slice %43 {offsets = [0, 8], sizes = [8, 8], strides = [1, 1]} : vector<8x32xbf16> to vector<8x8xbf16>
    %cst_34 = arith.constant dense<0.000000e+00> : vector<8x8xf32>
    %87 = tpu.matmul %85, %86, %cst_34 {dimension_numbers = #tpu.dot_dimension_numbers<[1], [0], [0], [1], [0, 0, 1, 1], [], []>} : vector<8x8xbf16>, vector<8x8xbf16>, vector<8x8xf32> -> vector<8x8xf32>
    %88 = arith.truncf %87 : vector<8x8xf32> to vector<8x8xbf16>
    %89 = vector.extract_strided_slice %44 {offsets = [8, 0], sizes = [8, 32], strides = [1, 1]} : vector<32x32xbf16> to vector<8x32xbf16>
    %cst_35 = arith.constant dense<0.000000e+00> : vector<8x32xf32>
    %90 = tpu.matmul %88, %89, %cst_35 {dimension_numbers = #tpu.dot_dimension_numbers<[1], [0], [0], [1], [0, 0, 1, 1], [], []>} : vector<8x8xbf16>, vector<8x32xbf16>, vector<8x32xf32> -> vector<8x32xf32>
    %91 = arith.addf %69, %90 : vector<8x32xf32>
    %92 = vector.extract_strided_slice %41 {offsets = [0, 16], sizes = [8, 8], strides = [1, 1]} : vector<8x32xbf16> to vector<8x8xbf16>
    %93 = vector.extract_strided_slice %42 {offsets = [0, 16], sizes = [8, 8], strides = [1, 1]} : vector<8x32xbf16> to vector<8x8xbf16>
    %cst_36 = arith.constant dense<0.000000e+00> : vector<8x8xf32>
    %94 = tpu.matmul %92, %93, %cst_36 {dimension_numbers = #tpu.dot_dimension_numbers<[1], [1], [0], [0], [0, 0, 1, 0], [], []>} : vector<8x8xbf16>, vector<8x8xbf16>, vector<8x8xf32> -> vector<8x8xf32>
    %cst_37 = arith.constant -1.000000e+09 : f32
    %95 = vector.broadcast %cst_37 : f32 to vector<8x8xf32>
    %96 = arith.select %38, %95, %94 : vector<8x8xi1>, vector<8x8xf32>
    %cst_38 = arith.constant dense<0xFF800000> : vector<8xf32>
    %97 = vector.multi_reduction <maximumf>, %96, %cst_38 [1] : vector<8x8xf32> to vector<8xf32>
    %98 = vector.shape_cast %97 : vector<8xf32> to vector<8x1xf32>
    %99 = vector.broadcast %98 : vector<8x1xf32> to vector<8x8xf32>
    %100 = arith.subf %96, %99 : vector<8x8xf32>
    %101 = math.exp %100 : vector<8x8xf32>
    %cst_39 = arith.constant dense<0.000000e+00> : vector<8xf32>
    %102 = vector.multi_reduction <add>, %101, %cst_39 [1] : vector<8x8xf32> to vector<8xf32>
    %103 = vector.shape_cast %102 : vector<8xf32> to vector<8x1xf32>
    %104 = tpu.reciprocal %103 {approx = true} : vector<8x1xf32> -> vector<8x1xf32>
    %105 = vector.broadcast %104 : vector<8x1xf32> to vector<8x8xf32>
    %106 = arith.mulf %101, %105 : vector<8x8xf32>
    %107 = arith.truncf %106 : vector<8x8xf32> to vector<8x8xbf16>
    %108 = vector.extract_strided_slice %43 {offsets = [0, 16], sizes = [8, 8], strides = [1, 1]} : vector<8x32xbf16> to vector<8x8xbf16>
    %cst_40 = arith.constant dense<0.000000e+00> : vector<8x8xf32>
    %109 = tpu.matmul %107, %108, %cst_40 {dimension_numbers = #tpu.dot_dimension_numbers<[1], [0], [0], [1], [0, 0, 1, 1], [], []>} : vector<8x8xbf16>, vector<8x8xbf16>, vector<8x8xf32> -> vector<8x8xf32>
    %110 = arith.truncf %109 : vector<8x8xf32> to vector<8x8xbf16>
    %111 = vector.extract_strided_slice %44 {offsets = [16, 0], sizes = [8, 32], strides = [1, 1]} : vector<32x32xbf16> to vector<8x32xbf16>
    %cst_41 = arith.constant dense<0.000000e+00> : vector<8x32xf32>
    %112 = tpu.matmul %110, %111, %cst_41 {dimension_numbers = #tpu.dot_dimension_numbers<[1], [0], [0], [1], [0, 0, 1, 1], [], []>} : vector<8x8xbf16>, vector<8x32xbf16>, vector<8x32xf32> -> vector<8x32xf32>
    %113 = arith.addf %91, %112 : vector<8x32xf32>
    %114 = vector.extract_strided_slice %41 {offsets = [0, 24], sizes = [8, 8], strides = [1, 1]} : vector<8x32xbf16> to vector<8x8xbf16>
    %115 = vector.extract_strided_slice %42 {offsets = [0, 24], sizes = [8, 8], strides = [1, 1]} : vector<8x32xbf16> to vector<8x8xbf16>
    %cst_42 = arith.constant dense<0.000000e+00> : vector<8x8xf32>
    %116 = tpu.matmul %114, %115, %cst_42 {dimension_numbers = #tpu.dot_dimension_numbers<[1], [1], [0], [0], [0, 0, 1, 0], [], []>} : vector<8x8xbf16>, vector<8x8xbf16>, vector<8x8xf32> -> vector<8x8xf32>
    %cst_43 = arith.constant -1.000000e+09 : f32
    %117 = vector.broadcast %cst_43 : f32 to vector<8x8xf32>
    %118 = arith.select %38, %117, %116 : vector<8x8xi1>, vector<8x8xf32>
    %cst_44 = arith.constant dense<0xFF800000> : vector<8xf32>
    %119 = vector.multi_reduction <maximumf>, %118, %cst_44 [1] : vector<8x8xf32> to vector<8xf32>
    %120 = vector.shape_cast %119 : vector<8xf32> to vector<8x1xf32>
    %121 = vector.broadcast %120 : vector<8x1xf32> to vector<8x8xf32>
    %122 = arith.subf %118, %121 : vector<8x8xf32>
    %123 = math.exp %122 : vector<8x8xf32>
    %cst_45 = arith.constant dense<0.000000e+00> : vector<8xf32>
    %124 = vector.multi_reduction <add>, %123, %cst_45 [1] : vector<8x8xf32> to vector<8xf32>
    %125 = vector.shape_cast %124 : vector<8xf32> to vector<8x1xf32>
    %126 = tpu.reciprocal %125 {approx = true} : vector<8x1xf32> -> vector<8x1xf32>
    %127 = vector.broadcast %126 : vector<8x1xf32> to vector<8x8xf32>
    %128 = arith.mulf %123, %127 : vector<8x8xf32>
    %129 = arith.truncf %128 : vector<8x8xf32> to vector<8x8xbf16>
    %130 = vector.extract_strided_slice %43 {offsets = [0, 24], sizes = [8, 8], strides = [1, 1]} : vector<8x32xbf16> to vector<8x8xbf16>
    %cst_46 = arith.constant dense<0.000000e+00> : vector<8x8xf32>
    %131 = tpu.matmul %129, %130, %cst_46 {dimension_numbers = #tpu.dot_dimension_numbers<[1], [0], [0], [1], [0, 0, 1, 1], [], []>} : vector<8x8xbf16>, vector<8x8xbf16>, vector<8x8xf32> -> vector<8x8xf32>
    %132 = arith.truncf %131 : vector<8x8xf32> to vector<8x8xbf16>
    %133 = vector.extract_strided_slice %44 {offsets = [24, 0], sizes = [8, 32], strides = [1, 1]} : vector<32x32xbf16> to vector<8x32xbf16>
    %cst_47 = arith.constant dense<0.000000e+00> : vector<8x32xf32>
    %134 = tpu.matmul %132, %133, %cst_47 {dimension_numbers = #tpu.dot_dimension_numbers<[1], [0], [0], [1], [0, 0, 1, 1], [], []>} : vector<8x8xbf16>, vector<8x32xbf16>, vector<8x32xf32> -> vector<8x32xf32>
    %135 = arith.addf %113, %134 : vector<8x32xf32>
    %c0_48 = arith.constant 0 : index
    %c0_49 = arith.constant 0 : index
    %c0_50 = arith.constant 0 : index
    %136 = vector.load %arg9[%c0_48, %c0_49, %c0_50] : memref<1x8x32xf32, #tpu.memory_space<vmem>>, vector<1x8x32xf32>
    %137 = vector.shape_cast %136 : vector<1x8x32xf32> to vector<8x32xf32>
    %138 = vector.shape_cast %135 : vector<8x32xf32> to vector<1x8x32xf32>
    tpu.vector_store %arg9[%c0_48, %c0_49, %c0_50], %138 {strides = array<i32>} : memref<1x8x32xf32, #tpu.memory_space<vmem>>, vector<1x8x32xf32>,
    return
  }
  func.func @transform_0(%arg0: i32) -> (i32, i32, i32) {
    %c0_i32 = arith.constant 0 : i32
    %c0_i32_0 = arith.constant 0 : i32
    %c0_i32_1 = arith.constant 0 : i32
    return %arg0, %c0_i32, %c0_i32_0 : i32, i32, i32
  }
  func.func @transform_1(%arg0: i32) -> (i32, i32, i32) {
    %c0_i32 = arith.constant 0 : i32
    %c0_i32_0 = arith.constant 0 : i32
    %c0_i32_1 = arith.constant 0 : i32
    return %arg0, %c0_i32, %c0_i32_0 : i32, i32, i32
  }
  func.func @transform_2(%arg0: i32) -> (i32, i32) {
    %c0_i32 = arith.constant 0 : i32
    %c0_i32_0 = arith.constant 0 : i32
    %c0_i32_1 = arith.constant 0 : i32
    return %c0_i32, %c0_i32_0 : i32, i32
  }
  func.func @transform_3(%arg0: i32) -> (i32, i32) {
    %c0_i32 = arith.constant 0 : i32
    %c0_i32_0 = arith.constant 0 : i32
    %c0_i32_1 = arith.constant 0 : i32
    return %c0_i32, %c0_i32_0 : i32, i32
  }
  func.func @transform_4(%arg0: i32) -> (i32, i32) {
    %c0_i32 = arith.constant 0 : i32
    %c0_i32_0 = arith.constant 0 : i32
    %c0_i32_1 = arith.constant 0 : i32
    return %c0_i32, %c0_i32_0 : i32, i32
  }
  func.func @transform_5(%arg0: i32) -> (i32, i32) {
    %c0_i32 = arith.constant 0 : i32
    %c0_i32_0 = arith.constant 0 : i32
    %c0_i32_1 = arith.constant 0 : i32
    return %c0_i32, %c0_i32_0 : i32, i32
  }
  func.func @transform_6(%arg0: i32) -> (i32, i32) {
    %c0_i32 = arith.constant 0 : i32
    %c0_i32_0 = arith.constant 0 : i32
    %c0_i32_1 = arith.constant 0 : i32
    return %c0_i32, %c0_i32_0 : i32, i32
  }
  func.func @transform_7(%arg0: i32) -> (i32, i32) {
    %c0_i32 = arith.constant 0 : i32
    %c0_i32_0 = arith.constant 0 : i32
    %c0_i32_1 = arith.constant 0 : i32
    return %c0_i32, %c0_i32_0 : i32, i32
  }
  func.func @transform_8(%arg0: i32) -> (i32, i32, i32) {
    %c0_i32 = arith.constant 0 : i32
    %c0_i32_0 = arith.constant 0 : i32
    %c0_i32_1 = arith.constant 0 : i32
    return %arg0, %c0_i32, %c0_i32_0 : i32, i32, i32
  }
}

module attributes {stable_mosaic.version = 11 : i64} {
  func.func @_mha_kernel(%arg0: i32, %arg1: memref<1x8x32xf32, #tpu.memory_space<vmem>>, %arg2: memref<1x10x32xf32, #tpu.memory_space<vmem>>, %arg3: memref<1x1x10xf32, #tpu.memory_space<vmem>>, %arg4: memref<1x32xf32, #tpu.memory_space<vmem>>, %arg5: memref<1x32xf32, #tpu.memory_space<vmem>>, %arg6: memref<32x96xbf16, #tpu.memory_space<vmem>>, %arg7: memref<1x96xf32, #tpu.memory_space<vmem>>, %arg8: memref<32x32xbf16, #tpu.memory_space<vmem>>, %arg9: memref<1x32xf32, #tpu.memory_space<vmem>>, %arg10: memref<1x8x32xf32, #tpu.memory_space<vmem>>) attributes {dimension_semantics = [#tpu.dimension_semantics<parallel>], iteration_bounds = array<i64: 2>, scalar_prefetch = 0 : i64, scratch_operands = 0 : i64, tpu.core_type = #tpu.core_type<tc>, window_params = [{transform_indices = @transform_0, window_bounds = array<i64: 1, 8, 32>}, {transform_indices = @transform_1, window_bounds = array<i64: 1, 10, 32>}, {transform_indices = @transform_2, window_bounds = array<i64: 1, 1, 10>}, {pipeline_mode = #tpu.pipeline_mode<synchronous>, transform_indices = @transform_3, window_bounds = array<i64: 1, 32>}, {pipeline_mode = #tpu.pipeline_mode<synchronous>, transform_indices = @transform_4, window_bounds = array<i64: 1, 32>}, {pipeline_mode = #tpu.pipeline_mode<synchronous>, transform_indices = @transform_5, window_bounds = array<i64: 32, 96>}, {pipeline_mode = #tpu.pipeline_mode<synchronous>, transform_indices = @transform_6, window_bounds = array<i64: 1, 96>}, {pipeline_mode = #tpu.pipeline_mode<synchronous>, transform_indices = @transform_7, window_bounds = array<i64: 32, 32>}, {pipeline_mode = #tpu.pipeline_mode<synchronous>, transform_indices = @transform_8, window_bounds = array<i64: 1, 32>}, {transform_indices = @transform_9, window_bounds = array<i64: 1, 8, 32>}]} {
    %c0 = arith.constant 0 : index
    %c0_0 = arith.constant 0 : index
    %c0_1 = arith.constant 0 : index
    %0 = vector.load %arg1[%c0, %c0_0, %c0_1] : memref<1x8x32xf32, #tpu.memory_space<vmem>>, vector<1x8x32xf32>
    %1 = vector.shape_cast %0 : vector<1x8x32xf32> to vector<8x32xf32>
    %c0_2 = arith.constant 0 : index
    %c0_3 = arith.constant 0 : index
    %2 = vector.load %arg4[%c0_2, %c0_3] : memref<1x32xf32, #tpu.memory_space<vmem>>, vector<1x32xf32>
    %c0_4 = arith.constant 0 : index
    %c0_5 = arith.constant 0 : index
    %3 = vector.load %arg5[%c0_4, %c0_5] : memref<1x32xf32, #tpu.memory_space<vmem>>, vector<1x32xf32>
    %cst = arith.constant dense<0.000000e+00> : vector<8xf32>
    %4 = vector.multi_reduction <add>, %1, %cst [1] : vector<8x32xf32> to vector<8xf32>
    %5 = vector.shape_cast %4 : vector<8xf32> to vector<8x1xf32>
    %cst_6 = arith.constant 3.200000e+01 : f32
    %6 = vector.broadcast %cst_6 : f32 to vector<8x1xf32>
    %7 = arith.divf %5, %6 : vector<8x1xf32>
    %8 = vector.broadcast %7 : vector<8x1xf32> to vector<8x32xf32>
    %9 = arith.subf %1, %8 : vector<8x32xf32>
    %10 = arith.mulf %9, %9 : vector<8x32xf32>
    %cst_7 = arith.constant dense<0.000000e+00> : vector<8xf32>
    %11 = vector.multi_reduction <add>, %10, %cst_7 [1] : vector<8x32xf32> to vector<8xf32>
    %12 = vector.shape_cast %11 : vector<8xf32> to vector<8x1xf32>
    %cst_8 = arith.constant 3.100000e+01 : f32
    %13 = vector.broadcast %cst_8 : f32 to vector<8x1xf32>
    %14 = arith.divf %12, %13 : vector<8x1xf32>
    %15 = vector.broadcast %7 : vector<8x1xf32> to vector<8x32xf32>
    %16 = arith.subf %1, %15 : vector<8x32xf32>
    %17 = vector.broadcast %2 : vector<1x32xf32> to vector<8x32xf32>
    %18 = arith.mulf %17, %16 : vector<8x32xf32>
    %19 = math.sqrt %14 : vector<8x1xf32>
    %cst_9 = arith.constant 9.99999997E-7 : f32
    %20 = vector.broadcast %cst_9 : f32 to vector<8x1xf32>
    %21 = arith.addf %19, %20 : vector<8x1xf32>
    %22 = vector.broadcast %21 : vector<8x1xf32> to vector<8x32xf32>
    %23 = arith.divf %18, %22 : vector<8x32xf32>
    %24 = vector.broadcast %3 : vector<1x32xf32> to vector<8x32xf32>
    %25 = arith.addf %23, %24 : vector<8x32xf32>
    %26 = arith.truncf %25 : vector<8x32xf32> to vector<8x32xbf16>
    %c0_10 = arith.constant 0 : index
    %c0_11 = arith.constant 0 : index
    %27 = vector.load %arg6[%c0_10, %c0_11] : memref<32x96xbf16, #tpu.memory_space<vmem>>, vector<32x96xbf16>
    %c0_12 = arith.constant 0 : index
    %c0_13 = arith.constant 0 : index
    %28 = vector.load %arg7[%c0_12, %c0_13] : memref<1x96xf32, #tpu.memory_space<vmem>>, vector<1x96xf32>
    %c0_14 = arith.constant 0 : index
    %c0_15 = arith.constant 0 : index
    %c0_16 = arith.constant 0 : index
    %29 = vector.load %arg2[%c0_14, %c0_15, %c0_16] : memref<1x10x32xf32, #tpu.memory_space<vmem>>, vector<1x10x32xf32>
    %30 = vector.shape_cast %29 : vector<1x10x32xf32> to vector<10x32xf32>
    %31 = arith.truncf %30 : vector<10x32xf32> to vector<10x32xbf16>
    %32 = vector.extract_strided_slice %27 {offsets = [0, 0], sizes = [32, 32], strides = [1, 1]} : vector<32x96xbf16> to vector<32x32xbf16>
    %cst_17 = arith.constant dense<0.000000e+00> : vector<8x32xf32>
    %33 = tpu.matmul %26, %32, %cst_17 {dimension_numbers = #tpu.dot_dimension_numbers<[1], [0], [0], [1], [0, 0, 1, 1], [], []>} : vector<8x32xbf16>, vector<32x32xbf16>, vector<8x32xf32> -> vector<8x32xf32>
    %34 = vector.extract_strided_slice %28 {offsets = [0, 0], sizes = [1, 32], strides = [1, 1]} : vector<1x96xf32> to vector<1x32xf32>
    %35 = vector.broadcast %34 : vector<1x32xf32> to vector<8x32xf32>
    %36 = arith.addf %33, %35 : vector<8x32xf32>
    %37 = vector.extract_strided_slice %27 {offsets = [0, 32], sizes = [32, 64], strides = [1, 1]} : vector<32x96xbf16> to vector<32x64xbf16>
    %cst_18 = arith.constant dense<0.000000e+00> : vector<10x64xf32>
    %38 = tpu.matmul %31, %37, %cst_18 {dimension_numbers = #tpu.dot_dimension_numbers<[1], [0], [0], [1], [0, 0, 1, 1], [], []>} : vector<10x32xbf16>, vector<32x64xbf16>, vector<10x64xf32> -> vector<10x64xf32>
    %39 = vector.extract_strided_slice %28 {offsets = [0, 32], sizes = [1, 64], strides = [1, 1]} : vector<1x96xf32> to vector<1x64xf32>
    %40 = vector.broadcast %39 : vector<1x64xf32> to vector<10x64xf32>
    %41 = arith.addf %38, %40 : vector<10x64xf32>
    %42 = vector.extract_strided_slice %41 {offsets = [0, 0], sizes = [10, 32], strides = [1, 1]} : vector<10x64xf32> to vector<10x32xf32>
    %43 = vector.extract_strided_slice %41 {offsets = [0, 32], sizes = [10, 32], strides = [1, 1]} : vector<10x64xf32> to vector<10x32xf32>
    %c0_19 = arith.constant 0 : index
    %c0_20 = arith.constant 0 : index
    %c0_21 = arith.constant 0 : index
    %44 = vector.load %arg3[%c0_19, %c0_20, %c0_21] : memref<1x1x10xf32, #tpu.memory_space<vmem>>, vector<1x1x10xf32>
    %45 = vector.shape_cast %44 : vector<1x1x10xf32> to vector<1x10xf32>
    %46 = vector.shape_cast %45 : vector<1x10xf32> to vector<1x10xf32>
    %47 = vector.broadcast %46 : vector<1x10xf32> to vector<8x10xf32>
    %cst_22 = arith.constant 0.000000e+00 : f32
    %48 = vector.broadcast %cst_22 : f32 to vector<8x10xf32>
    %49 = arith.cmpf oeq, %47, %48 : vector<8x10xf32>
    %cst_23 = arith.constant 0.353553385 : f32
    %50 = vector.broadcast %cst_23 : f32 to vector<8x32xf32>
    %51 = arith.mulf %36, %50 : vector<8x32xf32>
    %52 = arith.truncf %51 : vector<8x32xf32> to vector<8x32xbf16>
    %53 = arith.truncf %42 : vector<10x32xf32> to vector<10x32xbf16>
    %54 = arith.truncf %43 : vector<10x32xf32> to vector<10x32xbf16>
    %c0_24 = arith.constant 0 : index
    %c0_25 = arith.constant 0 : index
    %55 = vector.load %arg8[%c0_24, %c0_25] : memref<32x32xbf16, #tpu.memory_space<vmem>>, vector<32x32xbf16>
    %c0_26 = arith.constant 0 : index
    %c0_27 = arith.constant 0 : index
    %56 = vector.load %arg9[%c0_26, %c0_27] : memref<1x32xf32, #tpu.memory_space<vmem>>, vector<1x32xf32>
    %57 = vector.broadcast %56 : vector<1x32xf32> to vector<8x32xf32>
    %58 = arith.addf %1, %57 : vector<8x32xf32>
    %59 = vector.extract_strided_slice %52 {offsets = [0, 0], sizes = [8, 8], strides = [1, 1]} : vector<8x32xbf16> to vector<8x8xbf16>
    %60 = vector.extract_strided_slice %53 {offsets = [0, 0], sizes = [10, 8], strides = [1, 1]} : vector<10x32xbf16> to vector<10x8xbf16>
    %cst_28 = arith.constant dense<0.000000e+00> : vector<8x10xf32>
    %61 = tpu.matmul %59, %60, %cst_28 {dimension_numbers = #tpu.dot_dimension_numbers<[1], [1], [0], [0], [0, 0, 1, 0], [], []>} : vector<8x8xbf16>, vector<10x8xbf16>, vector<8x10xf32> -> vector<8x10xf32>
    %cst_29 = arith.constant -1.000000e+09 : f32
    %62 = vector.broadcast %cst_29 : f32 to vector<8x10xf32>
    %63 = arith.select %49, %62, %61 : vector<8x10xi1>, vector<8x10xf32>
    %cst_30 = arith.constant dense<0xFF800000> : vector<8xf32>
    %64 = vector.multi_reduction <maximumf>, %63, %cst_30 [1] : vector<8x10xf32> to vector<8xf32>
    %65 = vector.shape_cast %64 : vector<8xf32> to vector<8x1xf32>
    %66 = vector.broadcast %65 : vector<8x1xf32> to vector<8x10xf32>
    %67 = arith.subf %63, %66 : vector<8x10xf32>
    %68 = math.exp %67 : vector<8x10xf32>
    %cst_31 = arith.constant dense<0.000000e+00> : vector<8xf32>
    %69 = vector.multi_reduction <add>, %68, %cst_31 [1] : vector<8x10xf32> to vector<8xf32>
    %70 = vector.shape_cast %69 : vector<8xf32> to vector<8x1xf32>
    %71 = tpu.reciprocal %70 {approx = true} : vector<8x1xf32> -> vector<8x1xf32>
    %72 = vector.broadcast %71 : vector<8x1xf32> to vector<8x10xf32>
    %73 = arith.mulf %68, %72 : vector<8x10xf32>
    %74 = arith.truncf %73 : vector<8x10xf32> to vector<8x10xbf16>
    %75 = vector.extract_strided_slice %54 {offsets = [0, 0], sizes = [10, 8], strides = [1, 1]} : vector<10x32xbf16> to vector<10x8xbf16>
    %cst_32 = arith.constant dense<0.000000e+00> : vector<8x8xf32>
    %76 = tpu.matmul %74, %75, %cst_32 {dimension_numbers = #tpu.dot_dimension_numbers<[1], [0], [0], [1], [0, 0, 1, 1], [], []>} : vector<8x10xbf16>, vector<10x8xbf16>, vector<8x8xf32> -> vector<8x8xf32>
    %77 = arith.truncf %76 : vector<8x8xf32> to vector<8x8xbf16>
    %78 = vector.extract_strided_slice %55 {offsets = [0, 0], sizes = [8, 32], strides = [1, 1]} : vector<32x32xbf16> to vector<8x32xbf16>
    %cst_33 = arith.constant dense<0.000000e+00> : vector<8x32xf32>
    %79 = tpu.matmul %77, %78, %cst_33 {dimension_numbers = #tpu.dot_dimension_numbers<[1], [0], [0], [1], [0, 0, 1, 1], [], []>} : vector<8x8xbf16>, vector<8x32xbf16>, vector<8x32xf32> -> vector<8x32xf32>
    %80 = arith.addf %58, %79 : vector<8x32xf32>
    %81 = vector.extract_strided_slice %52 {offsets = [0, 8], sizes = [8, 8], strides = [1, 1]} : vector<8x32xbf16> to vector<8x8xbf16>
    %82 = vector.extract_strided_slice %53 {offsets = [0, 8], sizes = [10, 8], strides = [1, 1]} : vector<10x32xbf16> to vector<10x8xbf16>
    %cst_34 = arith.constant dense<0.000000e+00> : vector<8x10xf32>
    %83 = tpu.matmul %81, %82, %cst_34 {dimension_numbers = #tpu.dot_dimension_numbers<[1], [1], [0], [0], [0, 0, 1, 0], [], []>} : vector<8x8xbf16>, vector<10x8xbf16>, vector<8x10xf32> -> vector<8x10xf32>
    %cst_35 = arith.constant -1.000000e+09 : f32
    %84 = vector.broadcast %cst_35 : f32 to vector<8x10xf32>
    %85 = arith.select %49, %84, %83 : vector<8x10xi1>, vector<8x10xf32>
    %cst_36 = arith.constant dense<0xFF800000> : vector<8xf32>
    %86 = vector.multi_reduction <maximumf>, %85, %cst_36 [1] : vector<8x10xf32> to vector<8xf32>
    %87 = vector.shape_cast %86 : vector<8xf32> to vector<8x1xf32>
    %88 = vector.broadcast %87 : vector<8x1xf32> to vector<8x10xf32>
    %89 = arith.subf %85, %88 : vector<8x10xf32>
    %90 = math.exp %89 : vector<8x10xf32>
    %cst_37 = arith.constant dense<0.000000e+00> : vector<8xf32>
    %91 = vector.multi_reduction <add>, %90, %cst_37 [1] : vector<8x10xf32> to vector<8xf32>
    %92 = vector.shape_cast %91 : vector<8xf32> to vector<8x1xf32>
    %93 = tpu.reciprocal %92 {approx = true} : vector<8x1xf32> -> vector<8x1xf32>
    %94 = vector.broadcast %93 : vector<8x1xf32> to vector<8x10xf32>
    %95 = arith.mulf %90, %94 : vector<8x10xf32>
    %96 = arith.truncf %95 : vector<8x10xf32> to vector<8x10xbf16>
    %97 = vector.extract_strided_slice %54 {offsets = [0, 8], sizes = [10, 8], strides = [1, 1]} : vector<10x32xbf16> to vector<10x8xbf16>
    %cst_38 = arith.constant dense<0.000000e+00> : vector<8x8xf32>
    %98 = tpu.matmul %96, %97, %cst_38 {dimension_numbers = #tpu.dot_dimension_numbers<[1], [0], [0], [1], [0, 0, 1, 1], [], []>} : vector<8x10xbf16>, vector<10x8xbf16>, vector<8x8xf32> -> vector<8x8xf32>
    %99 = arith.truncf %98 : vector<8x8xf32> to vector<8x8xbf16>
    %100 = vector.extract_strided_slice %55 {offsets = [8, 0], sizes = [8, 32], strides = [1, 1]} : vector<32x32xbf16> to vector<8x32xbf16>
    %cst_39 = arith.constant dense<0.000000e+00> : vector<8x32xf32>
    %101 = tpu.matmul %99, %100, %cst_39 {dimension_numbers = #tpu.dot_dimension_numbers<[1], [0], [0], [1], [0, 0, 1, 1], [], []>} : vector<8x8xbf16>, vector<8x32xbf16>, vector<8x32xf32> -> vector<8x32xf32>
    %102 = arith.addf %80, %101 : vector<8x32xf32>
    %103 = vector.extract_strided_slice %52 {offsets = [0, 16], sizes = [8, 8], strides = [1, 1]} : vector<8x32xbf16> to vector<8x8xbf16>
    %104 = vector.extract_strided_slice %53 {offsets = [0, 16], sizes = [10, 8], strides = [1, 1]} : vector<10x32xbf16> to vector<10x8xbf16>
    %cst_40 = arith.constant dense<0.000000e+00> : vector<8x10xf32>
    %105 = tpu.matmul %103, %104, %cst_40 {dimension_numbers = #tpu.dot_dimension_numbers<[1], [1], [0], [0], [0, 0, 1, 0], [], []>} : vector<8x8xbf16>, vector<10x8xbf16>, vector<8x10xf32> -> vector<8x10xf32>
    %cst_41 = arith.constant -1.000000e+09 : f32
    %106 = vector.broadcast %cst_41 : f32 to vector<8x10xf32>
    %107 = arith.select %49, %106, %105 : vector<8x10xi1>, vector<8x10xf32>
    %cst_42 = arith.constant dense<0xFF800000> : vector<8xf32>
    %108 = vector.multi_reduction <maximumf>, %107, %cst_42 [1] : vector<8x10xf32> to vector<8xf32>
    %109 = vector.shape_cast %108 : vector<8xf32> to vector<8x1xf32>
    %110 = vector.broadcast %109 : vector<8x1xf32> to vector<8x10xf32>
    %111 = arith.subf %107, %110 : vector<8x10xf32>
    %112 = math.exp %111 : vector<8x10xf32>
    %cst_43 = arith.constant dense<0.000000e+00> : vector<8xf32>
    %113 = vector.multi_reduction <add>, %112, %cst_43 [1] : vector<8x10xf32> to vector<8xf32>
    %114 = vector.shape_cast %113 : vector<8xf32> to vector<8x1xf32>
    %115 = tpu.reciprocal %114 {approx = true} : vector<8x1xf32> -> vector<8x1xf32>
    %116 = vector.broadcast %115 : vector<8x1xf32> to vector<8x10xf32>
    %117 = arith.mulf %112, %116 : vector<8x10xf32>
    %118 = arith.truncf %117 : vector<8x10xf32> to vector<8x10xbf16>
    %119 = vector.extract_strided_slice %54 {offsets = [0, 16], sizes = [10, 8], strides = [1, 1]} : vector<10x32xbf16> to vector<10x8xbf16>
    %cst_44 = arith.constant dense<0.000000e+00> : vector<8x8xf32>
    %120 = tpu.matmul %118, %119, %cst_44 {dimension_numbers = #tpu.dot_dimension_numbers<[1], [0], [0], [1], [0, 0, 1, 1], [], []>} : vector<8x10xbf16>, vector<10x8xbf16>, vector<8x8xf32> -> vector<8x8xf32>
    %121 = arith.truncf %120 : vector<8x8xf32> to vector<8x8xbf16>
    %122 = vector.extract_strided_slice %55 {offsets = [16, 0], sizes = [8, 32], strides = [1, 1]} : vector<32x32xbf16> to vector<8x32xbf16>
    %cst_45 = arith.constant dense<0.000000e+00> : vector<8x32xf32>
    %123 = tpu.matmul %121, %122, %cst_45 {dimension_numbers = #tpu.dot_dimension_numbers<[1], [0], [0], [1], [0, 0, 1, 1], [], []>} : vector<8x8xbf16>, vector<8x32xbf16>, vector<8x32xf32> -> vector<8x32xf32>
    %124 = arith.addf %102, %123 : vector<8x32xf32>
    %125 = vector.extract_strided_slice %52 {offsets = [0, 24], sizes = [8, 8], strides = [1, 1]} : vector<8x32xbf16> to vector<8x8xbf16>
    %126 = vector.extract_strided_slice %53 {offsets = [0, 24], sizes = [10, 8], strides = [1, 1]} : vector<10x32xbf16> to vector<10x8xbf16>
    %cst_46 = arith.constant dense<0.000000e+00> : vector<8x10xf32>
    %127 = tpu.matmul %125, %126, %cst_46 {dimension_numbers = #tpu.dot_dimension_numbers<[1], [1], [0], [0], [0, 0, 1, 0], [], []>} : vector<8x8xbf16>, vector<10x8xbf16>, vector<8x10xf32> -> vector<8x10xf32>
    %cst_47 = arith.constant -1.000000e+09 : f32
    %128 = vector.broadcast %cst_47 : f32 to vector<8x10xf32>
    %129 = arith.select %49, %128, %127 : vector<8x10xi1>, vector<8x10xf32>
    %cst_48 = arith.constant dense<0xFF800000> : vector<8xf32>
    %130 = vector.multi_reduction <maximumf>, %129, %cst_48 [1] : vector<8x10xf32> to vector<8xf32>
    %131 = vector.shape_cast %130 : vector<8xf32> to vector<8x1xf32>
    %132 = vector.broadcast %131 : vector<8x1xf32> to vector<8x10xf32>
    %133 = arith.subf %129, %132 : vector<8x10xf32>
    %134 = math.exp %133 : vector<8x10xf32>
    %cst_49 = arith.constant dense<0.000000e+00> : vector<8xf32>
    %135 = vector.multi_reduction <add>, %134, %cst_49 [1] : vector<8x10xf32> to vector<8xf32>
    %136 = vector.shape_cast %135 : vector<8xf32> to vector<8x1xf32>
    %137 = tpu.reciprocal %136 {approx = true} : vector<8x1xf32> -> vector<8x1xf32>
    %138 = vector.broadcast %137 : vector<8x1xf32> to vector<8x10xf32>
    %139 = arith.mulf %134, %138 : vector<8x10xf32>
    %140 = arith.truncf %139 : vector<8x10xf32> to vector<8x10xbf16>
    %141 = vector.extract_strided_slice %54 {offsets = [0, 24], sizes = [10, 8], strides = [1, 1]} : vector<10x32xbf16> to vector<10x8xbf16>
    %cst_50 = arith.constant dense<0.000000e+00> : vector<8x8xf32>
    %142 = tpu.matmul %140, %141, %cst_50 {dimension_numbers = #tpu.dot_dimension_numbers<[1], [0], [0], [1], [0, 0, 1, 1], [], []>} : vector<8x10xbf16>, vector<10x8xbf16>, vector<8x8xf32> -> vector<8x8xf32>
    %143 = arith.truncf %142 : vector<8x8xf32> to vector<8x8xbf16>
    %144 = vector.extract_strided_slice %55 {offsets = [24, 0], sizes = [8, 32], strides = [1, 1]} : vector<32x32xbf16> to vector<8x32xbf16>
    %cst_51 = arith.constant dense<0.000000e+00> : vector<8x32xf32>
    %145 = tpu.matmul %143, %144, %cst_51 {dimension_numbers = #tpu.dot_dimension_numbers<[1], [0], [0], [1], [0, 0, 1, 1], [], []>} : vector<8x8xbf16>, vector<8x32xbf16>, vector<8x32xf32> -> vector<8x32xf32>
    %146 = arith.addf %124, %145 : vector<8x32xf32>
    %c0_52 = arith.constant 0 : index
    %c0_53 = arith.constant 0 : index
    %c0_54 = arith.constant 0 : index
    %147 = vector.load %arg10[%c0_52, %c0_53, %c0_54] : memref<1x8x32xf32, #tpu.memory_space<vmem>>, vector<1x8x32xf32>
    %148 = vector.shape_cast %147 : vector<1x8x32xf32> to vector<8x32xf32>
    %149 = vector.shape_cast %146 : vector<8x32xf32> to vector<1x8x32xf32>
    tpu.vector_store %arg10[%c0_52, %c0_53, %c0_54], %149 {strides = array<i32>} : memref<1x8x32xf32, #tpu.memory_space<vmem>>, vector<1x8x32xf32>,
    return
  }
  func.func @transform_0(%arg0: i32) -> (i32, i32, i32) {
    %c0_i32 = arith.constant 0 : i32
    %c0_i32_0 = arith.constant 0 : i32
    %c0_i32_1 = arith.constant 0 : i32
    return %arg0, %c0_i32, %c0_i32_0 : i32, i32, i32
  }
  func.func @transform_1(%arg0: i32) -> (i32, i32, i32) {
    %c0_i32 = arith.constant 0 : i32
    %c0_i32_0 = arith.constant 0 : i32
    %c0_i32_1 = arith.constant 0 : i32
    return %arg0, %c0_i32, %c0_i32_0 : i32, i32, i32
  }
  func.func @transform_2(%arg0: i32) -> (i32, i32, i32) {
    %c0_i32 = arith.constant 0 : i32
    %c0_i32_0 = arith.constant 0 : i32
    %c0_i32_1 = arith.constant 0 : i32
    return %arg0, %c0_i32, %c0_i32_0 : i32, i32, i32
  }
  func.func @transform_3(%arg0: i32) -> (i32, i32) {
    %c0_i32 = arith.constant 0 : i32
    %c0_i32_0 = arith.constant 0 : i32
    %c0_i32_1 = arith.constant 0 : i32
    return %c0_i32, %c0_i32_0 : i32, i32
  }
  func.func @transform_4(%arg0: i32) -> (i32, i32) {
    %c0_i32 = arith.constant 0 : i32
    %c0_i32_0 = arith.constant 0 : i32
    %c0_i32_1 = arith.constant 0 : i32
    return %c0_i32, %c0_i32_0 : i32, i32
  }
  func.func @transform_5(%arg0: i32) -> (i32, i32) {
    %c0_i32 = arith.constant 0 : i32
    %c0_i32_0 = arith.constant 0 : i32
    %c0_i32_1 = arith.constant 0 : i32
    return %c0_i32, %c0_i32_0 : i32, i32
  }
  func.func @transform_6(%arg0: i32) -> (i32, i32) {
    %c0_i32 = arith.constant 0 : i32
    %c0_i32_0 = arith.constant 0 : i32
    %c0_i32_1 = arith.constant 0 : i32
    return %c0_i32, %c0_i32_0 : i32, i32
  }
  func.func @transform_7(%arg0: i32) -> (i32, i32) {
    %c0_i32 = arith.constant 0 : i32
    %c0_i32_0 = arith.constant 0 : i32
    %c0_i32_1 = arith.constant 0 : i32
    return %c0_i32, %c0_i32_0 : i32, i32
  }
  func.func @transform_8(%arg0: i32) -> (i32, i32) {
    %c0_i32 = arith.constant 0 : i32
    %c0_i32_0 = arith.constant 0 : i32
    %c0_i32_1 = arith.constant 0 : i32
    return %c0_i32, %c0_i32_0 : i32, i32
  }
  func.func @transform_9(%arg0: i32) -> (i32, i32, i32) {
    %c0_i32 = arith.constant 0 : i32
    %c0_i32_0 = arith.constant 0 : i32
    %c0_i32_1 = arith.constant 0 : i32
    return %arg0, %c0_i32, %c0_i32_0 : i32, i32, i32
  }
}

module attributes {stable_mosaic.version = 11 : i64} {
  func.func @_ff_kernel(%arg0: i32, %arg1: memref<16x32xf32, #tpu.memory_space<vmem>>, %arg2: memref<1x32xf32, #tpu.memory_space<vmem>>, %arg3: memref<1x32xf32, #tpu.memory_space<vmem>>, %arg4: memref<32x128xbf16, #tpu.memory_space<vmem>>, %arg5: memref<1x128xf32, #tpu.memory_space<vmem>>, %arg6: memref<128x32xbf16, #tpu.memory_space<vmem>>, %arg7: memref<1x32xf32, #tpu.memory_space<vmem>>, %arg8: memref<16x32xf32, #tpu.memory_space<vmem>>) attributes {dimension_semantics = [#tpu.dimension_semantics<parallel>], iteration_bounds = array<i64: 1>, scalar_prefetch = 0 : i64, scratch_operands = 0 : i64, tpu.core_type = #tpu.core_type<tc>, window_params = [{transform_indices = @transform_0, window_bounds = array<i64: 16, 32>}, {pipeline_mode = #tpu.pipeline_mode<synchronous>, transform_indices = @transform_1, window_bounds = array<i64: 1, 32>}, {pipeline_mode = #tpu.pipeline_mode<synchronous>, transform_indices = @transform_2, window_bounds = array<i64: 1, 32>}, {pipeline_mode = #tpu.pipeline_mode<synchronous>, transform_indices = @transform_3, window_bounds = array<i64: 32, 128>}, {pipeline_mode = #tpu.pipeline_mode<synchronous>, transform_indices = @transform_4, window_bounds = array<i64: 1, 128>}, {pipeline_mode = #tpu.pipeline_mode<synchronous>, transform_indices = @transform_5, window_bounds = array<i64: 128, 32>}, {pipeline_mode = #tpu.pipeline_mode<synchronous>, transform_indices = @transform_6, window_bounds = array<i64: 1, 32>}, {transform_indices = @transform_7, window_bounds = array<i64: 16, 32>}]} {
    %c0 = arith.constant 0 : index
    %c0_0 = arith.constant 0 : index
    %0 = vector.load %arg1[%c0, %c0_0] : memref<16x32xf32, #tpu.memory_space<vmem>>, vector<16x32xf32>
    %c0_1 = arith.constant 0 : index
    %c0_2 = arith.constant 0 : index
    %1 = vector.load %arg2[%c0_1, %c0_2] : memref<1x32xf32, #tpu.memory_space<vmem>>, vector<1x32xf32>
    %c0_3 = arith.constant 0 : index
    %c0_4 = arith.constant 0 : index
    %2 = vector.load %arg3[%c0_3, %c0_4] : memref<1x32xf32, #tpu.memory_space<vmem>>, vector<1x32xf32>
    %cst = arith.constant dense<0.000000e+00> : vector<16xf32>
    %3 = vector.multi_reduction <add>, %0, %cst [1] : vector<16x32xf32> to vector<16xf32>
    %4 = vector.shape_cast %3 : vector<16xf32> to vector<16x1xf32>
    %cst_5 = arith.constant 3.200000e+01 : f32
    %5 = vector.broadcast %cst_5 : f32 to vector<16x1xf32>
    %6 = arith.divf %4, %5 : vector<16x1xf32>
    %7 = vector.broadcast %6 : vector<16x1xf32> to vector<16x32xf32>
    %8 = arith.subf %0, %7 : vector<16x32xf32>
    %9 = arith.mulf %8, %8 : vector<16x32xf32>
    %cst_6 = arith.constant dense<0.000000e+00> : vector<16xf32>
    %10 = vector.multi_reduction <add>, %9, %cst_6 [1] : vector<16x32xf32> to vector<16xf32>
    %11 = vector.shape_cast %10 : vector<16xf32> to vector<16x1xf32>
    %cst_7 = arith.constant 3.100000e+01 : f32
    %12 = vector.broadcast %cst_7 : f32 to vector<16x1xf32>
    %13 = arith.divf %11, %12 : vector<16x1xf32>
    %14 = vector.broadcast %6 : vector<16x1xf32> to vector<16x32xf32>
    %15 = arith.subf %0, %14 : vector<16x32xf32>
    %16 = vector.broadcast %1 : vector<1x32xf32> to vector<16x32xf32>
    %17 = arith.mulf %16, %15 : vector<16x32xf32>
    %18 = math.sqrt %13 : vector<16x1xf32>
    %cst_8 = arith.constant 9.99999997E-7 : f32
    %19 = vector.broadcast %cst_8 : f32 to vector<16x1xf32>
    %20 = arith.addf %18, %19 : vector<16x1xf32>
    %21 = vector.broadcast %20 : vector<16x1xf32> to vector<16x32xf32>
    %22 = arith.divf %17, %21 : vector<16x32xf32>
    %23 = vector.broadcast %2 : vector<1x32xf32> to vector<16x32xf32>
    %24 = arith.addf %22, %23 : vector<16x32xf32>
    %25 = arith.truncf %24 : vector<16x32xf32> to vector<16x32xbf16>
    %c0_9 = arith.constant 0 : index
    %c0_10 = arith.constant 0 : index
    %26 = vector.load %arg4[%c0_9, %c0_10] : memref<32x128xbf16, #tpu.memory_space<vmem>>, vector<32x128xbf16>
    %cst_11 = arith.constant dense<0.000000e+00> : vector<16x128xf32>
    %27 = tpu.matmul %25, %26, %cst_11 {dimension_numbers = #tpu.dot_dimension_numbers<[1], [0], [0], [1], [0, 0, 1, 1], [], []>} : vector<16x32xbf16>, vector<32x128xbf16>, vector<16x128xf32> -> vector<16x128xf32>
    %c0_12 = arith.constant 0 : index
    %c0_13 = arith.constant 0 : index
    %28 = vector.load %arg5[%c0_12, %c0_13] : memref<1x128xf32, #tpu.memory_space<vmem>>, vector<1x128xf32>
    %29 = vector.broadcast %28 : vector<1x128xf32> to vector<16x128xf32>
    %30 = arith.addf %27, %29 : vector<16x128xf32>
    %cst_14 = arith.constant 0.000000e+00 : f32
    %31 = vector.broadcast %cst_14 : f32 to vector<16x128xf32>
    %32 = arith.maximumf %30, %31 : vector<16x128xf32>
    %33 = arith.truncf %32 : vector<16x128xf32> to vector<16x128xbf16>
    %c0_15 = arith.constant 0 : index
    %c0_16 = arith.constant 0 : index
    %34 = vector.load %arg6[%c0_15, %c0_16] : memref<128x32xbf16, #tpu.memory_space<vmem>>, vector<128x32xbf16>
    %cst_17 = arith.constant dense<0.000000e+00> : vector<16x32xf32>
    %35 = tpu.matmul %33, %34, %cst_17 {dimension_numbers = #tpu.dot_dimension_numbers<[1], [0], [0], [1], [0, 0, 1, 1], [], []>} : vector<16x128xbf16>, vector<128x32xbf16>, vector<16x32xf32> -> vector<16x32xf32>
    %c0_18 = arith.constant 0 : index
    %c0_19 = arith.constant 0 : index
    %36 = vector.load %arg7[%c0_18, %c0_19] : memref<1x32xf32, #tpu.memory_space<vmem>>, vector<1x32xf32>
    %37 = vector.broadcast %36 : vector<1x32xf32> to vector<16x32xf32>
    %38 = arith.addf %35, %37 : vector<16x32xf32>
    %39 = arith.addf %0, %38 : vector<16x32xf32>
    %c0_20 = arith.constant 0 : index
    %c0_21 = arith.constant 0 : index
    %40 = vector.load %arg8[%c0_20, %c0_21] : memref<16x32xf32, #tpu.memory_space<vmem>>, vector<16x32xf32>
    tpu.vector_store %arg8[%c0_20, %c0_21], %39 {strides = array<i32>} : memref<16x32xf32, #tpu.memory_space<vmem>>, vector<16x32xf32>,
    return
  }
  func.func @transform_0(%arg0: i32) -> (i32, i32) {
    %c0_i32 = arith.constant 0 : i32
    %c0_i32_0 = arith.constant 0 : i32
    return %arg0, %c0_i32 : i32, i32
  }
  func.func @transform_1(%arg0: i32) -> (i32, i32) {
    %c0_i32 = arith.constant 0 : i32
    %c0_i32_0 = arith.constant 0 : i32
    %c0_i32_1 = arith.constant 0 : i32
    return %c0_i32, %c0_i32_0 : i32, i32
  }
  func.func @transform_2(%arg0: i32) -> (i32, i32) {
    %c0_i32 = arith.constant 0 : i32
    %c0_i32_0 = arith.constant 0 : i32
    %c0_i32_1 = arith.constant 0 : i32
    return %c0_i32, %c0_i32_0 : i32, i32
  }
  func.func @transform_3(%arg0: i32) -> (i32, i32) {
    %c0_i32 = arith.constant 0 : i32
    %c0_i32_0 = arith.constant 0 : i32
    %c0_i32_1 = arith.constant 0 : i32
    return %c0_i32, %c0_i32_0 : i32, i32
  }
  func.func @transform_4(%arg0: i32) -> (i32, i32) {
    %c0_i32 = arith.constant 0 : i32
    %c0_i32_0 = arith.constant 0 : i32
    %c0_i32_1 = arith.constant 0 : i32
    return %c0_i32, %c0_i32_0 : i32, i32
  }
  func.func @transform_5(%arg0: i32) -> (i32, i32) {
    %c0_i32 = arith.constant 0 : i32
    %c0_i32_0 = arith.constant 0 : i32
    %c0_i32_1 = arith.constant 0 : i32
    return %c0_i32, %c0_i32_0 : i32, i32
  }
  func.func @transform_6(%arg0: i32) -> (i32, i32) {
    %c0_i32 = arith.constant 0 : i32
    %c0_i32_0 = arith.constant 0 : i32
    %c0_i32_1 = arith.constant 0 : i32
    return %c0_i32, %c0_i32_0 : i32, i32
  }
  func.func @transform_7(%arg0: i32) -> (i32, i32) {
    %c0_i32 = arith.constant 0 : i32
    %c0_i32_0 = arith.constant 0 : i32
    return %arg0, %c0_i32 : i32, i32
  }
}

module attributes {stable_mosaic.version = 11 : i64} {
  func.func @_norm_linear_kernel(%arg0: i32, %arg1: memref<16x32xf32, #tpu.memory_space<vmem>>, %arg2: memref<1x32xf32, #tpu.memory_space<vmem>>, %arg3: memref<1x32xf32, #tpu.memory_space<vmem>>, %arg4: memref<32x16xbf16, #tpu.memory_space<vmem>>, %arg5: memref<1x16xf32, #tpu.memory_space<vmem>>, %arg6: memref<16x16xf32, #tpu.memory_space<vmem>>) attributes {dimension_semantics = [#tpu.dimension_semantics<parallel>], iteration_bounds = array<i64: 1>, scalar_prefetch = 0 : i64, scratch_operands = 0 : i64, tpu.core_type = #tpu.core_type<tc>, window_params = [{transform_indices = @transform_0, window_bounds = array<i64: 16, 32>}, {pipeline_mode = #tpu.pipeline_mode<synchronous>, transform_indices = @transform_1, window_bounds = array<i64: 1, 32>}, {pipeline_mode = #tpu.pipeline_mode<synchronous>, transform_indices = @transform_2, window_bounds = array<i64: 1, 32>}, {pipeline_mode = #tpu.pipeline_mode<synchronous>, transform_indices = @transform_3, window_bounds = array<i64: 32, 16>}, {pipeline_mode = #tpu.pipeline_mode<synchronous>, transform_indices = @transform_4, window_bounds = array<i64: 1, 16>}, {transform_indices = @transform_5, window_bounds = array<i64: 16, 16>}]} {
    %c0 = arith.constant 0 : index
    %c0_0 = arith.constant 0 : index
    %0 = vector.load %arg1[%c0, %c0_0] : memref<16x32xf32, #tpu.memory_space<vmem>>, vector<16x32xf32>
    %c0_1 = arith.constant 0 : index
    %c0_2 = arith.constant 0 : index
    %1 = vector.load %arg2[%c0_1, %c0_2] : memref<1x32xf32, #tpu.memory_space<vmem>>, vector<1x32xf32>
    %c0_3 = arith.constant 0 : index
    %c0_4 = arith.constant 0 : index
    %2 = vector.load %arg3[%c0_3, %c0_4] : memref<1x32xf32, #tpu.memory_space<vmem>>, vector<1x32xf32>
    %cst = arith.constant dense<0.000000e+00> : vector<16xf32>
    %3 = vector.multi_reduction <add>, %0, %cst [1] : vector<16x32xf32> to vector<16xf32>
    %4 = vector.shape_cast %3 : vector<16xf32> to vector<16x1xf32>
    %cst_5 = arith.constant 3.200000e+01 : f32
    %5 = vector.broadcast %cst_5 : f32 to vector<16x1xf32>
    %6 = arith.divf %4, %5 : vector<16x1xf32>
    %7 = vector.broadcast %6 : vector<16x1xf32> to vector<16x32xf32>
    %8 = arith.subf %0, %7 : vector<16x32xf32>
    %9 = arith.mulf %8, %8 : vector<16x32xf32>
    %cst_6 = arith.constant dense<0.000000e+00> : vector<16xf32>
    %10 = vector.multi_reduction <add>, %9, %cst_6 [1] : vector<16x32xf32> to vector<16xf32>
    %11 = vector.shape_cast %10 : vector<16xf32> to vector<16x1xf32>
    %cst_7 = arith.constant 3.100000e+01 : f32
    %12 = vector.broadcast %cst_7 : f32 to vector<16x1xf32>
    %13 = arith.divf %11, %12 : vector<16x1xf32>
    %14 = vector.broadcast %6 : vector<16x1xf32> to vector<16x32xf32>
    %15 = arith.subf %0, %14 : vector<16x32xf32>
    %16 = vector.broadcast %1 : vector<1x32xf32> to vector<16x32xf32>
    %17 = arith.mulf %16, %15 : vector<16x32xf32>
    %18 = math.sqrt %13 : vector<16x1xf32>
    %cst_8 = arith.constant 9.99999997E-7 : f32
    %19 = vector.broadcast %cst_8 : f32 to vector<16x1xf32>
    %20 = arith.addf %18, %19 : vector<16x1xf32>
    %21 = vector.broadcast %20 : vector<16x1xf32> to vector<16x32xf32>
    %22 = arith.divf %17, %21 : vector<16x32xf32>
    %23 = vector.broadcast %2 : vector<1x32xf32> to vector<16x32xf32>
    %24 = arith.addf %22, %23 : vector<16x32xf32>
    %25 = arith.truncf %24 : vector<16x32xf32> to vector<16x32xbf16>
    %c0_9 = arith.constant 0 : index
    %c0_10 = arith.constant 0 : index
    %26 = vector.load %arg4[%c0_9, %c0_10] : memref<32x16xbf16, #tpu.memory_space<vmem>>, vector<32x16xbf16>
    %cst_11 = arith.constant dense<0.000000e+00> : vector<16x16xf32>
    %27 = tpu.matmul %25, %26, %cst_11 {dimension_numbers = #tpu.dot_dimension_numbers<[1], [0], [0], [1], [0, 0, 1, 1], [], []>} : vector<16x32xbf16>, vector<32x16xbf16>, vector<16x16xf32> -> vector<16x16xf32>
    %c0_12 = arith.constant 0 : index
    %c0_13 = arith.constant 0 : index
    %28 = vector.load %arg5[%c0_12, %c0_13] : memref<1x16xf32, #tpu.memory_space<vmem>>, vector<1x16xf32>
    %29 = vector.broadcast %28 : vector<1x16xf32> to vector<16x16xf32>
    %30 = arith.addf %27, %29 : vector<16x16xf32>
    %c0_14 = arith.constant 0 : index
    %c0_15 = arith.constant 0 : index
    %31 = vector.load %arg6[%c0_14, %c0_15] : memref<16x16xf32, #tpu.memory_space<vmem>>, vector<16x16xf32>
    tpu.vector_store %arg6[%c0_14, %c0_15], %30 {strides = array<i32>} : memref<16x16xf32, #tpu.memory_space<vmem>>, vector<16x16xf32>,
    return
  }
  func.func @transform_0(%arg0: i32) -> (i32, i32) {
    %c0_i32 = arith.constant 0 : i32
    %c0_i32_0 = arith.constant 0 : i32
    return %arg0, %c0_i32 : i32, i32
  }
  func.func @transform_1(%arg0: i32) -> (i32, i32) {
    %c0_i32 = arith.constant 0 : i32
    %c0_i32_0 = arith.constant 0 : i32
    %c0_i32_1 = arith.constant 0 : i32
    return %c0_i32, %c0_i32_0 : i32, i32
  }
  func.func @transform_2(%arg0: i32) -> (i32, i32) {
    %c0_i32 = arith.constant 0 : i32
    %c0_i32_0 = arith.constant 0 : i32
    %c0_i32_1 = arith.constant 0 : i32
    return %c0_i32, %c0_i32_0 : i32, i32
  }
  func.func @transform_3(%arg0: i32) -> (i32, i32) {
    %c0_i32 = arith.constant 0 : i32
    %c0_i32_0 = arith.constant 0 : i32
    %c0_i32_1 = arith.constant 0 : i32
    return %c0_i32, %c0_i32_0 : i32, i32
  }
  func.func @transform_4(%arg0: i32) -> (i32, i32) {
    %c0_i32 = arith.constant 0 : i32
    %c0_i32_0 = arith.constant 0 : i32
    %c0_i32_1 = arith.constant 0 : i32
    return %c0_i32, %c0_i32_0 : i32, i32
  }
  func.func @transform_5(%arg0: i32) -> (i32, i32) {
    %c0_i32 = arith.constant 0 : i32
    %c0_i32_0 = arith.constant 0 : i32
    return %arg0, %c0_i32 : i32, i32
  }
}

</mosaic_0001>

<bundles_post_ra>
// kernel: transform_model.16
= control target key start
LH: loop header
LB: loop body
LE: loop exit
PB: predicated region body
PF: predicated region fallthrough
CT: control target
= control target key end

     0   :  { %vm19_vm0 = vcmask 261120   ;;  %s174_s0 = inlined_call_operand.vmem [shape: f32[24,32], index: 0, kind: input, shape index: {}, may-alias: {0,3}]   ;;  %s175_s1 = inlined_call_operand.vmem [shape: f32[1,32], index: 1, kind: input, shape index: {}]   ;;  %s176_s2 = inlined_call_operand.vmem [shape: f32[1,32], index: 2, kind: input, shape index: {}]   ;;  %s177_s3 = inlined_call_operand.vmem [shape: f32[24,32], index: 3, kind: output, shape index: {}, may-alias: {0,3}]  }
   0x1   :  { %v14_v0 = vld [vmem:[%s174_s0] sm:$0xff]  ;;  %v16_v1 = vld [vmem:[%s174_s0 + $0x10] sm:$0xff]  ;;  %v15_v2 = vld [vmem:[%s174_s0 + $0x8] sm:$0xff] }
   0x2   :  { %v20_v3 = vsel %vm19_vm0, %v14_v0, 0.0  ;;  %v26_v4 = vsel %vm19_vm0, %v16_v1, 0.0  ;;  %v23_v5 = vsel %vm19_vm0, %v15_v2, 0.0  ;;  %v107_v45 = vld [vmem:[%s175_s1] ss:$0 sm:$0xff] }
   0x3   :  { %21 = vadd.xlane.f32.xlu0 %v20_v3  ;;  %27 = vadd.xlane.f32.xlu1 %v26_v4  ;;  %v108_v48 = vld [vmem:[%s176_s2] ss:$0 sm:$0xff] }
   0x7   :  { %24 = vadd.xlane.f32.xlu0 %v23_v5 }
  0x8c   :  { %v22_v6 = vpop.xlane.xlu0 %21  ;;  %v28_v7 = vpop.xlane.xlu1 %27 }
  0x8d   :  { %v30_v8 = vmul.f32 0.03125, %v22_v6  ;;  %v32_v9 = vmul.f32 0.03125, %v28_v7 }
  0x8f   :  { %v33_v10 = vsub.f32 %v14_v0, %v30_v8  ;;  %v35_v11 = vsub.f32 %v16_v1, %v32_v9 }
  0x90   :  { %v25_v12 = vpop.xlane.xlu0 %24 }
  0x91   :  { %v31_v13 = vmul.f32 0.03125, %v25_v12  ;;  %v36_v14 = vmul.f32 %v33_v10, %v33_v10  ;;  %v38_v15 = vmul.f32 %v35_v11, %v35_v11  ;;  %v58_v46 = vmul.f32 %v107_v45, %v33_v10 }
  0x92   :  { %v60_v50 = vmul.f32 %v107_v45, %v35_v11 }
  0x93   :  { %v34_v16 = vsub.f32 %v15_v2, %v31_v13  ;;  %v39_v17 = vsel %vm19_vm0, %v36_v14, 0.0  ;;  %v45_v18 = vsel %vm19_vm0, %v38_v15, 0.0 }
  0x94   :  { %40 = vadd.xlane.f32.xlu1 %v39_v17 }
  0x95   :  { %v37_v19 = vmul.f32 %v34_v16, %v34_v16  ;;  %v59_v53 = vmul.f32 %v107_v45, %v34_v16 }
  0x97   :  { %v42_v20 = vsel %vm19_vm0, %v37_v19, 0.0 }
  0x98   :  { %46 = vadd.xlane.f32.xlu1 %v45_v18  ;;  %43 = vadd.xlane.f32.xlu0 %v42_v20 }
 0x11d   :  { %v41_v21 = vpop.xlane.xlu1 %40 }
 0x11e   :  { %v49_v22 = vmul.f32 0.032258064, %v41_v21 }
 0x120   :  { %109 = vrsqrt.f32 %v49_v22  ;;  %vm63_vm1 = vcmp.eq.f32.partialorder %v49_v22, inf  ;;  %v66_v29 = vand.u32 2147483648, %v49_v22  ;;  %vm65_vm2 = vcmp.eq.f32.partialorder %v49_v22, 0.0 }
 0x121   :  { %v47_v23 = vpop.xlane.xlu1 %46  ;;  %v44_v24 = vpop.xlane.xlu0 %43 }
 0x122   :  { %v51_v25 = vmul.f32 0.032258064, %v47_v23  ;;  %v50_v26 = vmul.f32 0.032258064, %v44_v24 }
 0x124   :  { %111 = vrsqrt.f32 %v51_v25  ;;  %vm77_vm3 = vcmp.eq.f32.partialorder %v51_v25, inf  ;;  %vm79_vm4 = vcmp.eq.f32.partialorder %v51_v25, 0.0  ;;  %v80_v36 = vand.u32 2147483648, %v51_v25 }
 0x125   :  { %113 = vrsqrt.f32 %v50_v26  ;;  %vm70_vm5 = vcmp.eq.f32.partialorder %v50_v26, inf  ;;  %v73_v39 = vand.u32 2147483648, %v50_v26  ;;  %vm72_vm6 = vcmp.eq.f32.partialorder %v50_v26, 0.0 }
 0x12d   :  { %v110_v27 = vpop.eup %109 }
 0x12e   :  { %v62_v28 = vmul.f32 %v110_v27, %v49_v22 }
 0x130   :  { %v64_v30 = vsel %vm63_vm1, %v49_v22, %v62_v28 }
 0x131   :  { %v112_v31 = vpop.eup %111  ;;  %v67_v32 = vsel %vm65_vm2, %v66_v29, %v64_v30 }
 0x132   :  { %v114_v33 = vpop.eup %113  ;;  %v82_v34 = vadd.f32 1e-06, %v67_v32  ;;  %v76_v35 = vmul.f32 %v112_v31, %v51_v25 }
 0x133   :  { %v69_v37 = vmul.f32 %v114_v33, %v50_v26 }
 0x134   :  { %115 = vrcp.f32 %v82_v34  ;;  %v78_v38 = vsel %vm77_vm3, %v51_v25, %v76_v35 }
 0x135   :  { %v81_v40 = vsel %vm79_vm4, %v80_v36, %v78_v38  ;;  %v71_v41 = vsel %vm70_vm5, %v50_v26, %v69_v37 }
 0x136   :  { %v84_v42 = vadd.f32 1e-06, %v81_v40  ;;  %v74_v43 = vsel %vm72_vm6, %v73_v39, %v71_v41 }
 0x137   :  { %v83_v44 = vadd.f32 1e-06, %v74_v43 }
 0x138   :  { %117 = vrcp.f32 %v84_v42 }
 0x139   :  { %119 = vrcp.f32 %v83_v44 }
 0x141   :  { %v116_v47 = vpop.eup %115 }
 0x142   :  { %v86_v49 = vmul.f32 %v116_v47, %v58_v46 }
 0x144   :  { %v97_v51 = vadd.f32 %v108_v48, %v86_v49 }
 0x145   :  { %v118_v52 = vpop.eup %117 }
 0x146   :  { %v120_v54 = vpop.eup %119  ;;  %100 = vst.msk [vmem:[%s177_s3] sm:$0xff] %vm19_vm0, %v97_v51  ;;  %v90_v55 = vmul.f32 %v118_v52, %v60_v50 }
 0x147   :  { %v88_v56 = vmul.f32 %v120_v54, %v59_v53 }
 0x148   :  { %v99_v57 = vadd.f32 %v108_v48, %v90_v55 }
 0x149   :  { %v98_v58 = vadd.f32 %v108_v48, %v88_v56 }
 0x14a   :  { %102 = vst.msk [vmem:[%s177_s3 + $0x10] sm:$0xff] %vm19_vm0, %v99_v57 }
 0x14b   :  { %101 = vst.msk [vmem:[%s177_s3 + $0x8] sm:$0xff] %vm19_vm0, %v98_v58 }

// kernel: transform_model.13
= control target key start
LH: loop header
LB: loop body
LE: loop exit
PB: predicated region body
PF: predicated region fallthrough
CT: control target
= control target key end

     0   :  { %vm32_vm0 = vcmask 261120   ;;  %s547_s0 = inlined_call_operand.vmem [shape: f32[24,32], index: 0, kind: input, shape index: {}, may-alias: {0,7}]   ;;  %s548_s3 = inlined_call_operand.vmem [shape: bf16[32,128], index: 3, kind: input, shape index: {}]   ;;  %s549_s5 = inlined_call_operand.vmem [shape: bf16[128,32], index: 5, kind: input, shape index: {}]   ;;  %s550_s1 = inlined_call_operand.vmem [shape: f32[1,32], index: 1, kind: input, shape index: {}]   ;;  %s551_s2 = inlined_call_operand.vmem [shape: f32[1,32], index: 2, kind: input, shape index: {}]   ;;  %s552_s4 = inlined_call_operand.vmem [shape: f32[1,128], index: 4, kind: input, shape index: {}]   ;;  %s553_s6 = inlined_call_operand.vmem [shape: f32[1,32], index: 6, kind: input, shape index: {}]   ;;  %s554_s7 = inlined_call_operand.vmem [shape: f32[24,32], index: 7, kind: output, shape index: {}, may-alias: {0,7}]  }
   0x1   :  { %v449_v0 = vld [vmem:[%s547_s0] sm:$0xff]  ;;  %v454_v1 = vld [vmem:[%s547_s0 + $0x10] sm:$0xff]  ;;  %v459_v2 = vld [vmem:[%s547_s0 + $0x8] sm:$0xff] }
   0x2   :  { %v33_v3 = vsel %vm32_vm0, %v449_v0, 0.0  ;;  %v39_v4 = vsel %vm32_vm0, %v454_v1, 0.0  ;;  %v36_v5 = vsel %vm32_vm0, %v459_v2, 0.0  ;;  %v384_v21 = vld [vmem:[%s548_s3 + $0x8] sm:$0xff]   ;;  %v385_v22 = vld [vmem:[%s548_s3] sm:$0xff]   ;;  %v386_v23 = vld [vmem:[%s549_s5 + $0x38] sm:$0xff]  }
   0x3   :  { %34 = vadd.xlane.f32.xlu0 %v33_v3  ;;  %40 = vadd.xlane.f32.xlu1 %v39_v4  ;;  %v387_v24 = vld [vmem:[%s549_s5 + $0x30] sm:$0xff]   ;;  %v388_v25 = vld [vmem:[%s549_s5 + $0x28] sm:$0xff]   ;;  %v389_v26 = vld [vmem:[%s549_s5 + $0x20] sm:$0xff]  }
   0x4   :  { %356 = vmatprep.subr.bf16.mxu0 %v384_v21  ;;  %364 = vmatprep.subr.bf16.mxu1 %v386_v23  ;;  %v390_v27 = vld [vmem:[%s549_s5 + $0x18] sm:$0xff]   ;;  %v326_v52 = vld [vmem:[%s550_s1] ss:$0 sm:$0xff] }
   0x5   :  { %357 = vmatpush3.bf16.msra.mxu0 %v384_v21  ;;  %365 = vmatpush3.bf16.msra.mxu1 %v386_v23  ;;  %v327_v60 = vld [vmem:[%s551_s2] ss:$0 sm:$0xff] }
   0x6   :  { %358 = vmatprep.subr.bf16.mxu0 %v385_v22  ;;  %366 = vmatprep.subr.bf16.mxu1 %v387_v24  ;;  %v333_v23 = vld [vmem:[%s553_s6] ss:$0 sm:$0xff] }
   0x7   :  { %37 = vadd.xlane.f32.xlu0 %v36_v5 }
   0x9   :  { %359 = vmatpush3.bf16.msra.mxu0 %v385_v22  ;;  %367 = vmatpush3.bf16.msra.mxu1 %v387_v24 }
   0xa   :  { %368 = vmatprep.subr.bf16.mxu1 %v388_v25 }
   0xd   :  { %369 = vmatpush3.bf16.msra.mxu1 %v388_v25 }
   0xe   :  { %370 = vmatprep.subr.bf16.mxu1 %v389_v26 }
  0x11   :  { %371 = vmatpush3.bf16.msra.mxu1 %v389_v26 }
  0x12   :  { %372 = vmatprep.subr.bf16.mxu1 %v390_v27 }
  0x15   :  { %373 = vmatpush3.bf16.msra.mxu1 %v390_v27 }
  0x8c   :  { %v35_v6 = vpop.xlane.xlu0 %34  ;;  %v41_v7 = vpop.xlane.xlu1 %40 }
  0x8d   :  { %v43_v8 = vmul.f32 0.03125, %v35_v6  ;;  %v45_v9 = vmul.f32 0.03125, %v41_v7  ;;  %v391_v7 = vld [vmem:[%s549_s5 + $0x10] sm:$0xff]  }
  0x8e   :  { %374 = vmatprep.subr.bf16.mxu1 %v391_v7 }
  0x8f   :  { %v468_v10 = vsub.f32 %v449_v0, %v43_v8  ;;  %v471_v11 = vsub.f32 %v454_v1, %v45_v9  ;;  %375 = vmatpush3.bf16.msra.mxu1 %v391_v7  ;;  %v392_v8 = vld [vmem:[%s549_s5 + $0x8] sm:$0xff]   ;;  %v393_v9 = vld [vmem:[%s549_s5] sm:$0xff]  }
  0x90   :  { %v38_v12 = vpop.xlane.xlu0 %37  ;;  %376 = vmatprep.subr.bf16.mxu1 %v392_v8 }
  0x91   :  { %v44_v13 = vmul.f32 0.03125, %v38_v12  ;;  %v49_v14 = vmul.f32 %v468_v10, %v468_v10  ;;  %v51_v15 = vmul.f32 %v471_v11, %v471_v11  ;;  %v71_v54 = vmul.f32 %v326_v52, %v468_v10 }
  0x92   :  { %v73_v55 = vmul.f32 %v326_v52, %v471_v11  ;;  %v328_v11 = vld [vmem:[%s552_s4] ss:$0 sm:$0xff] }
  0x93   :  { %v478_v16 = vsub.f32 %v459_v2, %v44_v13  ;;  %v52_v17 = vsel %vm32_vm0, %v49_v14, 0.0  ;;  %v58_v18 = vsel %vm32_vm0, %v51_v15, 0.0  ;;  %377 = vmatpush3.bf16.msra.mxu1 %v392_v8 }
  0x94   :  { %53 = vadd.xlane.f32.xlu1 %v52_v17  ;;  %378 = vmatprep.subr.bf16.mxu1 %v393_v9 }
  0x95   :  { %v50_v19 = vmul.f32 %v478_v16, %v478_v16  ;;  %v72_v57 = vmul.f32 %v326_v52, %v478_v16 }
  0x97   :  { %v55_v20 = vsel %vm32_vm0, %v50_v19, 0.0  ;;  %379 = vmatpush3.bf16.msra.mxu1 %v393_v9 }
  0x98   :  { %59 = vadd.xlane.f32.xlu1 %v58_v18  ;;  %56 = vadd.xlane.f32.xlu0 %v55_v20 }
 0x11d   :  { %v54_v28 = vpop.xlane.xlu1 %53 }
 0x11e   :  { %v62_v29 = vmul.f32 0.032258064, %v54_v28 }
 0x120   :  { %394 = vrsqrt.f32 %v62_v29  ;;  %vm76_vm1 = vcmp.eq.f32.partialorder %v62_v29, inf  ;;  %v79_v36 = vand.u32 2147483648, %v62_v29  ;;  %vm78_vm2 = vcmp.eq.f32.partialorder %v62_v29, 0.0 }
 0x121   :  { %v60_v30 = vpop.xlane.xlu1 %59  ;;  %v57_v31 = vpop.xlane.xlu0 %56 }
 0x122   :  { %v64_v32 = vmul.f32 0.032258064, %v60_v30  ;;  %v63_v33 = vmul.f32 0.032258064, %v57_v31 }
 0x124   :  { %396 = vrsqrt.f32 %v64_v32  ;;  %vm90_vm3 = vcmp.eq.f32.partialorder %v64_v32, inf  ;;  %v93_v43 = vand.u32 2147483648, %v64_v32  ;;  %vm92_vm4 = vcmp.eq.f32.partialorder %v64_v32, 0.0 }
 0x125   :  { %398 = vrsqrt.f32 %v63_v33  ;;  %vm83_vm5 = vcmp.eq.f32.partialorder %v63_v33, inf  ;;  %v86_v46 = vand.u32 2147483648, %v63_v33  ;;  %vm85_vm6 = vcmp.eq.f32.partialorder %v63_v33, 0.0 }
 0x12d   :  { %v395_v34 = vpop.eup %394 }
 0x12e   :  { %v75_v35 = vmul.f32 %v395_v34, %v62_v29 }
 0x130   :  { %v77_v37 = vsel %vm76_vm1, %v62_v29, %v75_v35 }
 0x131   :  { %v397_v38 = vpop.eup %396  ;;  %v80_v39 = vsel %vm78_vm2, %v79_v36, %v77_v37 }
 0x132   :  { %v399_v40 = vpop.eup %398  ;;  %v89_v41 = vmul.f32 %v397_v38, %v64_v32  ;;  %v95_v42 = vadd.f32 1e-06, %v80_v39 }
 0x133   :  { %v82_v44 = vmul.f32 %v399_v40, %v63_v33 }
 0x134   :  { %v91_v45 = vsel %vm90_vm3, %v64_v32, %v89_v41  ;;  %400 = vrcp.f32 %v95_v42 }
 0x135   :  { %v94_v47 = vsel %vm92_vm4, %v93_v43, %v91_v45  ;;  %v84_v48 = vsel %vm83_vm5, %v63_v33, %v82_v44 }
 0x136   :  { %v97_v49 = vadd.f32 1e-06, %v94_v47  ;;  %v87_v50 = vsel %vm85_vm6, %v86_v46, %v84_v48 }
 0x137   :  { %v96_v51 = vadd.f32 1e-06, %v87_v50 }
 0x138   :  { %402 = vrcp.f32 %v97_v49 }
 0x139   :  { %404 = vrcp.f32 %v96_v51 }
 0x141   :  { %v401_v53 = vpop.eup %400 }
 0x142   :  { %v99_v58 = vmul.f32 %v401_v53, %v71_v54 }
 0x144   :  { %v110_v3 = vadd.f32 %v327_v60, %v99_v58 }
 0x145   :  { %v403_v56 = vpop.eup %402 }
 0x146   :  { %v405_v59 = vpop.eup %404  ;;  %v103_v61 = vmul.f32 %v403_v56, %v73_v55 }
 0x147   :  { %v101_v62 = vmul.f32 %v405_v59, %v72_v57 }
 0x148   :  { %v112_v63 = vadd.f32 %v327_v60, %v103_v61 }
 0x149   :  { %v111_v4 = vadd.f32 %v327_v60, %v101_v62 }
 0x14a   :  { %v114_v5 = vpack.c.bf16 %v112_v63, %v112_v63 }
 0x14b   :  { %v113_v6 = vpack.c.bf16 %v111_v4, %v110_v3 }
 0x14d   :  { %360 = vmatprep.mubr.msk.bf16.mxu0 %vm32_vm0, %v113_v6 }
 0x14e   :  { %361 = vmatmul.mubr.msk.bf16.vlgmr.msra.gmra.mxu0 %vm32_vm0, %v114_v5 }
 0x20e   :  { %v362_v10 = vpop.f32.mrf.mxu0 }
 0x20f   :  { %v187_v13 = vadd.f32 %v362_v10, %v328_v11 }
 0x210   :  { %v178_v12 = vpop.f32.mrf.mxu0 }
 0x211   :  { %v179_v15 = vadd.f32 %v328_v11, %v178_v12  ;;  %v194_v18 = vmax.f32 %v187_v13, 0.0 }
 0x212   :  { %v363_v14 = vpop.f32.mrf.mxu0 }
 0x213   :  { %v192_v19 = vmax.f32 %v179_v15, 0.0  ;;  %v196_v22 = vpack.c.bf16 %v194_v18, %v194_v18 }
 0x214   :  { %v181_v16 = vpop.f32.mrf.mxu0 }
 0x215   :  { %v182_v17 = vadd.f32 %v328_v11, %v181_v16 }
 0x217   :  { %v193_v20 = vmax.f32 %v182_v17, 0.0 }
 0x219   :  { %v195_v21 = vpack.c.bf16 %v193_v20, %v192_v19 }
 0x21b   :  { %380 = vmatprep.mubr.bf16.mxu1 %v195_v21 }
 0x21c   :  { %381 = vmatmul.mubr.bf16.vlgmr.msra.gmra.mxu1 %v196_v22 }
 0x2dc   :  { %v382_v24 = vpop.f32.mrf.mxu1 }
 0x2dd   :  { %v311_v25 = vadd.f32 %v382_v24, %v333_v23 }
 0x2de   :  { %v302_v26 = vpop.f32.mrf.mxu1 }
 0x2df   :  { %v318_v27 = vadd.f32 %v311_v25, %v454_v1  ;;  %v303_v28 = vadd.f32 %v333_v23, %v302_v26 }
 0x2e0   :  { %v383_v29 = vpop.f32.mrf.mxu1 }
 0x2e1   :  { %321 = vst.msk [vmem:[%s554_s7 + $0x10] sm:$0xff] %vm32_vm0, %v318_v27  ;;  %v316_v30 = vadd.f32 %v303_v28, %v449_v0 }
 0x2e2   :  { %v305_v31 = vpop.f32.mrf.mxu1 }
 0x2e3   :  { %319 = vst.msk [vmem:[%s554_s7] sm:$0xff] %vm32_vm0, %v316_v30  ;;  %v306_v32 = vadd.f32 %v333_v23, %v305_v31 }
 0x2e5   :  { %v317_v33 = vadd.f32 %v306_v32, %v459_v2 }
 0x2e7   :  { %320 = vst.msk [vmem:[%s554_s7 + $0x8] sm:$0xff] %vm32_vm0, %v317_v33 }

// kernel: transform_model.12
= control target key start
LH: loop header
LB: loop body
LE: loop exit
PB: predicated region body
PF: predicated region fallthrough
CT: control target
= control target key end

     0   :  { %s1518_s27 = smov 0   ;;  %s1717_s0 = inlined_call_operand.vmem [shape: f32[2,10,32], index: 0, kind: input, shape index: {}, may-alias: {0,8}]   ;;  %s1718_s1 = inlined_call_operand.vmem [shape: f32[2,1,10], index: 1, kind: input, shape index: {}]   ;;  %s1719_s2 = inlined_call_operand.vmem [shape: f32[1,32], index: 2, kind: input, shape index: {}]   ;;  %s1720_s3 = inlined_call_operand.vmem [shape: f32[1,32], index: 3, kind: input, shape index: {}]   ;;  %s1721_s4 = inlined_call_operand.vmem [shape: bf16[32,96], index: 4, kind: input, shape index: {}]   ;;  %s1722_s5 = inlined_call_operand.vmem [shape: f32[1,96], index: 5, kind: input, shape index: {}]   ;;  %s1723_s6 = inlined_call_operand.vmem [shape: bf16[32,32], index: 6, kind: input, shape index: {}]   ;;  %s1724_s7 = inlined_call_operand.vmem [shape: f32[1,32], index: 7, kind: input, shape index: {}]   ;;  %s1725_s8 = inlined_call_operand.vmem [shape: f32[2,10,32], index: 8, kind: output, shape index: {}, may-alias: {0,8}]  }
   0x1 LB: > { %s1249_s28 = sadd.s32 4294967295, %s1458_s27   ;;  %p1253_p0 = scmp.ge.s32.totalorder %s1458_s27, 1  ;;  %s1458_s27 = sphi %s1518_s27, %s18_s27  }
   0x2   : > { %p270_p1 = scmp.lt.s32.totalorder %s1458_s27, 3 }
   0x4   : > { %p271_p2 = pnand %p1253_p0, %p270_p1 }
   0x5   : > { %p307_p3 = scmp.lt.s32.totalorder (!%p271_p2), %s1249_s28, 1  ;;  %s1462_s21 = smov (!%p271_p2), 96  }
   0x6   : > { %274 = sbr.rel (%p271_p2) target bundleno = 3140 (0xc44), region = 52  ;;  %s1463_s22 = smov (!%p271_p2), 88  }
   0x7   : > { %s1464_s23 = smov (!%p271_p2), 120   ;;  %s1465_s30 = smov (!%p271_p2), 64  }
   0x8   : > { %s1466_s11 = smov (!%p271_p2), 80   ;;  %s1467_s12 = smov (!%p271_p2), 112  }
   0x9   : > { %s1468_s13 = smov (!%p271_p2), 56   ;;  %s1469_s16 = smov (!%p271_p2), 48  }
   0xa   : > { %s1470_s17 = smov (!%p271_p2), 104   ;;  %s1471_s20 = smov (!%p271_p2), 72  }
   0xb   : > { %s1727_s28 = smov (!%p307_p3, %s1249_s28), 1  ;;  %vm325_vm0 = vcmask 261120   ;;  %vm329_vm1 = vcmask 254976   ;;  %v1410_v14 = vld [vmem:[%s1721_s4 + $0x8] sm:$0xff]   ;;  %v1460_v15 = vmov 0.0   ;;  %vm1461_vm2 = vmmov 0  }
   0xc   : > { %s1280_s29 = sshll.u32 %s1727_s28, 4  ;;  %1309 = vmatprep.subr.bf16.mxu0 %v1460_v15  ;;  %1313 = vmatprep.mubr.msk.bf16.mxu0 %vm1461_vm2, %v1460_v15  ;;  %v1411_v16 = vld [vmem:[%s1721_s4] sm:$0xff]   ;;  %vm481_vm7 = vcmask 64512   ;;  %s314_s26 = scalar_lea.vmem %s1718_s1, %s1727_s28  ;;  %vm531_vm9 = vcmask 80896   ;;  %vm535_vm10 = vcmask 74752   ;;  %vm561_vm11 = vcmask 1044480  }
   0xd   : > { %s311_s10 = scalar_lea.vmem %s1717_s0, %s1280_s29  ;;  %1310 = vmatpush3.bf16.msra.mxu0 %v1410_v14  ;;  %1317 = vmatprep.subr.bf16.mxu1 %v1460_v15  ;;  %v1258_v33 = vld [vmem:[%s1719_s2] ss:$0 sm:$0xff]  ;;  %vm610_vm12 = vcmask 1043456   ;;  %s319_s9 = scalar_lea.vmem %s1725_s8, %s1280_s29 }
   0xe   : > { %v1534_v0 = vld [vmem:[%s311_s10] sm:$0xff]  ;;  %v1536_v1 = vld [vmem:[%s311_s10 + $0x8] sm:$0x3]  ;;  %1311 = vmatprep.subr.bf16.mxu0 %v1460_v15  ;;  %1319 = vmatprep.mubr.msk.bf16.mxu1 %vm1461_vm2, %v1460_v15 }
   0xf   : > { %v326_v2 = vsel %vm325_vm0, %v1534_v0, 0.0  ;;  %v330_v3 = vsel %vm329_vm1, %v1536_v1, 0.0  ;;  %v1259_v39 = vld [vmem:[%s1720_s3] ss:$0 sm:$0xff] }
  0x10   : > { %327 = vadd.xlane.f32.xlu0 %v326_v2  ;;  %v1260_v45 = vld [vmem:[%s1722_s5] ss:$0 sm:$0xff] }
  0x11   : > { %1312 = vmatpush3.bf16.msra.mxu0 %v1411_v16  ;;  %v1589_v57 = vld [vmem:[%s314_s26] ss:$0 sm:$0xff] }
  0x12   : > { %1323 = vmatprep.subr.bf16.mxu0 %v1460_v15  ;;  %vm460_vm8 = vcmp.eq.f32.partialorder %v1589_v57, 0.0 }
  0x14   : > { %331 = vadd.xlane.f32.xlu0 %v330_v3 }
  0x99   : > { %v328_v4 = vpop.xlane.xlu0 %327 }
  0x9a   : > { %v334_v5 = vmul.f32 0.03125, %v328_v4 }
  0x9c   : > { %v336_v6 = vsub.f32 %v1534_v0, %v334_v5 }
  0x9d   : > { %v332_v7 = vpop.xlane.xlu0 %331 }
  0x9e   : > { %v335_v8 = vmul.f32 0.03125, %v332_v7  ;;  %v338_v9 = vmul.f32 %v336_v6, %v336_v6  ;;  %v355_v35 = vmul.f32 %v1258_v33, %v336_v6 }
  0xa0   : > { %v337_v10 = vsub.f32 %v1536_v1, %v335_v8  ;;  %v340_v11 = vsel %vm325_vm0, %v338_v9, 0.0 }
  0xa1   : > { %341 = vadd.xlane.f32.xlu1 %v340_v11 }
  0xa2   : > { %v339_v12 = vmul.f32 %v337_v10, %v337_v10  ;;  %v356_v36 = vmul.f32 %v1258_v33, %v337_v10 }
  0xa4   : > { %v343_v13 = vsel %vm329_vm1, %v339_v12, 0.0 }
  0xa5   : > { %344 = vadd.xlane.f32.xlu1 %v343_v13 }
 0x12a   : > { %v342_v17 = vpop.xlane.xlu1 %341 }
 0x12b   : > { %v347_v18 = vmul.f32 0.032258064, %v342_v17 }
 0x12d   : > { %1412 = vrsqrt.f32 %v347_v18  ;;  %vm359_vm3 = vcmp.eq.f32.partialorder %v347_v18, inf  ;;  %v362_v23 = vand.u32 2147483648, %v347_v18  ;;  %vm361_vm4 = vcmp.eq.f32.partialorder %v347_v18, 0.0 }
 0x12e   : > { %v345_v19 = vpop.xlane.xlu1 %344 }
 0x12f   : > { %v348_v20 = vmul.f32 0.032258064, %v345_v19 }
 0x131   : > { %1414 = vrsqrt.f32 %v348_v20  ;;  %vm366_vm5 = vcmp.eq.f32.partialorder %v348_v20, inf  ;;  %v369_v29 = vand.u32 2147483648, %v348_v20  ;;  %vm368_vm6 = vcmp.eq.f32.partialorder %v348_v20, 0.0 }
 0x13a   : > { %v1413_v21 = vpop.eup %1412 }
 0x13b   : > { %v358_v22 = vmul.f32 %v1413_v21, %v347_v18 }
 0x13d   : > { %v360_v24 = vsel %vm359_vm3, %v347_v18, %v358_v22 }
 0x13e   : > { %v1415_v25 = vpop.eup %1414  ;;  %v363_v26 = vsel %vm361_vm4, %v362_v23, %v360_v24 }
 0x13f   : > { %v371_v27 = vadd.f32 1e-06, %v363_v26  ;;  %v365_v28 = vmul.f32 %v1415_v25, %v348_v20 }
 0x141   : > { %1416 = vrcp.f32 %v371_v27  ;;  %v367_v30 = vsel %vm366_vm5, %v348_v20, %v365_v28  ;;  %v465_v27 = vld [vmem:[%s1723_s6] sm:$0xf] }
 0x142   : > { %v370_v31 = vsel %vm368_vm6, %v369_v29, %v367_v30  ;;  %v612_v28 = vsel %vm610_vm12, %v465_v27, 0 }
 0x143   : > { %v372_v32 = vadd.f32 1e-06, %v370_v31 }
 0x145   : > { %1418 = vrcp.f32 %v372_v32 }
 0x14e   : > { %v1417_v34 = vpop.eup %1416 }
 0x14f   : > { %v374_v37 = vmul.f32 %v1417_v34, %v355_v35 }
 0x151   : > { %v383_v41 = vadd.f32 %v1259_v39, %v374_v37 }
 0x152   : > { %v1419_v38 = vpop.eup %1418 }
 0x153   : > { %v376_v40 = vmul.f32 %v1419_v38, %v356_v36 }
 0x155   : > { %v384_v42 = vadd.f32 %v1259_v39, %v376_v40 }
 0x157   : > { %v385_v43 = vpack.c.bf16 %v384_v42, %v383_v41 }
 0x159   : > { %1314 = vmatmul.mubr.msk.bf16.vlgmr.msra.gmra.mxu0 %vm325_vm0, %v385_v43 }
 0x15a   : > { %1325 = vmatprep.mubr.msk.bf16.mxu0 %vm1461_vm2, %v1460_v15 }
 0x219   : > { %v446_v44 = vpop.f32.mrf.mxu0 }
 0x21a   : > { %v447_v48 = vadd.f32 %v1260_v45, %v446_v44 }
 0x21b   : > { %v1315_v46 = vpop.f32.mrf.mxu0 }
 0x21c   : > { %v461_v53 = vmul.f32 0.35355338, %v447_v48 }
 0x21d   : > { %v449_v47 = vpop.f32.mrf.mxu0 }
 0x21e   : > { %v450_v49 = vadd.f32 %v1260_v45, %v449_v47 }
 0x21f   : > { %v1316_v50 = vpop.f32.mrf.mxu0 }
 0x220   : > { %v1572_v51 = vpack.c.bf16 %v450_v49, %v447_v48  ;;  %v462_v52 = vmul.f32 0.35355338, %v450_v49 }
 0x222   : > { %479 = vrot.lane.b32.xlu0 %v1572_v51, %s1462_s21  ;;  %v1576_v54 = vpack.c.bf16 %v462_v52, %v461_v53 }
 0x226   : > { %660 = vrot.lane.b32.xlu0 %v1572_v51, %s1463_s22 }
 0x22a   : > { %658 = vrot.lane.b32.xlu0 %v1576_v54, %s1464_s23  ;;  %s1472_s23 = smov 40  }
 0x294   : > { %v480_v55 = vpop.permute.xlu0 %479 }
 0x295   : > { %v486_v56 = vsel %vm481_vm7, %v480_v55, 0 }
 0x296   : > { %1318 = vmatpush3.bf16.xpose.msra.mxu1 %v486_v56 }
 0x297   : > { %1329 = vmatprep.subr.bf16.mxu1 %v1460_v15 }
 0x298   : > { %v661_v23 = vpop.permute.xlu0 %660 }
 0x299   : > { %v666_v25 = vsel %vm481_vm7, %v661_v23, 0 }
 0x29c   : > { %v659_v26 = vpop.permute.xlu0 %658 }
 0x29d   : > { %1320 = vmatmul.mubr.msk.bf16.vlgmr.msra.gmra.mxu1 %vm481_vm7, %v1576_v54 }
 0x29e   : > { %1331 = vmatprep.mubr.msk.bf16.mxu1 %vm1461_vm2, %v1460_v15  ;;  %1330 = vmatpush3.bf16.msra.mxu1 %v612_v28 }
 0x29f   : > { %1341 = vmatprep.subr.bf16.mxu1 %v1460_v15 }
 0x35d   : > { %v522_v58 = vpop.f32.mrf.mxu1 }
 0x35e   : > { %v529_v59 = vsel %vm460_vm8, -1e+09, %v522_v58 }
 0x35f   : > { %v1321_v60 = vpop.f32.mrf.mxu1  ;;  %v532_v61 = vsel %vm531_vm9, %v529_v59, -inf }
 0x360   : > { %533 = vmax.xlane.f32.xlu1 %v532_v61 }
 0x361   : > { %v525_v62 = vpop.f32.mrf.mxu1 }
 0x362   : > { %v530_v63 = vsel %vm460_vm8, -1e+09, %v525_v62 }
 0x363   : > { %v1322_v2 = vpop.f32.mrf.mxu1  ;;  %v536_v3 = vsel %vm535_vm10, %v530_v63, -inf }
 0x364   : > { %537 = vmax.xlane.f32.xlu1 %v536_v3 }
 0x3e9   : > { %v534_v4 = vpop.xlane.xlu1 %533 }
 0x3ea   : > { %v539_v5 = vsub.f32 %v529_v59, %v534_v4 }
 0x3ec   : > { %v541_v6 = vmul.f32 1.442695, %v539_v5 }
 0x3ed   : > { %v538_v7 = vpop.xlane.xlu1 %537 }
 0x3ee   : > { %1420 = vpow2.f32 %v541_v6  ;;  %v540_v8 = vsub.f32 %v530_v63, %v538_v7 }
 0x3f0   : > { %v543_v9 = vmul.f32 1.442695, %v540_v8 }
 0x3f2   : > { %1422 = vpow2.f32 %v543_v9  ;;  %v466_v9 = vld [vmem:[%s1723_s6 + $0x4] sm:$0xf] }
 0x3fb   : > { %v1421_v10 = vpop.eup %1420 }
 0x3fc   : > { %v545_v11 = vsel %vm531_vm9, %v1421_v10, 0.0 }
 0x3fd   : > { %546 = vadd.xlane.f32.xlu1 %v545_v11 }
 0x3ff   : > { %v1423_v12 = vpop.eup %1422 }
 0x400   : > { %v548_v13 = vsel %vm535_vm10, %v1423_v12, 0.0 }
 0x401   : > { %549 = vadd.xlane.f32.xlu1 %v548_v13 }
 0x412   : > { %556 = vrot.lane.b32.xlu1 %v1572_v51, %s1465_s30 }
 0x486   : > { %v547_v14 = vpop.xlane.xlu1 %546 }
 0x487   : > { %1424 = vrcp.f32 %v547_v14 }
 0x48a   : > { %v550_v16 = vpop.xlane.xlu1 %549 }
 0x48b   : > { %1426 = vrcp.f32 %v550_v16 }
 0x48e   : > { %v557_v17 = vpop.permute.xlu1 %556 }
 0x48f   : > { %v563_v18 = vsel %vm561_vm11, %v557_v17, 0 }
 0x490   : > { %1324 = vmatpush3.bf16.msra.mxu0 %v563_v18 }
 0x491   : > { %1335 = vmatprep.subr.bf16.mxu0 %v1460_v15 }
 0x494   : > { %v1425_v19 = vpop.eup %1424 }
 0x495   : > { %v553_v21 = vmul.f32 %v1425_v19, %v1421_v10  ;;  %v788_v10 = vsel %vm610_vm12, %v466_v9, 0 }
 0x498   : > { %v1427_v20 = vpop.eup %1426 }
 0x499   : > { %v554_v22 = vmul.f32 %v1427_v20, %v1423_v12 }
 0x49b   : > { %v555_v24 = vpack.c.bf16 %v554_v22, %v553_v21 }
 0x49d   : > { %1326 = vmatmul.mubr.msk.bf16.vlgmr.msra.gmra.mxu0 %vm531_vm9, %v555_v24 }
 0x49e   : > { %1336 = vmatpush3.bf16.xpose.msra.mxu0 %v666_v25  ;;  %1337 = vmatprep.mubr.msk.bf16.mxu0 %vm1461_vm2, %v1460_v15 }
 0x49f   : > { %1347 = vmatprep.subr.bf16.mxu0 %v1460_v15 }
 0x4a5   : > { %1338 = vmatmul.mubr.msk.bf16.vlgmr.msra.gmra.mxu0 %vm481_vm7, %v659_v26 }
 0x4a6   : > { %1349 = vmatprep.mubr.msk.bf16.mxu0 %vm1461_vm2, %v1460_v15  ;;  %1348 = vmatpush3.bf16.msra.mxu0 %v788_v10 }
 0x4a7   : > { %1359 = vmatprep.subr.bf16.mxu0 %v1460_v15 }
 0x55d   : > { %v599_v29 = vpop.f32.mrf.mxu0 }
 0x55f   : > { %v1327_v30 = vpop.f32.mrf.mxu0 }
 0x561   : > { %v602_v31 = vpop.f32.mrf.mxu0 }
 0x562   : > { %v606_v32 = vpack.c.bf16 %v602_v31, %v599_v29 }
 0x563   : > { %v1328_v33 = vpop.f32.mrf.mxu0 }
 0x564   : > { %1332 = vmatmul.mubr.msk.bf16.vlgmr.msra.gmra.mxu1 %vm481_vm7, %v606_v32 }
 0x565   : > { %v702_v34 = vpop.f32.mrf.mxu0  ;;  %1343 = vmatprep.mubr.msk.bf16.mxu1 %vm1461_vm2, %v1460_v15 }
 0x566   : > { %v709_v35 = vsel %vm460_vm8, -1e+09, %v702_v34 }
 0x567   : > { %v1339_v36 = vpop.f32.mrf.mxu0  ;;  %v711_v37 = vsel %vm531_vm9, %v709_v35, -inf }
 0x568   : > { %712 = vmax.xlane.f32.xlu0 %v711_v37  ;;  %v1265_v36 = vld [vmem:[%s1724_s7] ss:$0 sm:$0xff] }
 0x569   : > { %v705_v38 = vpop.f32.mrf.mxu0  ;;  %v476_v37 = vadd.f32 %v1265_v36, %v1534_v0 }
 0x56a   : > { %v710_v39 = vsel %vm460_vm8, -1e+09, %v705_v38 }
 0x56b   : > { %v1340_v40 = vpop.f32.mrf.mxu0  ;;  %v714_v41 = vsel %vm535_vm10, %v710_v39, -inf }
 0x56c   : > { %715 = vmax.xlane.f32.xlu1 %v714_v41 }
 0x57d   : > { %835 = vrot.lane.b32.xlu1 %v1572_v51, %s1466_s11 }
 0x581   : > { %833 = vrot.lane.b32.xlu1 %v1576_v54, %s1467_s12 }
 0x5f1   : > { %v713_v42 = vpop.xlane.xlu0 %712 }
 0x5f2   : > { %v717_v43 = vsub.f32 %v709_v35, %v713_v42 }
 0x5f4   : > { %v719_v44 = vmul.f32 1.442695, %v717_v43 }
 0x5f5   : > { %v716_v45 = vpop.xlane.xlu1 %715 }
 0x5f6   : > { %1428 = vpow2.f32 %v719_v44  ;;  %v718_v46 = vsub.f32 %v710_v39, %v716_v45  ;;  %v477_v39 = vadd.f32 %v1265_v36, %v1536_v1 }
 0x5f8   : > { %v721_v47 = vmul.f32 1.442695, %v718_v46 }
 0x5f9   : > { %v836_v5 = vpop.permute.xlu1 %835 }
 0x5fa   : > { %1430 = vpow2.f32 %v721_v47  ;;  %v841_v7 = vsel %vm481_vm7, %v836_v5, 0 }
 0x5fd   : > { %v834_v8 = vpop.permute.xlu1 %833 }
 0x603   : > { %v1429_v48 = vpop.eup %1428 }
 0x604   : > { %v723_v49 = vsel %vm531_vm9, %v1429_v48, 0.0 }
 0x605   : > { %724 = vadd.xlane.f32.xlu0 %v723_v49 }
 0x607   : > { %v1431_v50 = vpop.eup %1430 }
 0x608   : > { %v726_v52 = vsel %vm535_vm10, %v1431_v50, 0.0 }
 0x609   : > { %727 = vadd.xlane.f32.xlu0 %v726_v52 }
 0x61f   : > { %734 = vrot.lane.b32.xlu0 %v1572_v51, %s1468_s13 }
 0x624   : > { %v1630_v53 = vpop.f32.mrf.mxu1 }
 0x625   : > { %v655_v38 = vadd.f32 %v1630_v53, %v476_v37 }
 0x626   : > { %v1333_v55 = vpop.f32.mrf.mxu1 }
 0x628   : > { %v1632_v56 = vpop.f32.mrf.mxu1 }
 0x629   : > { %v656_v43 = vadd.f32 %v1632_v56, %v477_v39 }
 0x62a   : > { %v1334_v58 = vpop.f32.mrf.mxu1 }
 0x62b   : > { %v467_v58 = vld [vmem:[%s1723_s6 + $0x8] sm:$0xf] }
 0x68e   : > { %v725_v59 = vpop.xlane.xlu0 %724 }
 0x68f   : > { %1432 = vrcp.f32 %v725_v59  ;;  %v963_v59 = vsel %vm610_vm12, %v467_v58, 0 }
 0x692   : > { %v728_v60 = vpop.xlane.xlu0 %727 }
 0x693   : > { %1434 = vrcp.f32 %v728_v60 }
 0x696   : > { %v735_v61 = vpop.permute.xlu0 %734 }
 0x697   : > { %v740_v62 = vsel %vm561_vm11, %v735_v61, 0 }
 0x698   : > { %1342 = vmatpush3.bf16.msra.mxu1 %v740_v62 }
 0x699   : > { %1353 = vmatprep.subr.bf16.mxu1 %v1460_v15 }
 0x69c   : > { %v1433_v63 = vpop.eup %1432 }
 0x69d   : > { %v731_v3 = vmul.f32 %v1433_v63, %v1429_v48 }
 0x6a0   : > { %v1435_v2 = vpop.eup %1434 }
 0x6a1   : > { %v732_v4 = vmul.f32 %v1435_v2, %v1431_v50 }
 0x6a3   : > { %v733_v6 = vpack.c.bf16 %v732_v4, %v731_v3 }
 0x6a5   : > { %1344 = vmatmul.mubr.msk.bf16.vlgmr.msra.gmra.mxu1 %vm531_vm9, %v733_v6 }
 0x6a6   : > { %1354 = vmatpush3.bf16.xpose.msra.mxu1 %v841_v7  ;;  %1355 = vmatprep.mubr.msk.bf16.mxu1 %vm1461_vm2, %v1460_v15 }
 0x6a7   : > { %1365 = vmatprep.subr.bf16.mxu1 %v1460_v15 }
 0x6ad   : > { %1356 = vmatmul.mubr.msk.bf16.vlgmr.msra.gmra.mxu1 %vm481_vm7, %v834_v8 }
 0x6ae   : > { %1367 = vmatprep.mubr.msk.bf16.mxu1 %vm1461_vm2, %v1460_v15  ;;  %1366 = vmatpush3.bf16.msra.mxu1 %v963_v59 }
 0x6af   : > { %1377 = vmatprep.subr.bf16.mxu1 %v1460_v15 }
 0x765   : > { %v776_v11 = vpop.f32.mrf.mxu1 }
 0x767   : > { %v1345_v12 = vpop.f32.mrf.mxu1 }
 0x769   : > { %v779_v13 = vpop.f32.mrf.mxu1 }
 0x76a   : > { %v783_v14 = vpack.c.bf16 %v779_v13, %v776_v11 }
 0x76b   : > { %v1346_v16 = vpop.f32.mrf.mxu1 }
 0x76c   : > { %1350 = vmatmul.mubr.msk.bf16.vlgmr.msra.gmra.mxu0 %vm481_vm7, %v783_v14 }
 0x76d   : > { %v877_v17 = vpop.f32.mrf.mxu1  ;;  %1361 = vmatprep.mubr.msk.bf16.mxu0 %vm1461_vm2, %v1460_v15 }
 0x76e   : > { %v884_v18 = vsel %vm460_vm8, -1e+09, %v877_v17 }
 0x76f   : > { %v1357_v19 = vpop.f32.mrf.mxu1  ;;  %v886_v20 = vsel %vm531_vm9, %v884_v18, -inf }
 0x770   : > { %887 = vmax.xlane.f32.xlu1 %v886_v20 }
 0x771   : > { %v880_v21 = vpop.f32.mrf.mxu1 }
 0x772   : > { %v885_v22 = vsel %vm460_vm8, -1e+09, %v880_v21 }
 0x773   : > { %v1358_v23 = vpop.f32.mrf.mxu1  ;;  %v889_v24 = vsel %vm535_vm10, %v885_v22, -inf }
 0x774   : > { %890 = vmax.xlane.f32.xlu0 %v889_v24 }
 0x781   : > { %909 = vrot.lane.b32.xlu1 %v1572_v51, %s1469_s16 }
 0x785   : > { %1008 = vrot.lane.b32.xlu1 %v1576_v54, %s1470_s17 }
 0x7f9   : > { %v888_v25 = vpop.xlane.xlu1 %887 }
 0x7fa   : > { %v892_v26 = vsub.f32 %v884_v18, %v888_v25 }
 0x7fc   : > { %v894_v27 = vmul.f32 1.442695, %v892_v26 }
 0x7fd   : > { %v910_v28 = vpop.permute.xlu1 %909  ;;  %v891_v29 = vpop.xlane.xlu0 %890 }
 0x7fe   : > { %1436 = vpow2.f32 %v894_v27  ;;  %v915_v30 = vsel %vm561_vm11, %v910_v28, 0  ;;  %v893_v31 = vsub.f32 %v885_v22, %v891_v29  ;;  %v468_v22 = vld [vmem:[%s1723_s6 + $0xc] sm:$0xf] }
 0x7ff   : > { %1360 = vmatpush3.bf16.msra.mxu0 %v915_v30  ;;  %v1138_v24 = vsel %vm610_vm12, %v468_v22, 0 }
 0x800   : > { %v896_v32 = vmul.f32 1.442695, %v893_v31  ;;  %1371 = vmatprep.subr.bf16.mxu0 %v1460_v15 }
 0x801   : > { %v1009_v56 = vpop.permute.xlu1 %1008 }
 0x802   : > { %1438 = vpow2.f32 %v896_v32 }
 0x80b   : > { %v1437_v33 = vpop.eup %1436 }
 0x80c   : > { %v898_v34 = vsel %vm531_vm9, %v1437_v33, 0.0 }
 0x80d   : > { %899 = vadd.xlane.f32.xlu0 %v898_v34 }
 0x80f   : > { %v1439_v35 = vpop.eup %1438 }
 0x810   : > { %v901_v54 = vsel %vm535_vm10, %v1439_v35, 0.0 }
 0x811   : > { %902 = vadd.xlane.f32.xlu0 %v901_v54 }
 0x827   : > { %1010 = vrot.lane.b32.xlu0 %v1572_v51, %s1471_s20 }
 0x82c   : > { %v824_v40 = vpop.f32.mrf.mxu0 }
 0x82d   : > { %v831_v41 = vadd.f32 %v824_v40, %v655_v38 }
 0x82e   : > { %v1351_v42 = vpop.f32.mrf.mxu0 }
 0x830   : > { %v827_v44 = vpop.f32.mrf.mxu0 }
 0x831   : > { %v1672_v45 = vadd.f32 %v827_v44, %v656_v43 }
 0x832   : > { %v1352_v46 = vpop.f32.mrf.mxu0 }
 0x896   : > { %v900_v47 = vpop.xlane.xlu0 %899 }
 0x897   : > { %1440 = vrcp.f32 %v900_v47 }
 0x89a   : > { %v903_v48 = vpop.xlane.xlu0 %902 }
 0x89b   : > { %1442 = vrcp.f32 %v903_v48 }
 0x89e   : > { %v1011_v53 = vpop.permute.xlu0 %1010 }
 0x89f   : > { %v1016_v1 = vsel %vm481_vm7, %v1011_v53, 0 }
 0x8a4   : > { %v1441_v0 = vpop.eup %1440 }
 0x8a5   : > { %v906_v50 = vmul.f32 %v1441_v0, %v1437_v33 }
 0x8a8   : > { %v1443_v49 = vpop.eup %1442 }
 0x8a9   : > { %v907_v52 = vmul.f32 %v1443_v49, %v1439_v35 }
 0x8ab   : > { %v908_v55 = vpack.c.bf16 %v907_v52, %v906_v50 }
 0x8ad   : > { %1362 = vmatmul.mubr.msk.bf16.vlgmr.msra.gmra.mxu0 %vm531_vm9, %v908_v55 }
 0x8ae   : > { %1372 = vmatpush3.bf16.xpose.msra.mxu0 %v1016_v1  ;;  %1373 = vmatprep.mubr.msk.bf16.mxu0 %vm1461_vm2, %v1460_v15 }
 0x8af   : > { %1383 = vmatprep.subr.bf16.mxu0 %v1460_v15 }
 0x8b5   : > { %1374 = vmatmul.mubr.msk.bf16.vlgmr.msra.gmra.mxu0 %vm481_vm7, %v1009_v56 }
 0x8b6   : > { %1385 = vmatprep.mubr.msk.bf16.mxu0 %vm1461_vm2, %v1460_v15  ;;  %1384 = vmatpush3.bf16.msra.mxu0 %v1138_v24 }
 0x96d   : > { %v951_v60 = vpop.f32.mrf.mxu0 }
 0x96f   : > { %v1363_v61 = vpop.f32.mrf.mxu0 }
 0x971   : > { %v954_v62 = vpop.f32.mrf.mxu0 }
 0x972   : > { %v958_v63 = vpack.c.bf16 %v954_v62, %v951_v60 }
 0x973   : > { %v1364_v2 = vpop.f32.mrf.mxu0 }
 0x974   : > { %1368 = vmatmul.mubr.msk.bf16.vlgmr.msra.gmra.mxu1 %vm481_vm7, %v958_v63 }
 0x975   : > { %v1052_v3 = vpop.f32.mrf.mxu0  ;;  %1379 = vmatprep.mubr.msk.bf16.mxu1 %vm1461_vm2, %v1460_v15 }
 0x976   : > { %v1059_v4 = vsel %vm460_vm8, -1e+09, %v1052_v3 }
 0x977   : > { %v1375_v5 = vpop.f32.mrf.mxu0  ;;  %v1061_v6 = vsel %vm531_vm9, %v1059_v4, -inf }
 0x978   : > { %1062 = vmax.xlane.f32.xlu1 %v1061_v6 }
 0x979   : > { %v1055_v7 = vpop.f32.mrf.mxu0 }
 0x97a   : > { %v1060_v8 = vsel %vm460_vm8, -1e+09, %v1055_v7 }
 0x97b   : > { %v1376_v9 = vpop.f32.mrf.mxu0  ;;  %v1064_v10 = vsel %vm535_vm10, %v1060_v8, -inf }
 0x97c   : > { %1065 = vmax.xlane.f32.xlu0 %v1064_v10 }
 0xa01   : > { %v1063_v11 = vpop.xlane.xlu1 %1062 }
 0xa02   : > { %v1067_v12 = vsub.f32 %v1059_v4, %v1063_v11 }
 0xa04   : > { %v1069_v13 = vmul.f32 1.442695, %v1067_v12 }
 0xa05   : > { %v1066_v14 = vpop.xlane.xlu0 %1065 }
 0xa06   : > { %1444 = vpow2.f32 %v1069_v13  ;;  %v1068_v15 = vsub.f32 %v1060_v8, %v1066_v14 }
 0xa08   : > { %v1071_v16 = vmul.f32 1.442695, %v1068_v15 }
 0xa0a   : > { %1446 = vpow2.f32 %v1071_v16 }
 0xa13   : > { %v1445_v17 = vpop.eup %1444 }
 0xa14   : > { %v1073_v18 = vsel %vm531_vm9, %v1445_v17, 0.0 }
 0xa15   : > { %1074 = vadd.xlane.f32.xlu0 %v1073_v18 }
 0xa17   : > { %v1447_v19 = vpop.eup %1446 }
 0xa18   : > { %v1076_v57 = vsel %vm535_vm10, %v1447_v19, 0.0 }
 0xa19   : > { %1077 = vadd.xlane.f32.xlu1 %v1076_v57 }
 0xa2b   : > { %1084 = vrot.lane.b32.xlu0 %v1572_v51, %s1472_s23 }
 0xa34   : > { %v999_v20 = vpop.f32.mrf.mxu1 }
 0xa35   : > { %v1006_v21 = vadd.f32 %v999_v20, %v831_v41 }
 0xa36   : > { %v1369_v23 = vpop.f32.mrf.mxu1 }
 0xa38   : > { %v1002_v25 = vpop.f32.mrf.mxu1 }
 0xa39   : > { %v1007_v26 = vadd.f32 %v1002_v25, %v1672_v45 }
 0xa3a   : > { %v1370_v27 = vpop.f32.mrf.mxu1 }
 0xa9e   : > { %v1075_v28 = vpop.xlane.xlu0 %1074 }
 0xa9f   : > { %1448 = vrcp.f32 %v1075_v28 }
 0xaa2   : > { %v1078_v29 = vpop.xlane.xlu1 %1077  ;;  %v1085_v30 = vpop.permute.xlu0 %1084 }
 0xaa3   : > { %1450 = vrcp.f32 %v1078_v29  ;;  %v1090_v51 = vsel %vm561_vm11, %v1085_v30, 0 }
 0xaa4   : > { %1378 = vmatpush3.bf16.msra.mxu1 %v1090_v51 }
 0xaac   : > { %v1449_v31 = vpop.eup %1448 }
 0xaad   : > { %v1081_v34 = vmul.f32 %v1449_v31, %v1445_v17 }
 0xab0   : > { %v1451_v32 = vpop.eup %1450 }
 0xab1   : > { %v1082_v33 = vmul.f32 %v1451_v32, %v1447_v19 }
 0xab3   : > { %v1083_v35 = vpack.c.bf16 %v1082_v33, %v1081_v34 }
 0xab5   : > { %1380 = vmatmul.mubr.msk.bf16.vlgmr.msra.gmra.mxu1 %vm531_vm9, %v1083_v35 }
 0xb75   : > { %v1126_v54 = vpop.f32.mrf.mxu1 }
 0xb77   : > { %v1381_v36 = vpop.f32.mrf.mxu1 }
 0xb79   : > { %v1129_v37 = vpop.f32.mrf.mxu1 }
 0xb7a   : > { %v1133_v38 = vpack.c.bf16 %v1129_v37, %v1126_v54 }
 0xb7b   : > { %v1382_v39 = vpop.f32.mrf.mxu1 }
 0xb7c   : > { %1386 = vmatmul.mubr.msk.bf16.vlgmr.msra.gmra.mxu0 %vm481_vm7, %v1133_v38 }
 0xc3c   : > { %v1174_v40 = vpop.f32.mrf.mxu0 }
 0xc3d   : > { %v1181_v41 = vadd.f32 %v1174_v40, %v1006_v21 }
 0xc3e   : > { %v1387_v42 = vpop.f32.mrf.mxu0 }
 0xc3f   : > { %1183 = vst.msk [vmem:[%s319_s9] sm:$0xff] %vm325_vm0, %v1181_v41 }
 0xc40   : > { %v1177_v43 = vpop.f32.mrf.mxu0 }
 0xc41   : > { %v1182_v44 = vadd.f32 %v1177_v43, %v1007_v26 }
 0xc42   : > { %v1388_v45 = vpop.f32.mrf.mxu0 }
 0xc43   : > { %1184 = vst.msk [vmem:[%s319_s9 + $0x8] sm:$0x3] %vm329_vm1, %v1182_v44 }
 0xc44 PF: > { %s18_s27 = sadd.s32 1, %s1458_s27  }
 0xc45   : > { %p15_p4 = scmp.ge.s32.totalorder %s18_s27, 4  }
 0xc47   :  { %17 = sbr.rel (!%p15_p4) target bundleno = 1 (0x1), region = 85 }

// kernel: transform_model.17
= control target key start
LH: loop header
LB: loop body
LE: loop exit
PB: predicated region body
PF: predicated region fallthrough
CT: control target
= control target key end

     0   :  { %s1392_s27 = smov 0   ;;  %s1555_s0 = inlined_call_operand.vmem [shape: f32[2,8,32], index: 0, kind: input, shape index: {}, may-alias: {0,8}]   ;;  %s1556_s1 = inlined_call_operand.vmem [shape: f32[2,8,8], index: 1, kind: input, shape index: {}]   ;;  %s1557_s2 = inlined_call_operand.vmem [shape: f32[1,32], index: 2, kind: input, shape index: {}]   ;;  %s1558_s3 = inlined_call_operand.vmem [shape: f32[1,32], index: 3, kind: input, shape index: {}]   ;;  %s1559_s4 = inlined_call_operand.vmem [shape: bf16[32,96], index: 4, kind: input, shape index: {}]   ;;  %s1560_s5 = inlined_call_operand.vmem [shape: f32[1,96], index: 5, kind: input, shape index: {}]   ;;  %s1561_s6 = inlined_call_operand.vmem [shape: bf16[32,32], index: 6, kind: input, shape index: {}]   ;;  %s1562_s7 = inlined_call_operand.vmem [shape: f32[1,32], index: 7, kind: input, shape index: {}]   ;;  %s1563_s8 = inlined_call_operand.vmem [shape: f32[2,8,32], index: 8, kind: output, shape index: {}, may-alias: {0,8}]  }
   0x1 LB: > { %s1147_s28 = sadd.s32 4294967295, %s1332_s27   ;;  %p1151_p0 = scmp.ge.s32.totalorder %s1332_s27, 1  ;;  %s1332_s27 = sphi %s1392_s27, %s18_s27  }
   0x2   : > { %p270_p1 = scmp.lt.s32.totalorder %s1332_s27, 3 }
   0x4   : > { %p271_p2 = pnand %p1151_p0, %p270_p1 }
   0x5   : > { %p306_p3 = scmp.lt.s32.totalorder (!%p271_p2), %s1147_s28, 1  ;;  %s1336_s21 = smov (!%p271_p2), 64  }
   0x6   : > { %274 = sbr.rel (%p271_p2) target bundleno = 3111 (0xc27), region = 52  ;;  %s1337_s22 = smov (!%p271_p2), 96  }
   0x7   : > { %s1338_s26 = smov (!%p271_p2), 88   ;;  %s1341_s11 = smov (!%p271_p2), 80  }
   0x8   : > { %s1342_s12 = smov (!%p271_p2), 112   ;;  %s1343_s13 = smov (!%p271_p2), 48  }
   0x9   : > { %s1344_s18 = smov (!%p271_p2), 72   ;;  %s1345_s19 = smov (!%p271_p2), 104  }
   0xb   : > { %s1565_s28 = smov (!%p306_p3, %s1147_s28), 1  ;;  %vm322_vm0 = vcmask 261120   ;;  %v1304_v7 = vld [vmem:[%s1559_s4 + $0x8] sm:$0xff]   ;;  %v1334_v8 = vmov 0.0   ;;  %vm1335_vm1 = vmmov 0   ;;  %v1305_v9 = vld [vmem:[%s1559_s4] sm:$0xff]  }
   0xc   : > { %s1400_s29 = sshll.u32 %s1565_s28, 3  ;;  %1203 = vmatprep.subr.bf16.mxu0 %v1334_v8  ;;  %1207 = vmatprep.mubr.msk.bf16.mxu0 %vm1335_vm1, %v1334_v8  ;;  %v1155_v18 = vld [vmem:[%s1557_s2] ss:$0 sm:$0xff]  ;;  %vm511_vm4 = vcmask 1043456   ;;  %vm446_vm5 = vcmask 64512   ;;  %s1339_s28 = smov 120  }
   0xd   : > { %s309_s10 = scalar_lea.vmem %s1555_s0, %s1400_s29  ;;  %1204 = vmatpush3.bf16.msra.mxu0 %v1304_v7  ;;  %1211 = vmatprep.subr.bf16.mxu1 %v1334_v8  ;;  %v1156_v21 = vld [vmem:[%s1558_s3] ss:$0 sm:$0xff]  ;;  %s313_s25 = scalar_lea.vmem %s1556_s1, %s1400_s29 }
   0xe   : > { %v1406_v0 = vld [vmem:[%s309_s10] sm:$0xff]  ;;  %1205 = vmatprep.subr.bf16.mxu0 %v1334_v8  ;;  %1213 = vmatprep.mubr.msk.bf16.mxu1 %vm1335_vm1, %v1334_v8  ;;  %s1340_s10 = smov 56  }
   0xf   : > { %v323_v1 = vsel %vm322_vm0, %v1406_v0, 0.0  ;;  %v1157_v25 = vld [vmem:[%s1560_s5] ss:$0 sm:$0xff] }
  0x10   : > { %324 = vadd.xlane.f32.xlu0 %v323_v1  ;;  %v1456_v38 = vld [vmem:[%s313_s25] sm:$0xff] }
  0x11   : > { %1206 = vmatpush3.bf16.msra.mxu0 %v1305_v9  ;;  %vm427_vm6 = vcmp.eq.f32.partialorder %v1456_v38, 0.0  ;;  %v431_v57 = vld [vmem:[%s1561_s6] sm:$0xf] }
  0x12   : > { %1217 = vmatprep.subr.bf16.mxu0 %v1334_v8  ;;  %v560_v58 = vsel %vm511_vm4, %v431_v57, 0 }
  0x99   : > { %v325_v2 = vpop.xlane.xlu0 %324 }
  0x9a   : > { %v327_v3 = vmul.f32 0.03125, %v325_v2 }
  0x9c   : > { %v328_v4 = vsub.f32 %v1406_v0, %v327_v3 }
  0x9e   : > { %v329_v5 = vmul.f32 %v328_v4, %v328_v4  ;;  %v341_v19 = vmul.f32 %v1155_v18, %v328_v4 }
  0xa0   : > { %v330_v6 = vsel %vm322_vm0, %v329_v5, 0.0 }
  0xa1   : > { %331 = vadd.xlane.f32.xlu0 %v330_v6 }
 0x12a   : > { %v332_v10 = vpop.xlane.xlu0 %331 }
 0x12b   : > { %v334_v11 = vmul.f32 0.032258064, %v332_v10 }
 0x12d   : > { %1306 = vrsqrt.f32 %v334_v11  ;;  %vm344_vm2 = vcmp.eq.f32.partialorder %v334_v11, inf  ;;  %v347_v14 = vand.u32 2147483648, %v334_v11  ;;  %vm346_vm3 = vcmp.eq.f32.partialorder %v334_v11, 0.0 }
 0x13a   : > { %v1307_v12 = vpop.eup %1306 }
 0x13b   : > { %v343_v13 = vmul.f32 %v1307_v12, %v334_v11 }
 0x13d   : > { %v345_v15 = vsel %vm344_vm2, %v334_v11, %v343_v13 }
 0x13e   : > { %v348_v16 = vsel %vm346_vm3, %v347_v14, %v345_v15 }
 0x13f   : > { %v349_v17 = vadd.f32 1e-06, %v348_v16 }
 0x141   : > { %1308 = vrcp.f32 %v349_v17 }
 0x14e   : > { %v1309_v20 = vpop.eup %1308 }
 0x14f   : > { %v351_v22 = vmul.f32 %v1309_v20, %v341_v19  ;;  %v432_v19 = vld [vmem:[%s1561_s6 + $0x4] sm:$0xf] }
 0x150   : > { %v720_v20 = vsel %vm511_vm4, %v432_v19, 0 }
 0x151   : > { %v358_v23 = vadd.f32 %v1156_v21, %v351_v22 }
 0x153   : > { %v359_v24 = vpack.c.bf16 %v358_v23, %v358_v23 }
 0x155   : > { %1208 = vmatmul.mubr.msk.bf16.vlgmr.msra.gmra.mxu0 %vm322_vm0, %v359_v24 }
 0x156   : > { %1219 = vmatprep.mubr.msk.bf16.mxu0 %vm1335_vm1, %v1334_v8 }
 0x215   : > { %v420_v26 = vpop.f32.mrf.mxu0 }
 0x216   : > { %v421_v27 = vadd.f32 %v1157_v25, %v420_v26 }
 0x217   : > { %v1209_v28 = vpop.f32.mrf.mxu0 }
 0x218   : > { %v1438_v29 = vpack.c.bf16 %v421_v27, %v421_v27  ;;  %v428_v36 = vmul.f32 0.35355338, %v421_v27 }
 0x219   : > { %v423_v30 = vpop.f32.mrf.mxu0 }
 0x21a   : > { %506 = vrot.lane.b32.xlu0 %v1438_v29, %s1336_s21  ;;  %444 = vrot.lane.b32.xlu1 %v1438_v29, %s1337_s22  ;;  %v1446_v37 = vpack.c.bf16 %v428_v36, %v428_v36  ;;  %s1346_s22 = smov 40  }
 0x21b   : > { %v1210_v31 = vpop.f32.mrf.mxu0 }
 0x28c   : > { %v507_v32 = vpop.permute.xlu0 %506  ;;  %v445_v33 = vpop.permute.xlu1 %444 }
 0x28d   : > { %v513_v34 = vsel %vm511_vm4, %v507_v32, 0  ;;  %v451_v35 = vsel %vm446_vm5, %v445_v33, 0 }
 0x28e   : > { %1212 = vmatpush3.bf16.xpose.msra.mxu1 %v451_v35  ;;  %1218 = vmatpush3.bf16.msra.mxu0 %v513_v34 }
 0x28f   : > { %1229 = vmatprep.subr.bf16.mxu0 %v1334_v8  ;;  %1223 = vmatprep.subr.bf16.mxu1 %v1334_v8 }
 0x295   : > { %1214 = vmatmul.mubr.msk.bf16.vlgmr.msra.gmra.mxu1 %vm446_vm5, %v1446_v37 }
 0x296   : > { %1225 = vmatprep.mubr.msk.bf16.mxu1 %vm1335_vm1, %v1334_v8  ;;  %1224 = vmatpush3.bf16.msra.mxu1 %v560_v58 }
 0x297   : > { %1235 = vmatprep.subr.bf16.mxu1 %v1334_v8 }
 0x355   : > { %v487_v39 = vpop.f32.mrf.mxu1 }
 0x356   : > { %v493_v40 = vsel %vm427_vm6, -1e+09, %v487_v39 }
 0x357   : > { %v1215_v41 = vpop.f32.mrf.mxu1  ;;  %v494_v42 = vsel %vm446_vm5, %v493_v40, -inf }
 0x358   : > { %495 = vmax.xlane.f32.xlu1 %v494_v42 }
 0x359   : > { %v490_v43 = vpop.f32.mrf.mxu1 }
 0x35b   : > { %v1216_v44 = vpop.f32.mrf.mxu1 }
 0x3e1   : > { %v496_v45 = vpop.xlane.xlu1 %495 }
 0x3e2   : > { %v497_v46 = vsub.f32 %v493_v40, %v496_v45 }
 0x3e4   : > { %v498_v47 = vmul.f32 1.442695, %v497_v46 }
 0x3e6   : > { %1310 = vpow2.f32 %v498_v47 }
 0x3f3   : > { %v1311_v48 = vpop.eup %1310 }
 0x3f4   : > { %v500_v49 = vsel %vm446_vm5, %v1311_v48, 0.0 }
 0x3f5   : > { %501 = vadd.xlane.f32.xlu0 %v500_v49  ;;  %v1161_v49 = vld [vmem:[%s1562_s7] ss:$0 sm:$0xff] }
 0x40b   : > { %606 = vrot.lane.b32.xlu0 %v1438_v29, %s1338_s26 }
 0x40f   : > { %604 = vrot.lane.b32.xlu0 %v1446_v37, %s1339_s28  ;;  %s317_s28 = scalar_lea.vmem %s1563_s8, %s1400_s29 }
 0x47e   : > { %v502_v50 = vpop.xlane.xlu0 %501 }
 0x47f   : > { %1312 = vrcp.f32 %v502_v50  ;;  %v442_v50 = vadd.f32 %v1161_v49, %v1406_v0 }
 0x482   : > { %v607_v53 = vpop.permute.xlu0 %606 }
 0x483   : > { %v612_v55 = vsel %vm446_vm5, %v607_v53, 0 }
 0x486   : > { %v605_v56 = vpop.permute.xlu0 %604 }
 0x48c   : > { %v1313_v51 = vpop.eup %1312 }
 0x48d   : > { %v504_v52 = vmul.f32 %v1313_v51, %v1311_v48 }
 0x48f   : > { %v505_v54 = vpack.c.bf16 %v504_v52, %v504_v52 }
 0x491   : > { %1220 = vmatmul.mubr.msk.bf16.vlgmr.msra.gmra.mxu0 %vm446_vm5, %v505_v54 }
 0x492   : > { %1230 = vmatpush3.bf16.xpose.msra.mxu0 %v612_v55  ;;  %1231 = vmatprep.mubr.msk.bf16.mxu0 %vm1335_vm1, %v1334_v8 }
 0x493   : > { %1241 = vmatprep.subr.bf16.mxu0 %v1334_v8 }
 0x499   : > { %1232 = vmatmul.mubr.msk.bf16.vlgmr.msra.gmra.mxu0 %vm446_vm5, %v605_v56 }
 0x49a   : > { %1243 = vmatprep.mubr.msk.bf16.mxu0 %vm1335_vm1, %v1334_v8  ;;  %1242 = vmatpush3.bf16.msra.mxu0 %v720_v20  ;;  %v434_v20 = vld [vmem:[%s1561_s6 + $0xc] sm:$0xf] }
 0x49b   : > { %1253 = vmatprep.subr.bf16.mxu0 %v1334_v8 }
 0x551   : > { %v549_v59 = vpop.f32.mrf.mxu0 }
 0x552   : > { %v555_v60 = vpack.c.bf16 %v549_v59, %v549_v59 }
 0x553   : > { %v1221_v61 = vpop.f32.mrf.mxu0 }
 0x554   : > { %1226 = vmatmul.mubr.msk.bf16.vlgmr.msra.gmra.mxu1 %vm446_vm5, %v555_v60 }
 0x555   : > { %v552_v62 = vpop.f32.mrf.mxu0  ;;  %1237 = vmatprep.mubr.msk.bf16.mxu1 %vm1335_vm1, %v1334_v8 }
 0x556   : > { %v433_v62 = vld [vmem:[%s1561_s6 + $0x8] sm:$0xf] }
 0x557   : > { %v1222_v63 = vpop.f32.mrf.mxu0 }
 0x558   : > { %v879_v63 = vsel %vm511_vm4, %v433_v62, 0 }
 0x559   : > { %v648_v1 = vpop.f32.mrf.mxu0 }
 0x55a   : > { %v654_v2 = vsel %vm427_vm6, -1e+09, %v648_v1 }
 0x55b   : > { %v1233_v3 = vpop.f32.mrf.mxu0  ;;  %v655_v4 = vsel %vm446_vm5, %v654_v2, -inf }
 0x55c   : > { %656 = vmax.xlane.f32.xlu1 %v655_v4 }
 0x55d   : > { %v651_v5 = vpop.f32.mrf.mxu0 }
 0x55f   : > { %v1234_v6 = vpop.f32.mrf.mxu0 }
 0x56d   : > { %667 = vrot.lane.b32.xlu1 %v1438_v29, %s1340_s10 }
 0x571   : > { %765 = vrot.lane.b32.xlu1 %v1438_v29, %s1341_s11 }
 0x575   : > { %763 = vrot.lane.b32.xlu1 %v1446_v37, %s1342_s12 }
 0x5e5   : > { %v657_v7 = vpop.xlane.xlu1 %656 }
 0x5e6   : > { %v658_v9 = vsub.f32 %v654_v2, %v657_v7 }
 0x5e8   : > { %v659_v10 = vmul.f32 1.442695, %v658_v9 }
 0x5e9   : > { %v668_v11 = vpop.permute.xlu1 %667 }
 0x5ea   : > { %1314 = vpow2.f32 %v659_v10  ;;  %v673_v12 = vsel %vm511_vm4, %v668_v11, 0 }
 0x5eb   : > { %1236 = vmatpush3.bf16.msra.mxu1 %v673_v12 }
 0x5ec   : > { %1247 = vmatprep.subr.bf16.mxu1 %v1334_v8 }
 0x5ed   : > { %v766_v24 = vpop.permute.xlu1 %765 }
 0x5ee   : > { %v771_v26 = vsel %vm446_vm5, %v766_v24, 0 }
 0x5f1   : > { %v764_v27 = vpop.permute.xlu1 %763 }
 0x5f7   : > { %v1315_v13 = vpop.eup %1314 }
 0x5f8   : > { %v661_v14 = vsel %vm446_vm5, %v1315_v13, 0.0 }
 0x5f9   : > { %662 = vadd.xlane.f32.xlu0 %v661_v14 }
 0x60f   : > { %826 = vrot.lane.b32.xlu0 %v1438_v29, %s1343_s13 }
 0x614   : > { %v596_v15 = vpop.f32.mrf.mxu1 }
 0x615   : > { %v602_v51 = vadd.f32 %v596_v15, %v442_v50 }
 0x616   : > { %v1227_v16 = vpop.f32.mrf.mxu1 }
 0x618   : > { %v599_v17 = vpop.f32.mrf.mxu1 }
 0x61a   : > { %v1228_v18 = vpop.f32.mrf.mxu1 }
 0x682   : > { %v663_v21 = vpop.xlane.xlu0 %662 }
 0x683   : > { %1316 = vrcp.f32 %v663_v21 }
 0x686   : > { %v827_v28 = vpop.permute.xlu0 %826 }
 0x687   : > { %v832_v33 = vsel %vm511_vm4, %v827_v28, 0 }
 0x690   : > { %v1317_v22 = vpop.eup %1316 }
 0x691   : > { %v665_v23 = vmul.f32 %v1317_v22, %v1315_v13 }
 0x693   : > { %v666_v25 = vpack.c.bf16 %v665_v23, %v665_v23 }
 0x695   : > { %1238 = vmatmul.mubr.msk.bf16.vlgmr.msra.gmra.mxu1 %vm446_vm5, %v666_v25 }
 0x696   : > { %1248 = vmatpush3.bf16.xpose.msra.mxu1 %v771_v26  ;;  %1249 = vmatprep.mubr.msk.bf16.mxu1 %vm1335_vm1, %v1334_v8 }
 0x697   : > { %1259 = vmatprep.subr.bf16.mxu1 %v1334_v8 }
 0x69d   : > { %1250 = vmatmul.mubr.msk.bf16.vlgmr.msra.gmra.mxu1 %vm446_vm5, %v764_v27 }
 0x69e   : > { %1261 = vmatprep.mubr.msk.bf16.mxu1 %vm1335_vm1, %v1334_v8  ;;  %1260 = vmatpush3.bf16.msra.mxu1 %v879_v63 }
 0x69f   : > { %1271 = vmatprep.subr.bf16.mxu1 %v1334_v8 }
 0x755   : > { %v709_v30 = vpop.f32.mrf.mxu1 }
 0x756   : > { %v715_v31 = vpack.c.bf16 %v709_v30, %v709_v30 }
 0x757   : > { %v1239_v32 = vpop.f32.mrf.mxu1 }
 0x758   : > { %1244 = vmatmul.mubr.msk.bf16.vlgmr.msra.gmra.mxu0 %vm446_vm5, %v715_v31 }
 0x759   : > { %1254 = vmatpush3.bf16.msra.mxu0 %v832_v33  ;;  %v712_v34 = vpop.f32.mrf.mxu1  ;;  %1255 = vmatprep.mubr.msk.bf16.mxu0 %vm1335_vm1, %v1334_v8 }
 0x75a   : > { %1265 = vmatprep.subr.bf16.mxu0 %v1334_v8 }
 0x75b   : > { %v1240_v35 = vpop.f32.mrf.mxu1 }
 0x75d   : > { %v807_v36 = vpop.f32.mrf.mxu1 }
 0x75e   : > { %v813_v39 = vsel %vm427_vm6, -1e+09, %v807_v36 }
 0x75f   : > { %v1251_v40 = vpop.f32.mrf.mxu1  ;;  %v814_v41 = vsel %vm446_vm5, %v813_v39, -inf }
 0x760   : > { %815 = vmax.xlane.f32.xlu1 %v814_v41 }
 0x761   : > { %v810_v42 = vpop.f32.mrf.mxu1 }
 0x763   : > { %v1252_v43 = vpop.f32.mrf.mxu1 }
 0x7e9   : > { %v816_v44 = vpop.xlane.xlu1 %815 }
 0x7ea   : > { %v817_v45 = vsub.f32 %v813_v39, %v816_v44 }
 0x7ec   : > { %v818_v46 = vmul.f32 1.442695, %v817_v45 }
 0x7ee   : > { %1318 = vpow2.f32 %v818_v46 }
 0x7fb   : > { %v1319_v47 = vpop.eup %1318 }
 0x7fc   : > { %v820_v48 = vsel %vm446_vm5, %v1319_v47, 0.0 }
 0x7fd   : > { %821 = vadd.xlane.f32.xlu0 %v820_v48 }
 0x813   : > { %924 = vrot.lane.b32.xlu0 %v1438_v29, %s1344_s18 }
 0x817   : > { %922 = vrot.lane.b32.xlu0 %v1446_v37, %s1345_s19 }
 0x818   : > { %v756_v52 = vpop.f32.mrf.mxu0 }
 0x819   : > { %v762_v53 = vadd.f32 %v756_v52, %v602_v51 }
 0x81a   : > { %v1245_v54 = vpop.f32.mrf.mxu0 }
 0x81c   : > { %v759_v55 = vpop.f32.mrf.mxu0 }
 0x81e   : > { %v1246_v56 = vpop.f32.mrf.mxu0 }
 0x886   : > { %v822_v57 = vpop.xlane.xlu0 %821 }
 0x887   : > { %1320 = vrcp.f32 %v822_v57 }
 0x88a   : > { %v925_v60 = vpop.permute.xlu0 %924 }
 0x88b   : > { %v930_v0 = vsel %vm446_vm5, %v925_v60, 0 }
 0x88e   : > { %v923_v37 = vpop.permute.xlu0 %922 }
 0x894   : > { %v1321_v58 = vpop.eup %1320 }
 0x895   : > { %v824_v59 = vmul.f32 %v1321_v58, %v1319_v47 }
 0x897   : > { %v825_v61 = vpack.c.bf16 %v824_v59, %v824_v59 }
 0x899   : > { %1256 = vmatmul.mubr.msk.bf16.vlgmr.msra.gmra.mxu0 %vm446_vm5, %v825_v61 }
 0x89a   : > { %1266 = vmatpush3.bf16.xpose.msra.mxu0 %v930_v0  ;;  %1267 = vmatprep.mubr.msk.bf16.mxu0 %vm1335_vm1, %v1334_v8 }
 0x89b   : > { %1277 = vmatprep.subr.bf16.mxu0 %v1334_v8 }
 0x8a1   : > { %1268 = vmatmul.mubr.msk.bf16.vlgmr.msra.gmra.mxu0 %vm446_vm5, %v923_v37 }
 0x8a2   : > { %1279 = vmatprep.mubr.msk.bf16.mxu0 %vm1335_vm1, %v1334_v8 }
 0x959   : > { %v868_v1 = vpop.f32.mrf.mxu0 }
 0x95a   : > { %v874_v2 = vpack.c.bf16 %v868_v1, %v868_v1 }
 0x95b   : > { %v1257_v3 = vpop.f32.mrf.mxu0 }
 0x95c   : > { %1262 = vmatmul.mubr.msk.bf16.vlgmr.msra.gmra.mxu1 %vm446_vm5, %v874_v2 }
 0x95d   : > { %v871_v4 = vpop.f32.mrf.mxu0  ;;  %1273 = vmatprep.mubr.msk.bf16.mxu1 %vm1335_vm1, %v1334_v8 }
 0x95f   : > { %v1258_v5 = vpop.f32.mrf.mxu0 }
 0x961   : > { %v966_v6 = vpop.f32.mrf.mxu0 }
 0x962   : > { %v972_v7 = vsel %vm427_vm6, -1e+09, %v966_v6 }
 0x963   : > { %v1269_v9 = vpop.f32.mrf.mxu0  ;;  %v973_v10 = vsel %vm446_vm5, %v972_v7, -inf }
 0x964   : > { %974 = vmax.xlane.f32.xlu1 %v973_v10 }
 0x965   : > { %v969_v11 = vpop.f32.mrf.mxu0 }
 0x967   : > { %v1270_v12 = vpop.f32.mrf.mxu0 }
 0x975   : > { %985 = vrot.lane.b32.xlu1 %v1438_v29, %s1346_s22  ;;  %v1038_v29 = vsel %vm511_vm4, %v434_v20, 0 }
 0x976   : > { %1278 = vmatpush3.bf16.msra.mxu0 %v1038_v29 }
 0x9ed   : > { %v975_v13 = vpop.xlane.xlu1 %974 }
 0x9ee   : > { %v976_v14 = vsub.f32 %v972_v7, %v975_v13 }
 0x9f0   : > { %v977_v15 = vmul.f32 1.442695, %v976_v14 }
 0x9f1   : > { %v986_v16 = vpop.permute.xlu1 %985 }
 0x9f2   : > { %1322 = vpow2.f32 %v977_v15  ;;  %v991_v8 = vsel %vm511_vm4, %v986_v16, 0 }
 0x9f3   : > { %1272 = vmatpush3.bf16.msra.mxu1 %v991_v8 }
 0x9ff   : > { %v1323_v17 = vpop.eup %1322 }
 0xa00   : > { %v979_v38 = vsel %vm446_vm5, %v1323_v17, 0.0 }
 0xa01   : > { %980 = vadd.xlane.f32.xlu0 %v979_v38 }
 0xa1c   : > { %v915_v18 = vpop.f32.mrf.mxu1 }
 0xa1d   : > { %v921_v19 = vadd.f32 %v915_v18, %v762_v53 }
 0xa1e   : > { %v1263_v21 = vpop.f32.mrf.mxu1 }
 0xa20   : > { %v918_v22 = vpop.f32.mrf.mxu1 }
 0xa22   : > { %v1264_v23 = vpop.f32.mrf.mxu1 }
 0xa8a   : > { %v981_v24 = vpop.xlane.xlu0 %980 }
 0xa8b   : > { %1324 = vrcp.f32 %v981_v24 }
 0xa98   : > { %v1325_v25 = vpop.eup %1324 }
 0xa99   : > { %v983_v26 = vmul.f32 %v1325_v25, %v1323_v17 }
 0xa9b   : > { %v984_v27 = vpack.c.bf16 %v983_v26, %v983_v26 }
 0xa9d   : > { %1274 = vmatmul.mubr.msk.bf16.vlgmr.msra.gmra.mxu1 %vm446_vm5, %v984_v27 }
 0xb5d   : > { %v1027_v28 = vpop.f32.mrf.mxu1 }
 0xb5e   : > { %v1033_v30 = vpack.c.bf16 %v1027_v28, %v1027_v28 }
 0xb5f   : > { %v1275_v31 = vpop.f32.mrf.mxu1 }
 0xb60   : > { %1280 = vmatmul.mubr.msk.bf16.vlgmr.msra.gmra.mxu0 %vm446_vm5, %v1033_v30 }
 0xb61   : > { %v1030_v32 = vpop.f32.mrf.mxu1 }
 0xb63   : > { %v1276_v33 = vpop.f32.mrf.mxu1 }
 0xc20   : > { %v1074_v34 = vpop.f32.mrf.mxu0 }
 0xc21   : > { %v1080_v35 = vadd.f32 %v1074_v34, %v921_v19 }
 0xc22   : > { %v1281_v36 = vpop.f32.mrf.mxu0 }
 0xc23   : > { %1081 = vst.msk [vmem:[%s317_s28] sm:$0xff] %vm322_vm0, %v1080_v35 }
 0xc24   : > { %v1077_v39 = vpop.f32.mrf.mxu0 }
 0xc26   : > { %v1282_v40 = vpop.f32.mrf.mxu0 }
 0xc27 PF: > { %s18_s27 = sadd.s32 1, %s1332_s27  }
 0xc28   : > { %p15_p4 = scmp.ge.s32.totalorder %s18_s27, 4  }
 0xc2a   :  { %17 = sbr.rel (!%p15_p4) target bundleno = 1 (0x1), region = 85 }

// kernel: transform_model.19
= control target key start
LH: loop header
LB: loop body
LE: loop exit
PB: predicated region body
PF: predicated region fallthrough
CT: control target
= control target key end

     0   :  { %vm31_vm0 = vcmask 261120   ;;  %v356_v14 = vmov 0.0   ;;  %vm357_vm1 = vmmov 0   ;;  %s491_s0 = inlined_call_operand.vmem [shape: f32[16,32], index: 0, kind: input, shape index: {}, may-alias: {0,7}]   ;;  %s492_s3 = inlined_call_operand.vmem [shape: bf16[32,128], index: 3, kind: input, shape index: {}]   ;;  %s493_s5 = inlined_call_operand.vmem [shape: bf16[128,32], index: 5, kind: input, shape index: {}]   ;;  %s494_s1 = inlined_call_operand.vmem [shape: f32[1,32], index: 1, kind: input, shape index: {}]   ;;  %s495_s2 = inlined_call_operand.vmem [shape: f32[1,32], index: 2, kind: input, shape index: {}]   ;;  %s496_s4 = inlined_call_operand.vmem [shape: f32[1,128], index: 4, kind: input, shape index: {}]   ;;  %s497_s6 = inlined_call_operand.vmem [shape: f32[1,32], index: 6, kind: input, shape index: {}]   ;;  %s498_s7 = inlined_call_operand.vmem [shape: f32[16,32], index: 7, kind: output, shape index: {}, may-alias: {0,7}]  }
   0x1   :  { %v401_v0 = vld [vmem:[%s491_s0] sm:$0xff]  ;;  %v406_v1 = vld [vmem:[%s491_s0 + $0x8] sm:$0xff]  ;;  %308 = vmatprep.subr.bf16.mxu0 %v356_v14  ;;  %312 = vmatprep.mubr.msk.bf16.mxu0 %vm357_vm1, %v356_v14  ;;  %v340_v17 = vld [vmem:[%s493_s5 + $0x38] sm:$0xff]  }
   0x2   :  { %v32_v2 = vsel %vm31_vm0, %v401_v0, 0.0  ;;  %v35_v3 = vsel %vm31_vm0, %v406_v1, 0.0  ;;  %v338_v15 = vld [vmem:[%s492_s3 + $0x8] sm:$0xff]   ;;  %316 = vmatprep.subr.bf16.mxu1 %v356_v14  ;;  %332 = vmatprep.mubr.msk.bf16.mxu1 %vm357_vm1, %v356_v14  ;;  %v339_v16 = vld [vmem:[%s492_s3] sm:$0xff]   ;;  %v341_v18 = vld [vmem:[%s493_s5 + $0x30] sm:$0xff]  }
   0x3   :  { %33 = vadd.xlane.f32.xlu0 %v32_v2  ;;  %309 = vmatpush3.bf16.msra.mxu0 %v338_v15  ;;  %v342_v19 = vld [vmem:[%s493_s5 + $0x28] sm:$0xff]   ;;  %v343_v20 = vld [vmem:[%s493_s5 + $0x20] sm:$0xff]   ;;  %v344_v21 = vld [vmem:[%s493_s5 + $0x18] sm:$0xff]  }
   0x4   :  { %310 = vmatprep.subr.bf16.mxu0 %v356_v14  ;;  %317 = vmatpush3.bf16.msra.mxu1 %v340_v17  ;;  %v281_v38 = vld [vmem:[%s494_s1] ss:$0 sm:$0xff]  ;;  %v345_v49 = vld [vmem:[%s493_s5 + $0x10] sm:$0xff]   ;;  %v346_v50 = vld [vmem:[%s493_s5 + $0x8] sm:$0xff]  }
   0x5   :  { %318 = vmatprep.subr.bf16.mxu1 %v356_v14  ;;  %v282_v44 = vld [vmem:[%s495_s2] ss:$0 sm:$0xff] }
   0x6   :  { %v347_v51 = vld [vmem:[%s493_s5] sm:$0xff]  }
   0x7   :  { %36 = vadd.xlane.f32.xlu0 %v35_v3  ;;  %311 = vmatpush3.bf16.msra.mxu0 %v339_v16  ;;  %v283_v52 = vld [vmem:[%s496_s4] ss:$0 sm:$0xff] }
   0x8   :  { %319 = vmatpush3.bf16.msra.mxu1 %v341_v18  ;;  %v287_v62 = vld [vmem:[%s497_s6] ss:$0 sm:$0xff] }
   0x9   :  { %320 = vmatprep.subr.bf16.mxu1 %v356_v14 }
   0xc   :  { %321 = vmatpush3.bf16.msra.mxu1 %v342_v19 }
   0xd   :  { %322 = vmatprep.subr.bf16.mxu1 %v356_v14 }
  0x10   :  { %323 = vmatpush3.bf16.msra.mxu1 %v343_v20 }
  0x11   :  { %324 = vmatprep.subr.bf16.mxu1 %v356_v14 }
  0x14   :  { %325 = vmatpush3.bf16.msra.mxu1 %v344_v21 }
  0x15   :  { %326 = vmatprep.subr.bf16.mxu1 %v356_v14 }
  0x18   :  { %327 = vmatpush3.bf16.msra.mxu1 %v345_v49 }
  0x19   :  { %328 = vmatprep.subr.bf16.mxu1 %v356_v14 }
  0x1c   :  { %329 = vmatpush3.bf16.msra.mxu1 %v346_v50 }
  0x1d   :  { %330 = vmatprep.subr.bf16.mxu1 %v356_v14 }
  0x20   :  { %331 = vmatpush3.bf16.msra.mxu1 %v347_v51 }
  0x8c   :  { %v34_v4 = vpop.xlane.xlu0 %33 }
  0x8d   :  { %v39_v5 = vmul.f32 0.03125, %v34_v4 }
  0x8f   :  { %v413_v6 = vsub.f32 %v401_v0, %v39_v5 }
  0x90   :  { %v37_v7 = vpop.xlane.xlu0 %36 }
  0x91   :  { %v40_v8 = vmul.f32 0.03125, %v37_v7  ;;  %v43_v9 = vmul.f32 %v413_v6, %v413_v6  ;;  %v60_v40 = vmul.f32 %v281_v38, %v413_v6 }
  0x93   :  { %v418_v10 = vsub.f32 %v406_v1, %v40_v8  ;;  %v45_v11 = vsel %vm31_vm0, %v43_v9, 0.0 }
  0x94   :  { %46 = vadd.xlane.f32.xlu1 %v45_v11 }
  0x95   :  { %v44_v12 = vmul.f32 %v418_v10, %v418_v10  ;;  %v61_v41 = vmul.f32 %v281_v38, %v418_v10 }
  0x97   :  { %v48_v13 = vsel %vm31_vm0, %v44_v12, 0.0 }
  0x98   :  { %49 = vadd.xlane.f32.xlu1 %v48_v13 }
 0x11d   :  { %v47_v22 = vpop.xlane.xlu1 %46 }
 0x11e   :  { %v52_v23 = vmul.f32 0.032258064, %v47_v22 }
 0x120   :  { %348 = vrsqrt.f32 %v52_v23  ;;  %vm64_vm2 = vcmp.eq.f32.partialorder %v52_v23, inf  ;;  %v67_v28 = vand.u32 2147483648, %v52_v23  ;;  %vm66_vm3 = vcmp.eq.f32.partialorder %v52_v23, 0.0 }
 0x121   :  { %v50_v24 = vpop.xlane.xlu1 %49 }
 0x122   :  { %v53_v25 = vmul.f32 0.032258064, %v50_v24 }
 0x124   :  { %350 = vrsqrt.f32 %v53_v25  ;;  %vm71_vm4 = vcmp.eq.f32.partialorder %v53_v25, inf  ;;  %v74_v34 = vand.u32 2147483648, %v53_v25  ;;  %vm73_vm5 = vcmp.eq.f32.partialorder %v53_v25, 0.0 }
 0x12d   :  { %v349_v26 = vpop.eup %348 }
 0x12e   :  { %v63_v27 = vmul.f32 %v349_v26, %v52_v23 }
 0x130   :  { %v65_v29 = vsel %vm64_vm2, %v52_v23, %v63_v27 }
 0x131   :  { %v351_v30 = vpop.eup %350  ;;  %v68_v31 = vsel %vm66_vm3, %v67_v28, %v65_v29 }
 0x132   :  { %v76_v32 = vadd.f32 1e-06, %v68_v31  ;;  %v70_v33 = vmul.f32 %v351_v30, %v53_v25 }
 0x134   :  { %352 = vrcp.f32 %v76_v32  ;;  %v72_v35 = vsel %vm71_vm4, %v53_v25, %v70_v33 }
 0x135   :  { %v75_v36 = vsel %vm73_vm5, %v74_v34, %v72_v35 }
 0x136   :  { %v77_v37 = vadd.f32 1e-06, %v75_v36 }
 0x138   :  { %354 = vrcp.f32 %v77_v37 }
 0x141   :  { %v353_v39 = vpop.eup %352 }
 0x142   :  { %v79_v42 = vmul.f32 %v353_v39, %v60_v40 }
 0x144   :  { %v88_v46 = vadd.f32 %v282_v44, %v79_v42 }
 0x145   :  { %v355_v43 = vpop.eup %354 }
 0x146   :  { %v81_v45 = vmul.f32 %v355_v43, %v61_v41 }
 0x148   :  { %v89_v47 = vadd.f32 %v282_v44, %v81_v45 }
 0x14a   :  { %v90_v48 = vpack.c.bf16 %v89_v47, %v88_v46 }
 0x14c   :  { %313 = vmatmul.mubr.msk.bf16.vlgmr.msra.gmra.mxu0 %vm31_vm0, %v90_v48 }
 0x20c   :  { %v151_v53 = vpop.f32.mrf.mxu0 }
 0x20d   :  { %v152_v55 = vadd.f32 %v283_v52, %v151_v53 }
 0x20e   :  { %v314_v54 = vpop.f32.mrf.mxu0 }
 0x20f   :  { %v158_v59 = vmax.f32 %v152_v55, 0.0 }
 0x210   :  { %v154_v56 = vpop.f32.mrf.mxu0 }
 0x211   :  { %v155_v57 = vadd.f32 %v283_v52, %v154_v56 }
 0x212   :  { %v315_v58 = vpop.f32.mrf.mxu0 }
 0x213   :  { %v159_v60 = vmax.f32 %v155_v57, 0.0 }
 0x215   :  { %v160_v61 = vpack.c.bf16 %v159_v60, %v158_v59 }
 0x217   :  { %333 = vmatmul.mubr.bf16.vlgmr.msra.gmra.mxu1 %v160_v61 }
 0x2d7   :  { %v266_v63 = vpop.f32.mrf.mxu1 }
 0x2d8   :  { %v267_v2 = vadd.f32 %v287_v62, %v266_v63 }
 0x2d9   :  { %v334_v3 = vpop.f32.mrf.mxu1 }
 0x2da   :  { %v273_v4 = vadd.f32 %v267_v2, %v401_v0 }
 0x2db   :  { %v269_v5 = vpop.f32.mrf.mxu1 }
 0x2dc   :  { %275 = vst.msk [vmem:[%s498_s7] sm:$0xff] %vm31_vm0, %v273_v4  ;;  %v270_v6 = vadd.f32 %v287_v62, %v269_v5 }
 0x2dd   :  { %v335_v7 = vpop.f32.mrf.mxu1 }
 0x2de   :  { %v274_v8 = vadd.f32 %v270_v6, %v406_v1 }
 0x2e0   :  { %276 = vst.msk [vmem:[%s498_s7 + $0x8] sm:$0xff] %vm31_vm0, %v274_v8 }

// kernel: transform_model.23
= control target key start
LH: loop header
LB: loop body
LE: loop exit
PB: predicated region body
PF: predicated region fallthrough
CT: control target
= control target key end

     0   :  { %vm26_vm0 = vcmask 261120   ;;  %s290_s0 = inlined_call_operand.vmem [shape: f32[16,32], index: 0, kind: input, shape index: {}]   ;;  %s291_s1 = inlined_call_operand.vmem [shape: f32[1,32], index: 1, kind: input, shape index: {}]   ;;  %s292_s2 = inlined_call_operand.vmem [shape: f32[1,32], index: 2, kind: input, shape index: {}]   ;;  %s293_s3 = inlined_call_operand.vmem [shape: bf16[32,16], index: 3, kind: input, shape index: {}]   ;;  %s294_s4 = inlined_call_operand.vmem [shape: f32[1,16], index: 4, kind: input, shape index: {}]   ;;  %s295_s5 = inlined_call_operand.hbm [shape: f32[16,16], index: 5, kind: output, shape index: {}]  }
   0x1   :  { %v22_v0 = vld [vmem:[%s290_s0] sm:$0xff]  ;;  %v23_v1 = vld [vmem:[%s290_s0 + $0x8] sm:$0xff] }
   0x2   :  { %v27_v2 = vsel %vm26_vm0, %v22_v0, 0.0 }
   0x3   :  { %28 = vadd.xlane.f32.xlu0 %v27_v2 }
   0x4   :  { %10 = vsyncpa [#allocation3], 0  ;;  %v30_v3 = vsel %vm26_vm0, %v23_v1, 0.0  ;;  %v194_v14 = vld [vmem:[%s293_s3 + $0x8] sm:$0xff]   ;;  %v226_v15 = vmov 0.0   ;;  %vm227_vm1 = vmmov 0  }
   0x5   :  { %181 = vmatprep.subr.bf16.mxu0 %v226_v15  ;;  %185 = vmatprep.mubr.msk.bf16.mxu0 %vm227_vm1, %v226_v15  ;;  %v195_v16 = vld [vmem:[%s293_s3] sm:$0xff]   ;;  %vm153_vm6 = vcmask 130048  }
   0x6   :  { %182 = vmatpush3.bf16.msra.mxu0 %v194_v14  ;;  %v172_v33 = vld [vmem:[%s291_s1] ss:$0 sm:$0xff]  ;;  %s228_s1 = smov [#allocation2]  }
   0x7   :  { %31 = vadd.xlane.f32.xlu0 %v30_v3  ;;  %183 = vmatprep.subr.bf16.mxu0 %v226_v15  ;;  %v173_v39 = vld [vmem:[%s292_s2] ss:$0 sm:$0xff]  ;;  %s161_s30 = sshll.u32 %s228_s1, 4  ;;  %s162_s30 = int_to_ptr.vmem [resolvable:$true] %s161_s30 }
   0x8   :  { %v174_v44 = vld [vmem:[%s294_s4] ss:$0 sm:$0xff]  ;;  %s204_s2 = scalar_lea.vmem %s162_s30, 256  ;;  %p209_p1 = scmp.lt.s32.totalorder %s162_s30, %s162_s30 }
   0x9   :  { %p205_p0 = scmp.ne.s32.totalorder %s162_s30, %s204_s2  ;;  %p210_p2 = scmp.lt.s32.totalorder %s204_s2, %s204_s2 }
   0xa   :  { %184 = vmatpush3.bf16.msra.mxu0 %v195_v16 }
   0xb   :  { %p211_p3 = por %p210_p2, %p209_p1 }
   0xd   :  { %p212_p4 = pnand %p211_p3, %p205_p0 }
  0x8c   :  { %v29_v4 = vpop.xlane.xlu0 %28 }
  0x8d   :  { %v34_v5 = vmul.f32 0.03125, %v29_v4 }
  0x8f   :  { %v36_v6 = vsub.f32 %v22_v0, %v34_v5 }
  0x90   :  { %v32_v7 = vpop.xlane.xlu0 %31 }
  0x91   :  { %v35_v8 = vmul.f32 0.03125, %v32_v7  ;;  %v38_v9 = vmul.f32 %v36_v6, %v36_v6  ;;  %v55_v35 = vmul.f32 %v172_v33, %v36_v6 }
  0x93   :  { %v37_v10 = vsub.f32 %v23_v1, %v35_v8  ;;  %v40_v11 = vsel %vm26_vm0, %v38_v9, 0.0 }
  0x94   :  { %41 = vadd.xlane.f32.xlu1 %v40_v11 }
  0x95   :  { %v39_v12 = vmul.f32 %v37_v10, %v37_v10  ;;  %v56_v36 = vmul.f32 %v172_v33, %v37_v10 }
  0x97   :  { %v43_v13 = vsel %vm26_vm0, %v39_v12, 0.0 }
  0x98   :  { %44 = vadd.xlane.f32.xlu1 %v43_v13 }
 0x11d   :  { %v42_v17 = vpop.xlane.xlu1 %41 }
 0x11e   :  { %v47_v18 = vmul.f32 0.032258064, %v42_v17 }
 0x120   :  { %196 = vrsqrt.f32 %v47_v18  ;;  %vm59_vm2 = vcmp.eq.f32.partialorder %v47_v18, inf  ;;  %v62_v23 = vand.u32 2147483648, %v47_v18  ;;  %vm61_vm3 = vcmp.eq.f32.partialorder %v47_v18, 0.0 }
 0x121   :  { %v45_v19 = vpop.xlane.xlu1 %44 }
 0x122   :  { %v48_v20 = vmul.f32 0.032258064, %v45_v19 }
 0x124   :  { %198 = vrsqrt.f32 %v48_v20  ;;  %vm66_vm4 = vcmp.eq.f32.partialorder %v48_v20, inf  ;;  %v69_v29 = vand.u32 2147483648, %v48_v20  ;;  %vm68_vm5 = vcmp.eq.f32.partialorder %v48_v20, 0.0 }
 0x12d   :  { %v197_v21 = vpop.eup %196 }
 0x12e   :  { %v58_v22 = vmul.f32 %v197_v21, %v47_v18 }
 0x130   :  { %v60_v24 = vsel %vm59_vm2, %v47_v18, %v58_v22 }
 0x131   :  { %v199_v25 = vpop.eup %198  ;;  %v63_v26 = vsel %vm61_vm3, %v62_v23, %v60_v24 }
 0x132   :  { %v71_v27 = vadd.f32 1e-06, %v63_v26  ;;  %v65_v28 = vmul.f32 %v199_v25, %v48_v20 }
 0x134   :  { %200 = vrcp.f32 %v71_v27  ;;  %v67_v30 = vsel %vm66_vm4, %v48_v20, %v65_v28 }
 0x135   :  { %v70_v31 = vsel %vm68_vm5, %v69_v29, %v67_v30 }
 0x136   :  { %v72_v32 = vadd.f32 1e-06, %v70_v31 }
 0x138   :  { %202 = vrcp.f32 %v72_v32 }
 0x141   :  { %v201_v34 = vpop.eup %200 }
 0x142   :  { %v74_v37 = vmul.f32 %v201_v34, %v55_v35 }
 0x144   :  { %v83_v41 = vadd.f32 %v173_v39, %v74_v37 }
 0x145   :  { %v203_v38 = vpop.eup %202 }
 0x146   :  { %v76_v40 = vmul.f32 %v203_v38, %v56_v36 }
 0x148   :  { %v84_v42 = vadd.f32 %v173_v39, %v76_v40 }
 0x14a   :  { %v85_v43 = vpack.c.bf16 %v84_v42, %v83_v41 }
 0x14c   :  { %186 = vmatmul.mubr.msk.bf16.vlgmr.msra.gmra.mxu0 %vm26_vm0, %v85_v43 }
 0x20c   :  { %v146_v45 = vpop.f32.mrf.mxu0 }
 0x20d   :  { %v147_v46 = vadd.f32 %v174_v44, %v146_v45 }
 0x20e   :  { %v187_v47 = vpop.f32.mrf.mxu0 }
 0x20f   :  { %154 = vst.msk [vmem:[#allocation2] sm:$0xff] %vm153_vm6, %v147_v46 }
 0x210   :  { %v149_v48 = vpop.f32.mrf.mxu0 }
 0x211   :  { %v150_v49 = vadd.f32 %v174_v44, %v149_v48 }
 0x212   :  { %v188_v50 = vpop.f32.mrf.mxu0 }
 0x213   :  { %155 = vst.msk [vmem:[#allocation2 + $0x8] sm:$0xff] %vm153_vm6, %v150_v49 }
 0x214   :  { %215 = shalt.err (!%p212_p4)
}
 0x215   :  { %s229_s4 = smov 128   ;;  %s230_s6 = smov 8  }
 0x216   :  { %167 = dma.vmem_to_hbm [thread:$0]  %s162_s30, 256, %s295_s5, [#allocation3], %s229_s4, %s229_s4, %s230_s6  }
 0x217   :  { %224 = dma.done.wait [#allocation3], 256  }
 0x218   :  { %225 = vsyncadd [#allocation3], 4294967040 }
 0x219   :  { %171 = vsyncpa [#allocation3], 1 }

// kernel: transform_model.18
= control target key start
LH: loop header
LB: loop body
LE: loop exit
PB: predicated region body
PF: predicated region fallthrough
CT: control target
= control target key end

     0   :  { %s1519_s30 = smov 0   ;;  %s1698_s0 = inlined_call_operand.vmem [shape: f32[2,8,32], index: 0, kind: input, shape index: {}, may-alias: {0,9}]   ;;  %s1699_s1 = inlined_call_operand.vmem [shape: f32[2,10,32], index: 1, kind: input, shape index: {}]   ;;  %s1700_s2 = inlined_call_operand.vmem [shape: f32[2,1,10], index: 2, kind: input, shape index: {}]   ;;  %s1701_s3 = inlined_call_operand.vmem [shape: f32[1,32], index: 3, kind: input, shape index: {}]   ;;  %s1702_s4 = inlined_call_operand.vmem [shape: f32[1,32], index: 4, kind: input, shape index: {}]   ;;  %s1703_s5 = inlined_call_operand.vmem [shape: bf16[32,96], index: 5, kind: input, shape index: {}]   ;;  %s1704_s6 = inlined_call_operand.vmem [shape: f32[1,96], index: 6, kind: input, shape index: {}]   ;;  %s1705_s7 = inlined_call_operand.vmem [shape: bf16[32,32], index: 7, kind: input, shape index: {}]   ;;  %s1706_s8 = inlined_call_operand.vmem [shape: f32[1,32], index: 8, kind: input, shape index: {}]   ;;  %s1707_s9 = inlined_call_operand.vmem [shape: f32[2,8,32], index: 9, kind: output, shape index: {}, may-alias: {0,9}]  }
   0x1 LB: > { %s1262_s10 = sadd.s32 4294967295, %s1458_s30   ;;  %p1266_p0 = scmp.ge.s32.totalorder %s1458_s30, 1  ;;  %s1458_s30 = sphi %s1519_s30, %s19_s30  }
   0x2   : > { %p304_p1 = scmp.lt.s32.totalorder %s1458_s30, 3 }
   0x4   : > { %p305_p2 = pnand %p1266_p0, %p304_p1 }
   0x5   : > { %p346_p3 = scmp.lt.s32.totalorder (!%p305_p2), %s1262_s10, 1  ;;  %s1460_s17 = smov (!%p305_p2), 96  }
   0x6   : > { %308 = sbr.rel (%p305_p2) target bundleno = 2990 (0xbae), region = 56  ;;  %s1463_s15 = smov (!%p305_p2), 120  }
   0x7   : > { %s1464_s18 = smov (!%p305_p2), 88   ;;  %s1465_s19 = smov (!%p305_p2), 112  }
   0x8   : > { %s1466_s22 = smov (!%p305_p2), 80   ;;  %s1468_s28 = smov (!%p305_p2), 72  }
   0xb   : > { %s1709_s10 = smov (!%p346_p3, %s1262_s10), 1  ;;  %vm366_vm0 = vcmask 261120   ;;  %v1430_v2 = vld [vmem:[%s1703_s5 + $0x8] sm:$0xff]   ;;  %v1431_v3 = vld [vmem:[%s1703_s5] sm:$0xff]   ;;  %v1461_v9 = vmov 0.0   ;;  %vm1462_vm1 = vmmov 0  }
   0xc   : > { %s1267_s11 = sshll.u32 %s1709_s10, 3  ;;  %475 = vrot.lane.b32.xlu1 %v1430_v2, %s1460_s17  ;;  %1333 = vmatprep.subr.bf16.mxu1 %v1461_v9  ;;  %s1294_s20 = sshll.u32 %s1709_s10, 4  ;;  %v1273_v15 = vld [vmem:[%s1704_s6] ss:$0 sm:$0xff]  ;;  %vm549_vm4 = vcmask 64512   ;;  %vm597_vm6 = vcmask 80896  }
   0xd   : > { %s349_s14 = scalar_lea.vmem %s1698_s0, %s1267_s11  ;;  %1325 = vmatprep.subr.bf16.mxu0 %v1461_v9  ;;  %s354_s23 = scalar_lea.vmem %s1699_s1, %s1294_s20  ;;  %1337 = vmatprep.mubr.msk.bf16.mxu1 %vm1462_vm1, %v1461_v9  ;;  %v1271_v24 = vld [vmem:[%s1701_s3] ss:$0 sm:$0xff]  ;;  %vm616_vm7 = vcmask 1044480   ;;  %vm664_vm8 = vcmask 1043456  }
   0xe   : > { %v1535_v0 = vld [vmem:[%s349_s14] sm:$0xff]  ;;  %1326 = vmatpush3.bf16.msra.mxu0 %v1430_v2  ;;  %v410_v13 = vld [vmem:[%s354_s23 + $0x8] sm:$0x3]  ;;  %1329 = vmatprep.mubr.msk.bf16.mxu0 %vm1462_vm1, %v1461_v9  ;;  %s357_s14 = scalar_lea.vmem %s1700_s2, %s1709_s10 }
   0xf   : > { %v367_v1 = vsel %vm366_vm0, %v1535_v0, 0.0  ;;  %1327 = vmatprep.subr.bf16.mxu0 %v1461_v9  ;;  %v409_v12 = vld [vmem:[%s354_s23] sm:$0xff]  ;;  %s1467_s23 = smov 104  }
  0x10   : > { %368 = vadd.xlane.f32.xlu0 %v367_v1  ;;  %473 = vrot.lane.b32.xlu1 %v1431_v3, %s1460_s17  ;;  %v411_v14 = vpack.c.bf16 %v410_v13, %v409_v12  ;;  %v1272_v27 = vld [vmem:[%s1702_s4] ss:$0 sm:$0xff] }
  0x11   : > { %v1594_v47 = vld [vmem:[%s357_s14] ss:$0 sm:$0xff] }
  0x12   : > { %1328 = vmatpush3.bf16.msra.mxu0 %v1431_v3  ;;  %vm533_vm5 = vcmp.eq.f32.partialorder %v1594_v47, 0.0 }
  0x13   : > { %1341 = vmatprep.subr.bf16.mxu0 %v1461_v9 }
  0x7e   : > { %v476_v10 = vpop.permute.xlu1 %475 }
  0x7f   : > { %1334 = vmatpush3.bf16.msra.mxu1 %v476_v10 }
  0x80   : > { %1335 = vmatprep.subr.bf16.mxu1 %v1461_v9 }
  0x82   : > { %v474_v11 = vpop.permute.xlu1 %473 }
  0x83   : > { %1336 = vmatpush3.bf16.msra.mxu1 %v474_v11 }
  0x84   : > { %1347 = vmatprep.subr.bf16.mxu1 %v1461_v9 }
  0x86   : > { %1338 = vmatmul.mubr.msk.bf16.vlgmr.msra.gmra.mxu1 %vm366_vm0, %v411_v14 }
  0x87   : > { %1349 = vmatprep.mubr.msk.bf16.mxu1 %vm1462_vm1, %v1461_v9 }
  0x99   : > { %v369_v4 = vpop.xlane.xlu0 %368 }
  0x9a   : > { %v371_v5 = vmul.f32 0.03125, %v369_v4 }
  0x9c   : > { %v372_v6 = vsub.f32 %v1535_v0, %v371_v5  ;;  %v537_v5 = vld [vmem:[%s1705_s7] sm:$0xf] }
  0x9e   : > { %v373_v7 = vmul.f32 %v372_v6, %v372_v6  ;;  %v385_v25 = vmul.f32 %v1271_v24, %v372_v6  ;;  %v666_v6 = vsel %vm664_vm8, %v537_v5, 0 }
  0xa0   : > { %v374_v8 = vsel %vm366_vm0, %v373_v7, 0.0 }
  0xa1   : > { %375 = vadd.xlane.f32.xlu0 %v374_v8 }
  0xb7   : > { %479 = vrot.lane.b32.xlu0 %v1273_v15, %s1460_s17 }
 0x12a   : > { %v376_v16 = vpop.xlane.xlu0 %375 }
 0x12b   : > { %v378_v17 = vmul.f32 0.032258064, %v376_v16 }
 0x12d   : > { %1432 = vrsqrt.f32 %v378_v17  ;;  %vm388_vm2 = vcmp.eq.f32.partialorder %v378_v17, inf  ;;  %v391_v20 = vand.u32 2147483648, %v378_v17  ;;  %vm390_vm3 = vcmp.eq.f32.partialorder %v378_v17, 0.0 }
 0x12e   : > { %v480_v32 = vpop.permute.xlu0 %479 }
 0x13a   : > { %v1433_v18 = vpop.eup %1432 }
 0x13b   : > { %v387_v19 = vmul.f32 %v1433_v18, %v378_v17 }
 0x13d   : > { %v389_v21 = vsel %vm388_vm2, %v378_v17, %v387_v19 }
 0x13e   : > { %v392_v22 = vsel %vm390_vm3, %v391_v20, %v389_v21 }
 0x13f   : > { %v393_v23 = vadd.f32 1e-06, %v392_v22 }
 0x141   : > { %1434 = vrcp.f32 %v393_v23 }
 0x146   : > { %v519_v31 = vpop.f32.mrf.mxu1 }
 0x147   : > { %v520_v34 = vadd.f32 %v519_v31, %v480_v32 }
 0x148   : > { %v1339_v33 = vpop.f32.mrf.mxu1 }
 0x14a   : > { %v522_v35 = vpop.f32.mrf.mxu1 }
 0x14b   : > { %v523_v36 = vadd.f32 %v522_v35, %v480_v32 }
 0x14c   : > { %v1340_v37 = vpop.f32.mrf.mxu1 }
 0x14d   : > { %v1579_v38 = vpack.c.bf16 %v523_v36, %v520_v34  ;;  %v538_v37 = vld [vmem:[%s1705_s7 + $0x4] sm:$0xf] }
 0x14e   : > { %v1435_v26 = vpop.eup %1434 }
 0x14f   : > { %v395_v28 = vmul.f32 %v1435_v26, %v385_v25  ;;  %v554_v39 = vsel %vm549_vm4, %v1579_v38, 0 }
 0x151   : > { %v402_v29 = vadd.f32 %v1272_v27, %v395_v28 }
 0x153   : > { %v403_v30 = vpack.c.bf16 %v402_v29, %v402_v29 }
 0x155   : > { %1330 = vmatmul.mubr.msk.bf16.vlgmr.msra.gmra.mxu0 %vm366_vm0, %v403_v30 }
 0x156   : > { %1343 = vmatprep.mubr.msk.bf16.mxu0 %vm1462_vm1, %v1461_v9  ;;  %1342 = vmatpush3.bf16.xpose.msra.mxu0 %v554_v39  ;;  %v826_v39 = vsel %vm664_vm8, %v538_v37, 0 }
 0x157   : > { %1353 = vmatprep.subr.bf16.mxu0 %v1461_v9 }
 0x215   : > { %v467_v40 = vpop.f32.mrf.mxu0 }
 0x216   : > { %v468_v41 = vadd.f32 %v1273_v15, %v467_v40 }
 0x217   : > { %v1331_v42 = vpop.f32.mrf.mxu0 }
 0x218   : > { %v534_v43 = vmul.f32 0.35355338, %v468_v41 }
 0x219   : > { %v470_v44 = vpop.f32.mrf.mxu0 }
 0x21a   : > { %v1584_v45 = vpack.c.bf16 %v534_v43, %v534_v43 }
 0x21b   : > { %v1332_v46 = vpop.f32.mrf.mxu0 }
 0x21c   : > { %1344 = vmatmul.mubr.msk.bf16.vlgmr.msra.gmra.mxu0 %vm549_vm4, %v1584_v45 }
 0x21d   : > { %1355 = vmatprep.mubr.msk.bf16.mxu0 %vm1462_vm1, %v1461_v9  ;;  %1354 = vmatpush3.bf16.msra.mxu0 %v666_v6 }
 0x21e   : > { %1365 = vmatprep.subr.bf16.mxu0 %v1461_v9 }
 0x2dc   : > { %v590_v48 = vpop.f32.mrf.mxu0 }
 0x2dd   : > { %v596_v49 = vsel %vm533_vm5, -1e+09, %v590_v48 }
 0x2de   : > { %v1345_v50 = vpop.f32.mrf.mxu0  ;;  %v598_v51 = vsel %vm597_vm6, %v596_v49, -inf }
 0x2df   : > { %599 = vmax.xlane.f32.xlu1 %v598_v51 }
 0x2e0   : > { %v593_v52 = vpop.f32.mrf.mxu0 }
 0x2e2   : > { %v1346_v53 = vpop.f32.mrf.mxu0 }
 0x2f0   : > { %611 = vrot.lane.b32.xlu1 %v1579_v38, %s1460_s17 }
 0x2f4   : > { %710 = vrot.lane.b32.xlu1 %v1584_v45, %s1463_s15 }
 0x368   : > { %v600_v54 = vpop.xlane.xlu1 %599 }
 0x369   : > { %v601_v55 = vsub.f32 %v596_v49, %v600_v54 }
 0x36b   : > { %v602_v56 = vmul.f32 1.442695, %v601_v55 }
 0x36c   : > { %v612_v57 = vpop.permute.xlu1 %611 }
 0x36d   : > { %1436 = vpow2.f32 %v602_v56  ;;  %v618_v58 = vsel %vm616_vm7, %v612_v57, 0 }
 0x36e   : > { %1348 = vmatpush3.bf16.msra.mxu1 %v618_v58 }
 0x36f   : > { %1359 = vmatprep.subr.bf16.mxu1 %v1461_v9 }
 0x370   : > { %v711_v4 = vpop.permute.xlu1 %710 }
 0x37a   : > { %v1437_v59 = vpop.eup %1436 }
 0x37b   : > { %v604_v60 = vsel %vm597_vm6, %v1437_v59, 0.0 }
 0x37c   : > { %605 = vadd.xlane.f32.xlu0 %v604_v60  ;;  %v1279_v60 = vld [vmem:[%s1706_s8] ss:$0 sm:$0xff] }
 0x392   : > { %712 = vrot.lane.b32.xlu0 %v1579_v38, %s1463_s15  ;;  %s361_s15 = scalar_lea.vmem %s1707_s9, %s1267_s11 }
 0x405   : > { %v606_v61 = vpop.xlane.xlu0 %605 }
 0x406   : > { %1438 = vrcp.f32 %v606_v61 }
 0x409   : > { %v713_v1 = vpop.permute.xlu0 %712 }
 0x40a   : > { %v718_v3 = vsel %vm549_vm4, %v713_v1, 0 }
 0x413   : > { %v1439_v62 = vpop.eup %1438 }
 0x414   : > { %v608_v63 = vmul.f32 %v1439_v62, %v1437_v59 }
 0x416   : > { %v609_v2 = vpack.c.bf16 %v608_v63, %v608_v63 }
 0x418   : > { %1350 = vmatmul.mubr.msk.bf16.vlgmr.msra.gmra.mxu1 %vm597_vm6, %v609_v2 }
 0x419   : > { %1360 = vmatpush3.bf16.xpose.msra.mxu1 %v718_v3  ;;  %1361 = vmatprep.mubr.msk.bf16.mxu1 %vm1462_vm1, %v1461_v9 }
 0x41a   : > { %1371 = vmatprep.subr.bf16.mxu1 %v1461_v9 }
 0x420   : > { %1362 = vmatmul.mubr.msk.bf16.vlgmr.msra.gmra.mxu1 %vm549_vm4, %v711_v4 }
 0x421   : > { %1373 = vmatprep.mubr.msk.bf16.mxu1 %vm1462_vm1, %v1461_v9  ;;  %1372 = vmatpush3.bf16.msra.mxu1 %v826_v39 }
 0x422   : > { %1383 = vmatprep.subr.bf16.mxu1 %v1461_v9 }
 0x4d8   : > { %v654_v7 = vpop.f32.mrf.mxu1 }
 0x4d9   : > { %v660_v8 = vpack.c.bf16 %v654_v7, %v654_v7 }
 0x4da   : > { %v1351_v10 = vpop.f32.mrf.mxu1 }
 0x4db   : > { %1356 = vmatmul.mubr.msk.bf16.vlgmr.msra.gmra.mxu0 %vm549_vm4, %v660_v8 }
 0x4dc   : > { %v657_v11 = vpop.f32.mrf.mxu1  ;;  %1367 = vmatprep.mubr.msk.bf16.mxu0 %vm1462_vm1, %v1461_v9 }
 0x4dd   : > { %v539_v11 = vld [vmem:[%s1705_s7 + $0x8] sm:$0xf] }
 0x4de   : > { %v1352_v12 = vpop.f32.mrf.mxu1 }
 0x4df   : > { %v985_v12 = vsel %vm664_vm8, %v539_v11, 0 }
 0x4e0   : > { %v754_v13 = vpop.f32.mrf.mxu1 }
 0x4e1   : > { %v760_v14 = vsel %vm533_vm5, -1e+09, %v754_v13 }
 0x4e2   : > { %v1363_v15 = vpop.f32.mrf.mxu1  ;;  %v761_v16 = vsel %vm597_vm6, %v760_v14, -inf }
 0x4e3   : > { %762 = vmax.xlane.f32.xlu1 %v761_v16 }
 0x4e4   : > { %v757_v17 = vpop.f32.mrf.mxu1 }
 0x4e6   : > { %v1364_v18 = vpop.f32.mrf.mxu1 }
 0x4f4   : > { %773 = vrot.lane.b32.xlu1 %v1579_v38, %s1464_s18 }
 0x4f8   : > { %869 = vrot.lane.b32.xlu1 %v1584_v45, %s1465_s19 }
 0x56c   : > { %v763_v19 = vpop.xlane.xlu1 %762 }
 0x56d   : > { %v764_v20 = vsub.f32 %v760_v14, %v763_v19 }
 0x56f   : > { %v765_v21 = vmul.f32 1.442695, %v764_v20 }
 0x570   : > { %v774_v22 = vpop.permute.xlu1 %773 }
 0x571   : > { %1440 = vpow2.f32 %v765_v21  ;;  %v779_v23 = vsel %vm616_vm7, %v774_v22, 0 }
 0x572   : > { %1366 = vmatpush3.bf16.msra.mxu0 %v779_v23 }
 0x573   : > { %1377 = vmatprep.subr.bf16.mxu0 %v1461_v9 }
 0x574   : > { %v870_v36 = vpop.permute.xlu1 %869 }
 0x57e   : > { %v1441_v24 = vpop.eup %1440 }
 0x57f   : > { %v767_v25 = vsel %vm597_vm6, %v1441_v24, 0.0 }
 0x580   : > { %768 = vadd.xlane.f32.xlu0 %v767_v25 }
 0x596   : > { %871 = vrot.lane.b32.xlu0 %v1579_v38, %s1465_s19 }
 0x59b   : > { %v702_v26 = vpop.f32.mrf.mxu0 }
 0x59d   : > { %v1357_v27 = vpop.f32.mrf.mxu0 }
 0x59f   : > { %v705_v28 = vpop.f32.mrf.mxu0 }
 0x5a1   : > { %v1358_v29 = vpop.f32.mrf.mxu0 }
 0x609   : > { %v769_v30 = vpop.xlane.xlu0 %768 }
 0x60a   : > { %1442 = vrcp.f32 %v769_v30 }
 0x60d   : > { %v872_v33 = vpop.permute.xlu0 %871 }
 0x60e   : > { %v877_v35 = vsel %vm549_vm4, %v872_v33, 0 }
 0x617   : > { %v1443_v31 = vpop.eup %1442 }
 0x618   : > { %v771_v32 = vmul.f32 %v1443_v31, %v1441_v24  ;;  %v540_v31 = vld [vmem:[%s1705_s7 + $0xc] sm:$0xf] }
 0x61a   : > { %v772_v34 = vpack.c.bf16 %v771_v32, %v771_v32 }
 0x61c   : > { %1368 = vmatmul.mubr.msk.bf16.vlgmr.msra.gmra.mxu0 %vm597_vm6, %v772_v34 }
 0x61d   : > { %1378 = vmatpush3.bf16.xpose.msra.mxu0 %v877_v35  ;;  %1379 = vmatprep.mubr.msk.bf16.mxu0 %vm1462_vm1, %v1461_v9 }
 0x61e   : > { %1389 = vmatprep.subr.bf16.mxu0 %v1461_v9 }
 0x624   : > { %1380 = vmatmul.mubr.msk.bf16.vlgmr.msra.gmra.mxu0 %vm549_vm4, %v870_v36 }
 0x625   : > { %1391 = vmatprep.mubr.msk.bf16.mxu0 %vm1462_vm1, %v1461_v9  ;;  %1390 = vmatpush3.bf16.msra.mxu0 %v985_v12 }
 0x626   : > { %1401 = vmatprep.subr.bf16.mxu0 %v1461_v9 }
 0x6dc   : > { %v815_v40 = vpop.f32.mrf.mxu0 }
 0x6dd   : > { %v821_v41 = vpack.c.bf16 %v815_v40, %v815_v40 }
 0x6de   : > { %v1369_v42 = vpop.f32.mrf.mxu0 }
 0x6df   : > { %1374 = vmatmul.mubr.msk.bf16.vlgmr.msra.gmra.mxu1 %vm549_vm4, %v821_v41 }
 0x6e0   : > { %v818_v43 = vpop.f32.mrf.mxu0  ;;  %1385 = vmatprep.mubr.msk.bf16.mxu1 %vm1462_vm1, %v1461_v9 }
 0x6e2   : > { %v1370_v44 = vpop.f32.mrf.mxu0 }
 0x6e4   : > { %v913_v46 = vpop.f32.mrf.mxu0 }
 0x6e5   : > { %v919_v48 = vsel %vm533_vm5, -1e+09, %v913_v46 }
 0x6e6   : > { %v1381_v49 = vpop.f32.mrf.mxu0  ;;  %v920_v50 = vsel %vm597_vm6, %v919_v48, -inf }
 0x6e7   : > { %921 = vmax.xlane.f32.xlu1 %v920_v50 }
 0x6e8   : > { %v916_v51 = vpop.f32.mrf.mxu0 }
 0x6ea   : > { %v1382_v52 = vpop.f32.mrf.mxu0 }
 0x6f8   : > { %932 = vrot.lane.b32.xlu1 %v1579_v38, %s1466_s22 }
 0x6fc   : > { %1028 = vrot.lane.b32.xlu1 %v1584_v45, %s1467_s23  ;;  %v548_v45 = vadd.f32 %v1279_v60, %v1535_v0 }
 0x6fe   : > { %v708_v61 = vadd.f32 %v702_v26, %v548_v45 }
 0x770   : > { %v922_v53 = vpop.xlane.xlu1 %921 }
 0x771   : > { %v923_v54 = vsub.f32 %v919_v48, %v922_v53 }
 0x773   : > { %v924_v55 = vmul.f32 1.442695, %v923_v54 }
 0x774   : > { %v933_v56 = vpop.permute.xlu1 %932 }
 0x775   : > { %1444 = vpow2.f32 %v924_v55  ;;  %v938_v57 = vsel %vm616_vm7, %v933_v56, 0 }
 0x776   : > { %1384 = vmatpush3.bf16.msra.mxu1 %v938_v57 }
 0x777   : > { %1395 = vmatprep.subr.bf16.mxu1 %v1461_v9 }
 0x778   : > { %v1029_v0 = vpop.permute.xlu1 %1028 }
 0x782   : > { %v1445_v58 = vpop.eup %1444 }
 0x783   : > { %v926_v59 = vsel %vm597_vm6, %v1445_v58, 0.0 }
 0x784   : > { %927 = vadd.xlane.f32.xlu0 %v926_v59 }
 0x79a   : > { %1030 = vrot.lane.b32.xlu0 %v1579_v38, %s1467_s23 }
 0x79f   : > { %v862_v62 = vpop.f32.mrf.mxu1 }
 0x7a0   : > { %v868_v63 = vadd.f32 %v862_v62, %v708_v61 }
 0x7a1   : > { %v1375_v1 = vpop.f32.mrf.mxu1 }
 0x7a3   : > { %v865_v2 = vpop.f32.mrf.mxu1 }
 0x7a5   : > { %v1376_v3 = vpop.f32.mrf.mxu1 }
 0x80d   : > { %v928_v4 = vpop.xlane.xlu0 %927 }
 0x80e   : > { %1446 = vrcp.f32 %v928_v4 }
 0x811   : > { %v1031_v7 = vpop.permute.xlu0 %1030 }
 0x812   : > { %v1036_v10 = vsel %vm549_vm4, %v1031_v7, 0 }
 0x81b   : > { %v1447_v5 = vpop.eup %1446 }
 0x81c   : > { %v930_v6 = vmul.f32 %v1447_v5, %v1445_v58 }
 0x81e   : > { %v931_v8 = vpack.c.bf16 %v930_v6, %v930_v6 }
 0x820   : > { %1386 = vmatmul.mubr.msk.bf16.vlgmr.msra.gmra.mxu1 %vm597_vm6, %v931_v8 }
 0x821   : > { %1396 = vmatpush3.bf16.xpose.msra.mxu1 %v1036_v10  ;;  %1397 = vmatprep.mubr.msk.bf16.mxu1 %vm1462_vm1, %v1461_v9 }
 0x822   : > { %1407 = vmatprep.subr.bf16.mxu1 %v1461_v9 }
 0x828   : > { %1398 = vmatmul.mubr.msk.bf16.vlgmr.msra.gmra.mxu1 %vm549_vm4, %v1029_v0 }
 0x829   : > { %1409 = vmatprep.mubr.msk.bf16.mxu1 %vm1462_vm1, %v1461_v9 }
 0x8e0   : > { %v974_v13 = vpop.f32.mrf.mxu1 }
 0x8e1   : > { %v980_v14 = vpack.c.bf16 %v974_v13, %v974_v13 }
 0x8e2   : > { %v1387_v15 = vpop.f32.mrf.mxu1 }
 0x8e3   : > { %1392 = vmatmul.mubr.msk.bf16.vlgmr.msra.gmra.mxu0 %vm549_vm4, %v980_v14 }
 0x8e4   : > { %v977_v16 = vpop.f32.mrf.mxu1  ;;  %1403 = vmatprep.mubr.msk.bf16.mxu0 %vm1462_vm1, %v1461_v9 }
 0x8e6   : > { %v1388_v17 = vpop.f32.mrf.mxu1 }
 0x8e8   : > { %v1072_v18 = vpop.f32.mrf.mxu1 }
 0x8e9   : > { %v1078_v19 = vsel %vm533_vm5, -1e+09, %v1072_v18 }
 0x8ea   : > { %v1399_v20 = vpop.f32.mrf.mxu1  ;;  %v1079_v21 = vsel %vm597_vm6, %v1078_v19, -inf }
 0x8eb   : > { %1080 = vmax.xlane.f32.xlu1 %v1079_v21 }
 0x8ec   : > { %v1075_v22 = vpop.f32.mrf.mxu1 }
 0x8ee   : > { %v1400_v23 = vpop.f32.mrf.mxu1 }
 0x8fc   : > { %1091 = vrot.lane.b32.xlu1 %v1579_v38, %s1468_s28  ;;  %v1144_v38 = vsel %vm664_vm8, %v540_v31, 0 }
 0x8fd   : > { %1408 = vmatpush3.bf16.msra.mxu1 %v1144_v38 }
 0x974   : > { %v1081_v24 = vpop.xlane.xlu1 %1080 }
 0x975   : > { %v1082_v25 = vsub.f32 %v1078_v19, %v1081_v24 }
 0x977   : > { %v1083_v26 = vmul.f32 1.442695, %v1082_v25 }
 0x978   : > { %v1092_v27 = vpop.permute.xlu1 %1091 }
 0x979   : > { %1448 = vpow2.f32 %v1083_v26  ;;  %v1097_v9 = vsel %vm616_vm7, %v1092_v27, 0 }
 0x97a   : > { %1402 = vmatpush3.bf16.msra.mxu0 %v1097_v9 }
 0x986   : > { %v1449_v28 = vpop.eup %1448 }
 0x987   : > { %v1085_v47 = vsel %vm597_vm6, %v1449_v28, 0.0 }
 0x988   : > { %1086 = vadd.xlane.f32.xlu0 %v1085_v47 }
 0x9a3   : > { %v1021_v29 = vpop.f32.mrf.mxu0 }
 0x9a4   : > { %v1027_v30 = vadd.f32 %v1021_v29, %v868_v63 }
 0x9a5   : > { %v1393_v32 = vpop.f32.mrf.mxu0 }
 0x9a7   : > { %v1024_v33 = vpop.f32.mrf.mxu0 }
 0x9a9   : > { %v1394_v34 = vpop.f32.mrf.mxu0 }
 0xa11   : > { %v1087_v35 = vpop.xlane.xlu0 %1086 }
 0xa12   : > { %1450 = vrcp.f32 %v1087_v35 }
 0xa1f   : > { %v1451_v36 = vpop.eup %1450 }
 0xa20   : > { %v1089_v37 = vmul.f32 %v1451_v36, %v1449_v28 }
 0xa22   : > { %v1090_v39 = vpack.c.bf16 %v1089_v37, %v1089_v37 }
 0xa24   : > { %1404 = vmatmul.mubr.msk.bf16.vlgmr.msra.gmra.mxu0 %vm597_vm6, %v1090_v39 }
 0xae4   : > { %v1133_v40 = vpop.f32.mrf.mxu0 }
 0xae5   : > { %v1139_v41 = vpack.c.bf16 %v1133_v40, %v1133_v40 }
 0xae6   : > { %v1405_v42 = vpop.f32.mrf.mxu0 }
 0xae7   : > { %1410 = vmatmul.mubr.msk.bf16.vlgmr.msra.gmra.mxu1 %vm549_vm4, %v1139_v41 }
 0xae8   : > { %v1136_v43 = vpop.f32.mrf.mxu0 }
 0xaea   : > { %v1406_v44 = vpop.f32.mrf.mxu0 }
 0xba7   : > { %v1180_v46 = vpop.f32.mrf.mxu1 }
 0xba8   : > { %v1186_v48 = vadd.f32 %v1180_v46, %v1027_v30 }
 0xba9   : > { %v1411_v49 = vpop.f32.mrf.mxu1 }
 0xbaa   : > { %1187 = vst.msk [vmem:[%s361_s15] sm:$0xff] %vm366_vm0, %v1186_v48 }
 0xbab   : > { %v1183_v50 = vpop.f32.mrf.mxu1 }
 0xbad   : > { %v1412_v51 = vpop.f32.mrf.mxu1 }
 0xbae PF: > { %s19_s30 = sadd.s32 1, %s1458_s30  }
 0xbaf   : > { %p16_p4 = scmp.ge.s32.totalorder %s19_s30, 4  }
 0xbb1   :  { %18 = sbr.rel (!%p16_p4) target bundleno = 1 (0x1), region = 92 }

</bundles_post_ra>
